<compile_context>
chip_gen: v7x
topology: tpu7x:2x2x1
jax: 0.10.0
libtpu: 0.0.40
codegen_flags: <defaults>
</compile_context>

<pallas_src>
import functools

import jax
import jax.numpy as jnp
from jax.experimental import pallas as pl
from jax.experimental.pallas import tpu as pltpu


_DIMS_PARALLEL2 = pltpu.CompilerParams(
    dimension_semantics=("parallel", "parallel"),
    vmem_limit_bytes=64 * 1024 * 1024,
)


# ---------------------------------------------------------------------------
# helpers
# ---------------------------------------------------------------------------

def _pick_row_tile(H, bytes_per_row, *, target_bytes, min_rows=1):
    """Largest divisor of H with TR*bytes_per_row <= target_bytes, TR >= min_rows."""
    divisors = [d for d in range(1, H + 1) if H % d == 0 and d >= min_rows]
    fitting = [d for d in divisors if d * bytes_per_row <= target_bytes]
    if fitting:
        return max(fitting)
    # nothing fits the budget: smallest legal tile (correct, maybe slow).
    return min(divisors) if divisors else H


def _bn_scale_shift(psum, psumsq, count, gamma, beta, eps):
    """Fold training-mode BN (batch stats, biased var) into per-channel scale/shift."""
    total = jnp.sum(psum, axis=(0, 1))
    totalsq = jnp.sum(psumsq, axis=(0, 1))
    mean = total / count
    var = jnp.maximum(totalsq / count - mean * mean, 0.0)   # clamp: no negative var
    scale = gamma.astype(jnp.float32) * jax.lax.rsqrt(var + eps)
    shift = beta.astype(jnp.float32) - mean * scale
    return scale.reshape(1, -1), shift.reshape(1, -1)


# ---------------------------------------------------------------------------
# kernel 1: 1x1 conv (+ optional fused BN+ReLU prologue) + fused partial BN stats
# ---------------------------------------------------------------------------

def _conv1x1_kernel(x_ref, w_ref, scale_ref, shift_ref,
                    o_ref, s_ref, ss_ref, *, fuse_act):
    x = x_ref[0].astype(jnp.float32)                     # (TR, W, Cin)
    if fuse_act:                                         # BN(prev) + ReLU prologue
        x = jnp.maximum(x * scale_ref[...] + shift_ref[...], 0.0)
    TR, W, Cin = x.shape
    xm = x.reshape(TR * W, Cin).astype(w_ref.dtype)      # MXU operand dtype
    y = jnp.dot(xm, w_ref[...], preferred_element_type=jnp.float32)
    Cout = y.shape[-1]
    y_st = y.astype(o_ref.dtype)                         # stored (possibly rounded)
    o_ref[0] = y_st.reshape(TR, W, Cout)
    # partial BN statistics of *this* conv's output, from the stored values
    ys = y_st.astype(jnp.float32)
    s_ref[0] = jnp.sum(ys, axis=0, keepdims=True)
    ss_ref[0] = jnp.sum(ys * ys, axis=0, keepdims=True)


def _conv1x1_stage(x, w, scale, shift, *, fuse_act, out_dtype, tile_bytes):
    N, H, W, Cin = x.shape
    Cout = w.shape[1]
    TR = _pick_row_tile(H, W * (Cin + Cout) * 4, target_bytes=tile_bytes)
    GR = H // TR
    if scale is None:
        scale = jnp.ones((1, Cin), jnp.float32)
        shift = jnp.zeros((1, Cin), jnp.float32)
    kernel = functools.partial(_conv1x1_kernel, fuse_act=fuse_act)
    return pl.pallas_call(
        kernel,
        out_shape=(
            jax.ShapeDtypeStruct((N, H, W, Cout), out_dtype),
            jax.ShapeDtypeStruct((N * GR, 1, Cout), jnp.float32),
            jax.ShapeDtypeStruct((N * GR, 1, Cout), jnp.float32),
        ),
        grid=(N, GR),
        in_specs=[
            pl.BlockSpec((1, TR, W, Cin), lambda n, r: (n, r, 0, 0)),
            pl.BlockSpec((Cin, Cout), lambda n, r: (0, 0)),
            pl.BlockSpec((1, Cin), lambda n, r: (0, 0)),
            pl.BlockSpec((1, Cin), lambda n, r: (0, 0)),
        ],
        out_specs=(
            pl.BlockSpec((1, TR, W, Cout), lambda n, r: (n, r, 0, 0)),
            pl.BlockSpec((1, 1, Cout), lambda n, r: (n * GR + r, 0, 0)),
            pl.BlockSpec((1, 1, Cout), lambda n, r: (n * GR + r, 0, 0)),
        ),
        compiler_params=_DIMS_PARALLEL2,
    )(x, w, scale, shift)


# ---------------------------------------------------------------------------
# kernel 2: 3x3 dilated conv, row-tiled, fused BN1+ReLU prologue + partial stats
#           halo assembled from clamped prev/cur/next row blocks (no jnp.pad,
#           no manual DMA, no full-image residency)
# ---------------------------------------------------------------------------

def _conv3x3_kernel(prev_ref, cur_ref, nxt_ref, w_ref, scale_ref, shift_ref,
                    o_ref, s_ref, ss_ref, *, H, W, C1, C2, TR, rate):
    r = pl.program_id(1)
    S = TR + 2 * rate

    # assemble the row slab [r*TR - rate, r*TR + TR + rate) from the three
    # (clamped) TR-row blocks — outer-dim slices/concat are cheap.
    top = prev_ref[0, pl.ds(TR - rate, rate)]            # (rate, W, C1)
    cur = cur_ref[0]                                     # (TR,   W, C1)
    bot = nxt_ref[0, pl.ds(0, rate)]                     # (rate, W, C1)
    slab = jnp.concatenate([top, cur, bot], axis=0).astype(jnp.float32)

    # BN1 + ReLU prologue (per row tile, pipelined with everything else)
    xa = jnp.maximum(slab * scale_ref[...] + shift_ref[...], 0.0)

    # rows whose absolute input row falls outside [0, H) are image padding:
    # must be zero *post*-activation.
    row_abs = jax.lax.broadcasted_iota(jnp.int32, (S, W, C1), 0) + (r * TR - rate)
    xa = jnp.where((row_abs >= 0) & (row_abs < H), xa, 0.0)

    # pre-staged, zero-filled W-shifted variants (kw = 0, 1, 2)
    zcol = jnp.zeros((S, rate, C1), jnp.float32)
    x_l = jnp.concatenate([zcol, xa[:, : W - rate, :]], axis=1)  # xa[., w - rate]
    x_r = jnp.concatenate([xa[:, rate:, :], zcol], axis=1)       # xa[., w + rate]
    variants = (x_l, xa, x_r)

    wd = w_ref.dtype
    acc = jnp.zeros((TR * W, C2), jnp.float32)
    for kh in range(3):                                  # all 9 taps in one body,
        for kw in range(3):                              # single local accumulator
            patch = variants[kw][kh * rate: kh * rate + TR]      # (TR, W, C1)
            acc = acc + jnp.dot(patch.reshape(TR * W, C1).astype(wd),
                                w_ref[kh, kw],
                                preferred_element_type=jnp.float32)

    y_st = acc.reshape(TR, W, C2).astype(o_ref.dtype)
    o_ref[0] = y_st
    ys = y_st.astype(jnp.float32).reshape(TR * W, C2)
    s_ref[0] = jnp.sum(ys, axis=0, keepdims=True)
    ss_ref[0] = jnp.sum(ys * ys, axis=0, keepdims=True)


def _conv3x3_stage(y1, w_taps, scale, shift, *, rate, out_dtype, tile_bytes):
    N, H, W, C1 = y1.shape
    K = w_taps.shape[0]
    C2 = w_taps.shape[-1]
    assert K == 3, "conv2 kernel is specialized for 3x3"
    # rough per-row working-set: slab + 2 shifted variants + f32 accumulator
    TR = _pick_row_tile(H, W * (3 * C1 + C2) * 4,
                        target_bytes=tile_bytes, min_rows=rate)
    assert TR >= rate, "row tile must be >= dilation rate"
    GR = H // TR
    kernel = functools.partial(_conv3x3_kernel, H=H, W=W, C1=C1, C2=C2,
                               TR=TR, rate=rate)
    return pl.pallas_call(
        kernel,
        out_shape=(
            jax.ShapeDtypeStruct((N, H, W, C2), out_dtype),
            jax.ShapeDtypeStruct((N * GR, 1, C2), jnp.float32),
            jax.ShapeDtypeStruct((N * GR, 1, C2), jnp.float32),
        ),
        grid=(N, GR),
        in_specs=[
            # same array three times: previous / current / next row block
            # (clamped at image borders; border rows are masked in-kernel)
            pl.BlockSpec((1, TR, W, C1), lambda n, r: (n, jnp.maximum(r - 1, 0), 0, 0)),
            pl.BlockSpec((1, TR, W, C1), lambda n, r: (n, r, 0, 0)),
            pl.BlockSpec((1, TR, W, C1), lambda n, r: (n, jnp.minimum(r + 1, GR - 1), 0, 0)),
            pl.BlockSpec((K, K, C1, C2), lambda n, r: (0, 0, 0, 0)),
            pl.BlockSpec((1, C1), lambda n, r: (0, 0)),
            pl.BlockSpec((1, C1), lambda n, r: (0, 0)),
        ],
        out_specs=(
            pl.BlockSpec((1, TR, W, C2), lambda n, r: (n, r, 0, 0)),
            pl.BlockSpec((1, 1, C2), lambda n, r: (n * GR + r, 0, 0)),
            pl.BlockSpec((1, 1, C2), lambda n, r: (n * GR + r, 0, 0)),
        ),
        compiler_params=_DIMS_PARALLEL2,
    )(y1, y1, y1, w_taps, scale, shift)


# ---------------------------------------------------------------------------
# kernel 3: BN3 + residual add + ReLU
# ---------------------------------------------------------------------------

def _bn_add_relu_kernel(y_ref, res_ref, scale_ref, shift_ref, o_ref):
    y = y_ref[0].astype(jnp.float32)
    res = res_ref[0].astype(jnp.float32)
    out = jnp.maximum(y * scale_ref[...] + shift_ref[...] + res, 0.0)
    o_ref[0] = out.astype(o_ref.dtype)


def _bn_add_relu_stage(y, res, scale, shift, *, out_dtype, tile_bytes):
    N, H, W, C = y.shape
    TR = _pick_row_tile(H, W * C * 4 * 3, target_bytes=tile_bytes)
    GR = H // TR
    return pl.pallas_call(
        _bn_add_relu_kernel,
        out_shape=jax.ShapeDtypeStruct((N, H, W, C), out_dtype),
        grid=(N, GR),
        in_specs=[
            pl.BlockSpec((1, TR, W, C), lambda n, r: (n, r, 0, 0)),
            pl.BlockSpec((1, TR, W, C), lambda n, r: (n, r, 0, 0)),
            pl.BlockSpec((1, C), lambda n, r: (0, 0)),
            pl.BlockSpec((1, C), lambda n, r: (0, 0)),
        ],
        out_specs=pl.BlockSpec((1, TR, W, C), lambda n, r: (n, r, 0, 0)),
        compiler_params=_DIMS_PARALLEL2,
    )(y, res, scale, shift)


# ---------------------------------------------------------------------------
# Bottleneck forward
# ---------------------------------------------------------------------------

def bottleneck_forward_nhwc(x, params, *, rate=1, stride=1, eps=1e-5,
                            compute_dtype=jnp.float32, out_dtype=None,
                            tile_bytes=4 << 20):
    """NHWC Bottleneck.forward (training-mode BN).  Preferred entry point —
    keeps the whole block NHWC end-to-end (no layout transposes).

    compute_dtype: MXU-operand / intermediate-storage dtype (bf16 recommended
      on v6e/v7x: doubles MXU throughput, halves intermediate HBM passes).
      Accumulation and BN/elementwise math are always f32.
    tile_bytes: per-stage row-tile working-set budget; ~2-3 MiB on v7x,
      4-8 MiB on v5e/v6e.
    """
    if stride != 1:
        raise NotImplementedError("TODO(synk): stride>1 path not implemented")
    w1, g1, b1, w2, g2, b2, w3, g3, b3 = params

    N, H, W, Cin = x.shape
    C1 = w1.shape[0]              # planes
    C4 = w3.shape[0]              # 4 * planes
    assert Cin == C4, "downsample=None requires inplanes == 4*planes"
    count = float(N * H * W)
    out_dtype = x.dtype if out_dtype is None else out_dtype

    w1m = jnp.transpose(w1.reshape(C1, Cin), (1, 0)).astype(compute_dtype)  # (Cin, C1)
    w2t = jnp.transpose(w2, (2, 3, 1, 0)).astype(compute_dtype)             # (K, K, C1, C1)
    w3m = jnp.transpose(w3.reshape(C4, C1), (1, 0)).astype(compute_dtype)   # (C1, C4)

    # stage 1: conv1 (1x1), fused BN-stat accumulation
    out1, s1, ss1 = _conv1x1_stage(x, w1m, None, None, fuse_act=False,
                                   out_dtype=compute_dtype, tile_bytes=tile_bytes)
    scale1, shift1 = _bn_scale_shift(s1, ss1, count, g1, b1, eps)

    # stage 2: conv2 (3x3, dilation=rate), fused bn1+relu prologue + stats
    out2, s2, ss2 = _conv3x3_stage(out1, w2t, scale1, shift1, rate=rate,
                                   out_dtype=compute_dtype, tile_bytes=tile_bytes)
    scale2, shift2 = _bn_scale_shift(s2, ss2, count, g2, b2, eps)

    # stage 3: conv3 (1x1), fused bn2+relu prologue + stats
    out3, s3, ss3 = _conv1x1_stage(out2, w3m, scale2, shift2, fuse_act=True,
                                   out_dtype=compute_dtype, tile_bytes=tile_bytes)
    scale3, shift3 = _bn_scale_shift(s3, ss3, count, g3, b3, eps)

    # stage 4: bn3 + residual add + relu
    return _bn_add_relu_stage(out3, x, scale3, shift3,
                              out_dtype=out_dtype, tile_bytes=tile_bytes)


def bottleneck_forward(x_nchw, params, *, rate=1, stride=1, eps=1e-5,
                       compute_dtype=jnp.float32, out_dtype=None,
                       tile_bytes=4 << 20):
    """NCHW compatibility wrapper (matches the PyTorch module interface).
    For production, keep the network NHWC and call bottleneck_forward_nhwc
    directly — these transposes are a full HBM round trip each."""
    x_nhwc = jnp.transpose(x_nchw, (0, 2, 3, 1))
    out = bottleneck_forward_nhwc(x_nhwc, params, rate=rate, stride=stride,
                                  eps=eps, compute_dtype=compute_dtype,
                                  out_dtype=out_dtype, tile_bytes=tile_bytes)
    return jnp.transpose(out, (0, 3, 1, 2))


# ---------------------------------------------------------------------------
# pure-JAX reference (mirrors PyTorch semantics) and demo
# ---------------------------------------------------------------------------

def _reference(x, params, *, rate, eps=1e-5):
    w1, g1, b1, w2, g2, b2, w3, g3, b3 = params

    def conv(v, w, dilation=1, padding=0):
        return jax.lax.conv_general_dilated(
            v, w, (1, 1), [(padding, padding), (padding, padding)],
            rhs_dilation=(dilation, dilation),
            dimension_numbers=("NCHW", "OIHW", "NCHW"))

    def bn(v, g, b):
        mean = v.mean(axis=(0, 2, 3), keepdims=True)
        var = v.var(axis=(0, 2, 3), keepdims=True)   # biased, matches BN train
        return ((v - mean) / jnp.sqrt(var + eps) * g.reshape(1, -1, 1, 1)
                + b.reshape(1, -1, 1, 1))

    out = jnp.maximum(bn(conv(x, w1), g1, b1), 0.0)
    out = jnp.maximum(bn(conv(out, w2, dilation=rate, padding=rate), g2, b2), 0.0)
    out = bn(conv(out, w3), g3, b3)
    return jnp.maximum(out + x, 0.0)


if __name__ == "__main__":
    # small shapes: batch=2, planes=8, inplanes=4*planes=32, spatial=16, rate=2
    N, planes, H, W = 2, 8, 16, 16
    inplanes = planes * 4
    rate = 2

    key = jax.random.PRNGKey(0)
    ks = jax.random.split(key, 8)
    x = jax.random.normal(ks[0], (N, inplanes, H, W), jnp.float32)

    def kaiming(k, shape):
        fan_in = shape[1] * shape[2] * shape[3]
        return jax.random.normal(k, shape, jnp.float32) * (2.0 / fan_in) ** 0.5

    w1 = kaiming(ks[1], (planes, inplanes, 1, 1))
    w2 = kaiming(ks[2], (planes, planes, 3, 3))
    w3 = kaiming(ks[3], (planes * 4, planes, 1, 1))
    # perturbed BN affine params to exercise the fused scale/shift path
    g1 = 1.0 + 0.1 * jax.random.normal(ks[4], (planes,), jnp.float32)
    b1 = 0.1 * jax.random.normal(ks[5], (planes,), jnp.float32)
    g2 = 1.0 + 0.1 * jax.random.normal(ks[6], (planes,), jnp.float32)
    b2 = 0.1 * jax.random.normal(ks[7], (planes,), jnp.float32)
    g3 = jnp.ones((planes * 4,), jnp.float32)
    b3 = jnp.zeros((planes * 4,), jnp.float32)
    params = (w1, g1, b1, w2, g2, b2, w3, g3, b3)

    ref = jax.block_until_ready(_reference(x, params, rate=rate))

    # f32 path (tight check)
    fwd_f32 = jax.jit(functools.partial(bottleneck_forward, rate=rate))
    out = jax.block_until_ready(fwd_f32(x, params))
    assert out.shape == (N, planes * 4, H, W)
    assert jnp.allclose(out, ref, atol=5e-4, rtol=5e-4), "f32 mismatch vs reference"

    # bf16 MXU-operand / bf16 intermediates path (v6e/v7x perf mode) — loose check
    fwd_bf16 = jax.jit(functools.partial(bottleneck_forward, rate=rate,
                                         compute_dtype=jnp.bfloat16))
    out_bf16 = jax.block_until_ready(fwd_bf16(x, params))
    assert jnp.allclose(out_bf16, ref, atol=5e-2, rtol=5e-2), "bf16 mismatch vs reference"

    print("KERNEL_OK")
</pallas_src>

<mosaic_0001>
module attributes {stable_mosaic.version = 11 : i64} {
  func.func @_conv1x1_kernel(%arg0: i32, %arg1: i32, %arg2: memref<1x16x16x32xf32, #tpu.memory_space<vmem>>, %arg3: memref<32x8xf32, #tpu.memory_space<vmem>>, %arg4: memref<1x32xf32, #tpu.memory_space<vmem>>, %arg5: memref<1x32xf32, #tpu.memory_space<vmem>>, %arg6: memref<1x16x16x8xf32, #tpu.memory_space<vmem>>, %arg7: memref<1x1x8xf32, #tpu.memory_space<vmem>>, %arg8: memref<1x1x8xf32, #tpu.memory_space<vmem>>) attributes {dimension_semantics = [#tpu.dimension_semantics<parallel>, #tpu.dimension_semantics<parallel>], iteration_bounds = array<i64: 2, 1>, scalar_prefetch = 0 : i64, scratch_operands = 0 : i64, tpu.core_type = #tpu.core_type<tc>, window_params = [{transform_indices = @transform_0, window_bounds = array<i64: 1, 16, 16, 32>}, {pipeline_mode = #tpu.pipeline_mode<synchronous>, transform_indices = @transform_1, window_bounds = array<i64: 32, 8>}, {pipeline_mode = #tpu.pipeline_mode<synchronous>, transform_indices = @transform_2, window_bounds = array<i64: 1, 32>}, {pipeline_mode = #tpu.pipeline_mode<synchronous>, transform_indices = @transform_3, window_bounds = array<i64: 1, 32>}, {transform_indices = @transform_4, window_bounds = array<i64: 1, 16, 16, 8>}, {transform_indices = @transform_5, window_bounds = array<i64: 1, 1, 8>}, {transform_indices = @transform_6, window_bounds = array<i64: 1, 1, 8>}]} {
    %c0 = arith.constant 0 : index
    %c0_0 = arith.constant 0 : index
    %c0_1 = arith.constant 0 : index
    %c0_2 = arith.constant 0 : index
    %0 = vector.load %arg2[%c0, %c0_0, %c0_1, %c0_2] : memref<1x16x16x32xf32, #tpu.memory_space<vmem>>, vector<1x16x16x32xf32>
    %1 = vector.shape_cast %0 : vector<1x16x16x32xf32> to vector<16x16x32xf32>
    %2 = vector.shape_cast %1 : vector<16x16x32xf32> to vector<256x32xf32>
    %c0_3 = arith.constant 0 : index
    %c0_4 = arith.constant 0 : index
    %3 = vector.load %arg3[%c0_3, %c0_4] : memref<32x8xf32, #tpu.memory_space<vmem>>, vector<32x8xf32>
    %cst = arith.constant dense<0.000000e+00> : vector<256x8xf32>
    %4 = tpu.matmul %2, %3, %cst {dimension_numbers = #tpu.dot_dimension_numbers<[1], [0], [0], [1], [0, 0, 1, 1], [], []>} : vector<256x32xf32>, vector<32x8xf32>, vector<256x8xf32> -> vector<256x8xf32>
    %5 = vector.shape_cast %4 : vector<256x8xf32> to vector<16x16x8xf32>
    %c0_5 = arith.constant 0 : index
    %c0_6 = arith.constant 0 : index
    %c0_7 = arith.constant 0 : index
    %c0_8 = arith.constant 0 : index
    %6 = vector.load %arg6[%c0_5, %c0_6, %c0_7, %c0_8] : memref<1x16x16x8xf32, #tpu.memory_space<vmem>>, vector<1x16x16x8xf32>
    %7 = vector.shape_cast %6 : vector<1x16x16x8xf32> to vector<16x16x8xf32>
    %8 = vector.shape_cast %5 : vector<16x16x8xf32> to vector<1x16x16x8xf32>
    tpu.vector_store %arg6[%c0_5, %c0_6, %c0_7, %c0_8], %8 {strides = array<i32>} : memref<1x16x16x8xf32, #tpu.memory_space<vmem>>, vector<1x16x16x8xf32>,
    %cst_9 = arith.constant dense<0.000000e+00> : vector<8xf32>
    %9 = vector.multi_reduction <add>, %4, %cst_9 [0] : vector<256x8xf32> to vector<8xf32>
    %10 = vector.shape_cast %9 : vector<8xf32> to vector<1x8xf32>
    %c0_10 = arith.constant 0 : index
    %c0_11 = arith.constant 0 : index
    %c0_12 = arith.constant 0 : index
    %11 = vector.load %arg7[%c0_10, %c0_11, %c0_12] : memref<1x1x8xf32, #tpu.memory_space<vmem>>, vector<1x1x8xf32>
    %12 = vector.shape_cast %11 : vector<1x1x8xf32> to vector<1x8xf32>
    %13 = vector.shape_cast %10 : vector<1x8xf32> to vector<1x1x8xf32>
    tpu.vector_store %arg7[%c0_10, %c0_11, %c0_12], %13 {strides = array<i32>} : memref<1x1x8xf32, #tpu.memory_space<vmem>>, vector<1x1x8xf32>,
    %14 = arith.mulf %4, %4 : vector<256x8xf32>
    %cst_13 = arith.constant dense<0.000000e+00> : vector<8xf32>
    %15 = vector.multi_reduction <add>, %14, %cst_13 [0] : vector<256x8xf32> to vector<8xf32>
    %16 = vector.shape_cast %15 : vector<8xf32> to vector<1x8xf32>
    %c0_14 = arith.constant 0 : index
    %c0_15 = arith.constant 0 : index
    %c0_16 = arith.constant 0 : index
    %17 = vector.load %arg8[%c0_14, %c0_15, %c0_16] : memref<1x1x8xf32, #tpu.memory_space<vmem>>, vector<1x1x8xf32>
    %18 = vector.shape_cast %17 : vector<1x1x8xf32> to vector<1x8xf32>
    %19 = vector.shape_cast %16 : vector<1x8xf32> to vector<1x1x8xf32>
    tpu.vector_store %arg8[%c0_14, %c0_15, %c0_16], %19 {strides = array<i32>} : memref<1x1x8xf32, #tpu.memory_space<vmem>>, vector<1x1x8xf32>,
    return
  }
  func.func @transform_0(%arg0: i32, %arg1: i32) -> (i32, i32, i32, i32) {
    %c0_i32 = arith.constant 0 : i32
    %c0_i32_0 = arith.constant 0 : i32
    %c0_i32_1 = arith.constant 0 : i32
    return %arg0, %arg1, %c0_i32, %c0_i32_0 : i32, i32, i32, i32
  }
  func.func @transform_1(%arg0: i32, %arg1: i32) -> (i32, i32) {
    %c0_i32 = arith.constant 0 : i32
    %c0_i32_0 = arith.constant 0 : i32
    %c0_i32_1 = arith.constant 0 : i32
    return %c0_i32, %c0_i32_0 : i32, i32
  }
  func.func @transform_2(%arg0: i32, %arg1: i32) -> (i32, i32) {
    %c0_i32 = arith.constant 0 : i32
    %c0_i32_0 = arith.constant 0 : i32
    %c0_i32_1 = arith.constant 0 : i32
    return %c0_i32, %c0_i32_0 : i32, i32
  }
  func.func @transform_3(%arg0: i32, %arg1: i32) -> (i32, i32) {
    %c0_i32 = arith.constant 0 : i32
    %c0_i32_0 = arith.constant 0 : i32
    %c0_i32_1 = arith.constant 0 : i32
    return %c0_i32, %c0_i32_0 : i32, i32
  }
  func.func @transform_4(%arg0: i32, %arg1: i32) -> (i32, i32, i32, i32) {
    %c0_i32 = arith.constant 0 : i32
    %c0_i32_0 = arith.constant 0 : i32
    %c0_i32_1 = arith.constant 0 : i32
    return %arg0, %arg1, %c0_i32, %c0_i32_0 : i32, i32, i32, i32
  }
  func.func @transform_5(%arg0: i32, %arg1: i32) -> (i32, i32, i32) {
    %c1_i32 = arith.constant 1 : i32
    %0 = arith.muli %arg0, %c1_i32 : i32
    %1 = arith.addi %0, %arg1 : i32
    %c0_i32 = arith.constant 0 : i32
    %c0_i32_0 = arith.constant 0 : i32
    %c0_i32_1 = arith.constant 0 : i32
    return %1, %c0_i32, %c0_i32_0 : i32, i32, i32
  }
  func.func @transform_6(%arg0: i32, %arg1: i32) -> (i32, i32, i32) {
    %c1_i32 = arith.constant 1 : i32
    %0 = arith.muli %arg0, %c1_i32 : i32
    %1 = arith.addi %0, %arg1 : i32
    %c0_i32 = arith.constant 0 : i32
    %c0_i32_0 = arith.constant 0 : i32
    %c0_i32_1 = arith.constant 0 : i32
    return %1, %c0_i32, %c0_i32_0 : i32, i32, i32
  }
}

module attributes {stable_mosaic.version = 11 : i64} {
  func.func @_conv3x3_kernel(%arg0: i32, %arg1: i32, %arg2: memref<1x16x16x8xf32, #tpu.memory_space<vmem>>, %arg3: memref<1x16x16x8xf32, #tpu.memory_space<vmem>>, %arg4: memref<1x16x16x8xf32, #tpu.memory_space<vmem>>, %arg5: memref<3x3x8x8xf32, #tpu.memory_space<vmem>>, %arg6: memref<1x8xf32, #tpu.memory_space<vmem>>, %arg7: memref<1x8xf32, #tpu.memory_space<vmem>>, %arg8: memref<1x16x16x8xf32, #tpu.memory_space<vmem>>, %arg9: memref<1x1x8xf32, #tpu.memory_space<vmem>>, %arg10: memref<1x1x8xf32, #tpu.memory_space<vmem>>) attributes {dimension_semantics = [#tpu.dimension_semantics<parallel>, #tpu.dimension_semantics<parallel>], iteration_bounds = array<i64: 2, 1>, scalar_prefetch = 0 : i64, scratch_operands = 0 : i64, tpu.core_type = #tpu.core_type<tc>, window_params = [{transform_indices = @transform_0, window_bounds = array<i64: 1, 16, 16, 8>}, {transform_indices = @transform_1, window_bounds = array<i64: 1, 16, 16, 8>}, {transform_indices = @transform_2, window_bounds = array<i64: 1, 16, 16, 8>}, {pipeline_mode = #tpu.pipeline_mode<synchronous>, transform_indices = @transform_3, window_bounds = array<i64: 3, 3, 8, 8>}, {pipeline_mode = #tpu.pipeline_mode<synchronous>, transform_indices = @transform_4, window_bounds = array<i64: 1, 8>}, {pipeline_mode = #tpu.pipeline_mode<synchronous>, transform_indices = @transform_5, window_bounds = array<i64: 1, 8>}, {transform_indices = @transform_6, window_bounds = array<i64: 1, 16, 16, 8>}, {transform_indices = @transform_7, window_bounds = array<i64: 1, 1, 8>}, {transform_indices = @transform_8, window_bounds = array<i64: 1, 1, 8>}]} {
    %c0 = arith.constant 0 : index
    %c14 = arith.constant 14 : index
    %c0_0 = arith.constant 0 : index
    %c0_1 = arith.constant 0 : index
    %0 = vector.load %arg2[%c0, %c14, %c0_0, %c0_1] : memref<1x16x16x8xf32, #tpu.memory_space<vmem>>, vector<1x2x16x8xf32>
    %1 = vector.shape_cast %0 : vector<1x2x16x8xf32> to vector<2x16x8xf32>
    %c0_2 = arith.constant 0 : index
    %c0_3 = arith.constant 0 : index
    %c0_4 = arith.constant 0 : index
    %c0_5 = arith.constant 0 : index
    %2 = vector.load %arg3[%c0_2, %c0_3, %c0_4, %c0_5] : memref<1x16x16x8xf32, #tpu.memory_space<vmem>>, vector<1x16x16x8xf32>
    %3 = vector.shape_cast %2 : vector<1x16x16x8xf32> to vector<16x16x8xf32>
    %c0_6 = arith.constant 0 : index
    %c0_7 = arith.constant 0 : index
    %c0_8 = arith.constant 0 : index
    %c0_9 = arith.constant 0 : index
    %4 = vector.load %arg4[%c0_6, %c0_7, %c0_8, %c0_9] : memref<1x16x16x8xf32, #tpu.memory_space<vmem>>, vector<1x2x16x8xf32>
    %5 = vector.shape_cast %4 : vector<1x2x16x8xf32> to vector<2x16x8xf32>
    %6 = tpu.concatenate %1, %3, %5 in 0 : vector<2x16x8xf32>, vector<16x16x8xf32>, vector<2x16x8xf32> -> vector<20x16x8xf32>
    %c0_10 = arith.constant 0 : index
    %c0_11 = arith.constant 0 : index
    %7 = vector.load %arg6[%c0_10, %c0_11] : memref<1x8xf32, #tpu.memory_space<vmem>>, vector<1x8xf32>
    %8 = vector.shape_cast %7 : vector<1x8xf32> to vector<1x1x8xf32>
    %9 = vector.broadcast %8 : vector<1x1x8xf32> to vector<20x16x8xf32>
    %10 = arith.mulf %6, %9 : vector<20x16x8xf32>
    %c0_12 = arith.constant 0 : index
    %c0_13 = arith.constant 0 : index
    %11 = vector.load %arg7[%c0_12, %c0_13] : memref<1x8xf32, #tpu.memory_space<vmem>>, vector<1x8xf32>
    %12 = vector.shape_cast %11 : vector<1x8xf32> to vector<1x1x8xf32>
    %13 = vector.broadcast %12 : vector<1x1x8xf32> to vector<20x16x8xf32>
    %14 = arith.addf %10, %13 : vector<20x16x8xf32>
    %cst = arith.constant 0.000000e+00 : f32
    %15 = vector.broadcast %cst : f32 to vector<20x16x8xf32>
    %16 = arith.maximumf %14, %15 : vector<20x16x8xf32>
    %17 = tpu.iota {dimensions = array<i32: 0>} : vector<20x16x8xi32>
    %c16_i32 = arith.constant 16 : i32
    %18 = arith.muli %arg1, %c16_i32 : i32
    %c2_i32 = arith.constant 2 : i32
    %19 = arith.subi %18, %c2_i32 : i32
    %20 = vector.broadcast %19 : i32 to vector<20x16x8xi32>
    %21 = arith.addi %17, %20 : vector<20x16x8xi32>
    %c0_i32 = arith.constant 0 : i32
    %22 = vector.broadcast %c0_i32 : i32 to vector<20x16x8xi32>
    %23 = arith.cmpi sge, %21, %22 : vector<20x16x8xi32>
    %c16_i32_14 = arith.constant 16 : i32
    %24 = vector.broadcast %c16_i32_14 : i32 to vector<20x16x8xi32>
    %25 = arith.cmpi slt, %21, %24 : vector<20x16x8xi32>
    %26 = arith.andi %23, %25 : vector<20x16x8xi1>
    %cst_15 = arith.constant 0.000000e+00 : f32
    %27 = vector.broadcast %cst_15 : f32 to vector<20x16x8xf32>
    %28 = arith.select %26, %16, %27 : vector<20x16x8xi1>, vector<20x16x8xf32>
    %cst_16 = arith.constant 0.000000e+00 : f32
    %29 = vector.broadcast %cst_16 : f32 to vector<20x2x8xf32>
    %30 = vector.extract_strided_slice %28 {offsets = [0, 0, 0], sizes = [20, 14, 8], strides = [1, 1, 1]} : vector<20x16x8xf32> to vector<20x14x8xf32>
    %31 = tpu.concatenate %29, %30 in 1 : vector<20x2x8xf32>, vector<20x14x8xf32> -> vector<20x16x8xf32>
    %32 = vector.extract_strided_slice %28 {offsets = [0, 2, 0], sizes = [20, 14, 8], strides = [1, 1, 1]} : vector<20x16x8xf32> to vector<20x14x8xf32>
    %33 = tpu.concatenate %32, %29 in 1 : vector<20x14x8xf32>, vector<20x2x8xf32> -> vector<20x16x8xf32>
    %cst_17 = arith.constant 0.000000e+00 : f32
    %34 = vector.broadcast %cst_17 : f32 to vector<256x8xf32>
    %35 = vector.extract_strided_slice %31 {offsets = [0, 0, 0], sizes = [16, 16, 8], strides = [1, 1, 1]} : vector<20x16x8xf32> to vector<16x16x8xf32>
    %36 = vector.shape_cast %35 : vector<16x16x8xf32> to vector<256x8xf32>
    %c0_18 = arith.constant 0 : index
    %c0_19 = arith.constant 0 : index
    %c0_20 = arith.constant 0 : index
    %c0_21 = arith.constant 0 : index
    %37 = vector.load %arg5[%c0_18, %c0_19, %c0_20, %c0_21] : memref<3x3x8x8xf32, #tpu.memory_space<vmem>>, vector<1x1x8x8xf32>
    %38 = vector.shape_cast %37 : vector<1x1x8x8xf32> to vector<8x8xf32>
    %cst_22 = arith.constant dense<0.000000e+00> : vector<256x8xf32>
    %39 = tpu.matmul %36, %38, %cst_22 {dimension_numbers = #tpu.dot_dimension_numbers<[1], [0], [0], [1], [0, 0, 1, 1], [], []>} : vector<256x8xf32>, vector<8x8xf32>, vector<256x8xf32> -> vector<256x8xf32>
    %40 = arith.addf %34, %39 : vector<256x8xf32>
    %41 = vector.extract_strided_slice %28 {offsets = [0, 0, 0], sizes = [16, 16, 8], strides = [1, 1, 1]} : vector<20x16x8xf32> to vector<16x16x8xf32>
    %42 = vector.shape_cast %41 : vector<16x16x8xf32> to vector<256x8xf32>
    %c0_23 = arith.constant 0 : index
    %c1 = arith.constant 1 : index
    %c0_24 = arith.constant 0 : index
    %c0_25 = arith.constant 0 : index
    %43 = vector.load %arg5[%c0_23, %c1, %c0_24, %c0_25] : memref<3x3x8x8xf32, #tpu.memory_space<vmem>>, vector<1x1x8x8xf32>
    %44 = vector.shape_cast %43 : vector<1x1x8x8xf32> to vector<8x8xf32>
    %cst_26 = arith.constant dense<0.000000e+00> : vector<256x8xf32>
    %45 = tpu.matmul %42, %44, %cst_26 {dimension_numbers = #tpu.dot_dimension_numbers<[1], [0], [0], [1], [0, 0, 1, 1], [], []>} : vector<256x8xf32>, vector<8x8xf32>, vector<256x8xf32> -> vector<256x8xf32>
    %46 = arith.addf %40, %45 : vector<256x8xf32>
    %47 = vector.extract_strided_slice %33 {offsets = [0, 0, 0], sizes = [16, 16, 8], strides = [1, 1, 1]} : vector<20x16x8xf32> to vector<16x16x8xf32>
    %48 = vector.shape_cast %47 : vector<16x16x8xf32> to vector<256x8xf32>
    %c0_27 = arith.constant 0 : index
    %c2 = arith.constant 2 : index
    %c0_28 = arith.constant 0 : index
    %c0_29 = arith.constant 0 : index
    %49 = vector.load %arg5[%c0_27, %c2, %c0_28, %c0_29] : memref<3x3x8x8xf32, #tpu.memory_space<vmem>>, vector<1x1x8x8xf32>
    %50 = vector.shape_cast %49 : vector<1x1x8x8xf32> to vector<8x8xf32>
    %cst_30 = arith.constant dense<0.000000e+00> : vector<256x8xf32>
    %51 = tpu.matmul %48, %50, %cst_30 {dimension_numbers = #tpu.dot_dimension_numbers<[1], [0], [0], [1], [0, 0, 1, 1], [], []>} : vector<256x8xf32>, vector<8x8xf32>, vector<256x8xf32> -> vector<256x8xf32>
    %52 = arith.addf %46, %51 : vector<256x8xf32>
    %53 = vector.extract_strided_slice %31 {offsets = [2, 0, 0], sizes = [16, 16, 8], strides = [1, 1, 1]} : vector<20x16x8xf32> to vector<16x16x8xf32>
    %54 = vector.shape_cast %53 : vector<16x16x8xf32> to vector<256x8xf32>
    %c1_31 = arith.constant 1 : index
    %c0_32 = arith.constant 0 : index
    %c0_33 = arith.constant 0 : index
    %c0_34 = arith.constant 0 : index
    %55 = vector.load %arg5[%c1_31, %c0_32, %c0_33, %c0_34] : memref<3x3x8x8xf32, #tpu.memory_space<vmem>>, vector<1x1x8x8xf32>
    %56 = vector.shape_cast %55 : vector<1x1x8x8xf32> to vector<8x8xf32>
    %cst_35 = arith.constant dense<0.000000e+00> : vector<256x8xf32>
    %57 = tpu.matmul %54, %56, %cst_35 {dimension_numbers = #tpu.dot_dimension_numbers<[1], [0], [0], [1], [0, 0, 1, 1], [], []>} : vector<256x8xf32>, vector<8x8xf32>, vector<256x8xf32> -> vector<256x8xf32>
    %58 = arith.addf %52, %57 : vector<256x8xf32>
    %59 = vector.extract_strided_slice %28 {offsets = [2, 0, 0], sizes = [16, 16, 8], strides = [1, 1, 1]} : vector<20x16x8xf32> to vector<16x16x8xf32>
    %60 = vector.shape_cast %59 : vector<16x16x8xf32> to vector<256x8xf32>
    %c1_36 = arith.constant 1 : index
    %c1_37 = arith.constant 1 : index
    %c0_38 = arith.constant 0 : index
    %c0_39 = arith.constant 0 : index
    %61 = vector.load %arg5[%c1_36, %c1_37, %c0_38, %c0_39] : memref<3x3x8x8xf32, #tpu.memory_space<vmem>>, vector<1x1x8x8xf32>
    %62 = vector.shape_cast %61 : vector<1x1x8x8xf32> to vector<8x8xf32>
    %cst_40 = arith.constant dense<0.000000e+00> : vector<256x8xf32>
    %63 = tpu.matmul %60, %62, %cst_40 {dimension_numbers = #tpu.dot_dimension_numbers<[1], [0], [0], [1], [0, 0, 1, 1], [], []>} : vector<256x8xf32>, vector<8x8xf32>, vector<256x8xf32> -> vector<256x8xf32>
    %64 = arith.addf %58, %63 : vector<256x8xf32>
    %65 = vector.extract_strided_slice %33 {offsets = [2, 0, 0], sizes = [16, 16, 8], strides = [1, 1, 1]} : vector<20x16x8xf32> to vector<16x16x8xf32>
    %66 = vector.shape_cast %65 : vector<16x16x8xf32> to vector<256x8xf32>
    %c1_41 = arith.constant 1 : index
    %c2_42 = arith.constant 2 : index
    %c0_43 = arith.constant 0 : index
    %c0_44 = arith.constant 0 : index
    %67 = vector.load %arg5[%c1_41, %c2_42, %c0_43, %c0_44] : memref<3x3x8x8xf32, #tpu.memory_space<vmem>>, vector<1x1x8x8xf32>
    %68 = vector.shape_cast %67 : vector<1x1x8x8xf32> to vector<8x8xf32>
    %cst_45 = arith.constant dense<0.000000e+00> : vector<256x8xf32>
    %69 = tpu.matmul %66, %68, %cst_45 {dimension_numbers = #tpu.dot_dimension_numbers<[1], [0], [0], [1], [0, 0, 1, 1], [], []>} : vector<256x8xf32>, vector<8x8xf32>, vector<256x8xf32> -> vector<256x8xf32>
    %70 = arith.addf %64, %69 : vector<256x8xf32>
    %71 = vector.extract_strided_slice %31 {offsets = [4, 0, 0], sizes = [16, 16, 8], strides = [1, 1, 1]} : vector<20x16x8xf32> to vector<16x16x8xf32>
    %72 = vector.shape_cast %71 : vector<16x16x8xf32> to vector<256x8xf32>
    %c2_46 = arith.constant 2 : index
    %c0_47 = arith.constant 0 : index
    %c0_48 = arith.constant 0 : index
    %c0_49 = arith.constant 0 : index
    %73 = vector.load %arg5[%c2_46, %c0_47, %c0_48, %c0_49] : memref<3x3x8x8xf32, #tpu.memory_space<vmem>>, vector<1x1x8x8xf32>
    %74 = vector.shape_cast %73 : vector<1x1x8x8xf32> to vector<8x8xf32>
    %cst_50 = arith.constant dense<0.000000e+00> : vector<256x8xf32>
    %75 = tpu.matmul %72, %74, %cst_50 {dimension_numbers = #tpu.dot_dimension_numbers<[1], [0], [0], [1], [0, 0, 1, 1], [], []>} : vector<256x8xf32>, vector<8x8xf32>, vector<256x8xf32> -> vector<256x8xf32>
    %76 = arith.addf %70, %75 : vector<256x8xf32>
    %77 = vector.extract_strided_slice %28 {offsets = [4, 0, 0], sizes = [16, 16, 8], strides = [1, 1, 1]} : vector<20x16x8xf32> to vector<16x16x8xf32>
    %78 = vector.shape_cast %77 : vector<16x16x8xf32> to vector<256x8xf32>
    %c2_51 = arith.constant 2 : index
    %c1_52 = arith.constant 1 : index
    %c0_53 = arith.constant 0 : index
    %c0_54 = arith.constant 0 : index
    %79 = vector.load %arg5[%c2_51, %c1_52, %c0_53, %c0_54] : memref<3x3x8x8xf32, #tpu.memory_space<vmem>>, vector<1x1x8x8xf32>
    %80 = vector.shape_cast %79 : vector<1x1x8x8xf32> to vector<8x8xf32>
    %cst_55 = arith.constant dense<0.000000e+00> : vector<256x8xf32>
    %81 = tpu.matmul %78, %80, %cst_55 {dimension_numbers = #tpu.dot_dimension_numbers<[1], [0], [0], [1], [0, 0, 1, 1], [], []>} : vector<256x8xf32>, vector<8x8xf32>, vector<256x8xf32> -> vector<256x8xf32>
    %82 = arith.addf %76, %81 : vector<256x8xf32>
    %83 = vector.extract_strided_slice %33 {offsets = [4, 0, 0], sizes = [16, 16, 8], strides = [1, 1, 1]} : vector<20x16x8xf32> to vector<16x16x8xf32>
    %84 = vector.shape_cast %83 : vector<16x16x8xf32> to vector<256x8xf32>
    %c2_56 = arith.constant 2 : index
    %c2_57 = arith.constant 2 : index
    %c0_58 = arith.constant 0 : index
    %c0_59 = arith.constant 0 : index
    %85 = vector.load %arg5[%c2_56, %c2_57, %c0_58, %c0_59] : memref<3x3x8x8xf32, #tpu.memory_space<vmem>>, vector<1x1x8x8xf32>
    %86 = vector.shape_cast %85 : vector<1x1x8x8xf32> to vector<8x8xf32>
    %cst_60 = arith.constant dense<0.000000e+00> : vector<256x8xf32>
    %87 = tpu.matmul %84, %86, %cst_60 {dimension_numbers = #tpu.dot_dimension_numbers<[1], [0], [0], [1], [0, 0, 1, 1], [], []>} : vector<256x8xf32>, vector<8x8xf32>, vector<256x8xf32> -> vector<256x8xf32>
    %88 = arith.addf %82, %87 : vector<256x8xf32>
    %89 = vector.shape_cast %88 : vector<256x8xf32> to vector<16x16x8xf32>
    %c0_61 = arith.constant 0 : index
    %c0_62 = arith.constant 0 : index
    %c0_63 = arith.constant 0 : index
    %c0_64 = arith.constant 0 : index
    %90 = vector.load %arg8[%c0_61, %c0_62, %c0_63, %c0_64] : memref<1x16x16x8xf32, #tpu.memory_space<vmem>>, vector<1x16x16x8xf32>
    %91 = vector.shape_cast %90 : vector<1x16x16x8xf32> to vector<16x16x8xf32>
    %92 = vector.shape_cast %89 : vector<16x16x8xf32> to vector<1x16x16x8xf32>
    tpu.vector_store %arg8[%c0_61, %c0_62, %c0_63, %c0_64], %92 {strides = array<i32>} : memref<1x16x16x8xf32, #tpu.memory_space<vmem>>, vector<1x16x16x8xf32>,
    %93 = vector.shape_cast %89 : vector<16x16x8xf32> to vector<256x8xf32>
    %cst_65 = arith.constant dense<0.000000e+00> : vector<8xf32>
    %94 = vector.multi_reduction <add>, %93, %cst_65 [0] : vector<256x8xf32> to vector<8xf32>
    %95 = vector.shape_cast %94 : vector<8xf32> to vector<1x8xf32>
    %c0_66 = arith.constant 0 : index
    %c0_67 = arith.constant 0 : index
    %c0_68 = arith.constant 0 : index
    %96 = vector.load %arg9[%c0_66, %c0_67, %c0_68] : memref<1x1x8xf32, #tpu.memory_space<vmem>>, vector<1x1x8xf32>
    %97 = vector.shape_cast %96 : vector<1x1x8xf32> to vector<1x8xf32>
    %98 = vector.shape_cast %95 : vector<1x8xf32> to vector<1x1x8xf32>
    tpu.vector_store %arg9[%c0_66, %c0_67, %c0_68], %98 {strides = array<i32>} : memref<1x1x8xf32, #tpu.memory_space<vmem>>, vector<1x1x8xf32>,
    %99 = arith.mulf %93, %93 : vector<256x8xf32>
    %cst_69 = arith.constant dense<0.000000e+00> : vector<8xf32>
    %100 = vector.multi_reduction <add>, %99, %cst_69 [0] : vector<256x8xf32> to vector<8xf32>
    %101 = vector.shape_cast %100 : vector<8xf32> to vector<1x8xf32>
    %c0_70 = arith.constant 0 : index
    %c0_71 = arith.constant 0 : index
    %c0_72 = arith.constant 0 : index
    %102 = vector.load %arg10[%c0_70, %c0_71, %c0_72] : memref<1x1x8xf32, #tpu.memory_space<vmem>>, vector<1x1x8xf32>
    %103 = vector.shape_cast %102 : vector<1x1x8xf32> to vector<1x8xf32>
    %104 = vector.shape_cast %101 : vector<1x8xf32> to vector<1x1x8xf32>
    tpu.vector_store %arg10[%c0_70, %c0_71, %c0_72], %104 {strides = array<i32>} : memref<1x1x8xf32, #tpu.memory_space<vmem>>, vector<1x1x8xf32>,
    return
  }
  func.func @transform_0(%arg0: i32, %arg1: i32) -> (i32, i32, i32, i32) {
    %c1_i32 = arith.constant 1 : i32
    %0 = arith.subi %arg1, %c1_i32 : i32
    %c0_i32 = arith.constant 0 : i32
    %1 = arith.maxsi %0, %c0_i32 : i32
    %c0_i32_0 = arith.constant 0 : i32
    %c0_i32_1 = arith.constant 0 : i32
    %c0_i32_2 = arith.constant 0 : i32
    return %arg0, %1, %c0_i32_0, %c0_i32_1 : i32, i32, i32, i32
  }
  func.func @transform_1(%arg0: i32, %arg1: i32) -> (i32, i32, i32, i32) {
    %c0_i32 = arith.constant 0 : i32
    %c0_i32_0 = arith.constant 0 : i32
    %c0_i32_1 = arith.constant 0 : i32
    return %arg0, %arg1, %c0_i32, %c0_i32_0 : i32, i32, i32, i32
  }
  func.func @transform_2(%arg0: i32, %arg1: i32) -> (i32, i32, i32, i32) {
    %c1_i32 = arith.constant 1 : i32
    %0 = arith.addi %arg1, %c1_i32 : i32
    %c0_i32 = arith.constant 0 : i32
    %1 = arith.minsi %0, %c0_i32 : i32
    %c0_i32_0 = arith.constant 0 : i32
    %c0_i32_1 = arith.constant 0 : i32
    %c0_i32_2 = arith.constant 0 : i32
    return %arg0, %1, %c0_i32_0, %c0_i32_1 : i32, i32, i32, i32
  }
  func.func @transform_3(%arg0: i32, %arg1: i32) -> (i32, i32, i32, i32) {
    %c0_i32 = arith.constant 0 : i32
    %c0_i32_0 = arith.constant 0 : i32
    %c0_i32_1 = arith.constant 0 : i32
    %c0_i32_2 = arith.constant 0 : i32
    %c0_i32_3 = arith.constant 0 : i32
    return %c0_i32, %c0_i32_0, %c0_i32_1, %c0_i32_2 : i32, i32, i32, i32
  }
  func.func @transform_4(%arg0: i32, %arg1: i32) -> (i32, i32) {
    %c0_i32 = arith.constant 0 : i32
    %c0_i32_0 = arith.constant 0 : i32
    %c0_i32_1 = arith.constant 0 : i32
    return %c0_i32, %c0_i32_0 : i32, i32
  }
  func.func @transform_5(%arg0: i32, %arg1: i32) -> (i32, i32) {
    %c0_i32 = arith.constant 0 : i32
    %c0_i32_0 = arith.constant 0 : i32
    %c0_i32_1 = arith.constant 0 : i32
    return %c0_i32, %c0_i32_0 : i32, i32
  }
  func.func @transform_6(%arg0: i32, %arg1: i32) -> (i32, i32, i32, i32) {
    %c0_i32 = arith.constant 0 : i32
    %c0_i32_0 = arith.constant 0 : i32
    %c0_i32_1 = arith.constant 0 : i32
    return %arg0, %arg1, %c0_i32, %c0_i32_0 : i32, i32, i32, i32
  }
  func.func @transform_7(%arg0: i32, %arg1: i32) -> (i32, i32, i32) {
    %c1_i32 = arith.constant 1 : i32
    %0 = arith.muli %arg0, %c1_i32 : i32
    %1 = arith.addi %0, %arg1 : i32
    %c0_i32 = arith.constant 0 : i32
    %c0_i32_0 = arith.constant 0 : i32
    %c0_i32_1 = arith.constant 0 : i32
    return %1, %c0_i32, %c0_i32_0 : i32, i32, i32
  }
  func.func @transform_8(%arg0: i32, %arg1: i32) -> (i32, i32, i32) {
    %c1_i32 = arith.constant 1 : i32
    %0 = arith.muli %arg0, %c1_i32 : i32
    %1 = arith.addi %0, %arg1 : i32
    %c0_i32 = arith.constant 0 : i32
    %c0_i32_0 = arith.constant 0 : i32
    %c0_i32_1 = arith.constant 0 : i32
    return %1, %c0_i32, %c0_i32_0 : i32, i32, i32
  }
}

module attributes {stable_mosaic.version = 11 : i64} {
  func.func @_conv1x1_kernel(%arg0: i32, %arg1: i32, %arg2: memref<1x16x16x8xf32, #tpu.memory_space<vmem>>, %arg3: memref<8x32xf32, #tpu.memory_space<vmem>>, %arg4: memref<1x8xf32, #tpu.memory_space<vmem>>, %arg5: memref<1x8xf32, #tpu.memory_space<vmem>>, %arg6: memref<1x16x16x32xf32, #tpu.memory_space<vmem>>, %arg7: memref<1x1x32xf32, #tpu.memory_space<vmem>>, %arg8: memref<1x1x32xf32, #tpu.memory_space<vmem>>) attributes {dimension_semantics = [#tpu.dimension_semantics<parallel>, #tpu.dimension_semantics<parallel>], iteration_bounds = array<i64: 2, 1>, scalar_prefetch = 0 : i64, scratch_operands = 0 : i64, tpu.core_type = #tpu.core_type<tc>, window_params = [{transform_indices = @transform_0, window_bounds = array<i64: 1, 16, 16, 8>}, {pipeline_mode = #tpu.pipeline_mode<synchronous>, transform_indices = @transform_1, window_bounds = array<i64: 8, 32>}, {pipeline_mode = #tpu.pipeline_mode<synchronous>, transform_indices = @transform_2, window_bounds = array<i64: 1, 8>}, {pipeline_mode = #tpu.pipeline_mode<synchronous>, transform_indices = @transform_3, window_bounds = array<i64: 1, 8>}, {transform_indices = @transform_4, window_bounds = array<i64: 1, 16, 16, 32>}, {transform_indices = @transform_5, window_bounds = array<i64: 1, 1, 32>}, {transform_indices = @transform_6, window_bounds = array<i64: 1, 1, 32>}]} {
    %c0 = arith.constant 0 : index
    %c0_0 = arith.constant 0 : index
    %c0_1 = arith.constant 0 : index
    %c0_2 = arith.constant 0 : index
    %0 = vector.load %arg2[%c0, %c0_0, %c0_1, %c0_2] : memref<1x16x16x8xf32, #tpu.memory_space<vmem>>, vector<1x16x16x8xf32>
    %1 = vector.shape_cast %0 : vector<1x16x16x8xf32> to vector<16x16x8xf32>
    %c0_3 = arith.constant 0 : index
    %c0_4 = arith.constant 0 : index
    %2 = vector.load %arg4[%c0_3, %c0_4] : memref<1x8xf32, #tpu.memory_space<vmem>>, vector<1x8xf32>
    %3 = vector.shape_cast %2 : vector<1x8xf32> to vector<1x1x8xf32>
    %4 = vector.broadcast %3 : vector<1x1x8xf32> to vector<16x16x8xf32>
    %5 = arith.mulf %1, %4 : vector<16x16x8xf32>
    %c0_5 = arith.constant 0 : index
    %c0_6 = arith.constant 0 : index
    %6 = vector.load %arg5[%c0_5, %c0_6] : memref<1x8xf32, #tpu.memory_space<vmem>>, vector<1x8xf32>
    %7 = vector.shape_cast %6 : vector<1x8xf32> to vector<1x1x8xf32>
    %8 = vector.broadcast %7 : vector<1x1x8xf32> to vector<16x16x8xf32>
    %9 = arith.addf %5, %8 : vector<16x16x8xf32>
    %cst = arith.constant 0.000000e+00 : f32
    %10 = vector.broadcast %cst : f32 to vector<16x16x8xf32>
    %11 = arith.maximumf %9, %10 : vector<16x16x8xf32>
    %12 = vector.shape_cast %11 : vector<16x16x8xf32> to vector<256x8xf32>
    %c0_7 = arith.constant 0 : index
    %c0_8 = arith.constant 0 : index
    %13 = vector.load %arg3[%c0_7, %c0_8] : memref<8x32xf32, #tpu.memory_space<vmem>>, vector<8x32xf32>
    %cst_9 = arith.constant dense<0.000000e+00> : vector<256x32xf32>
    %14 = tpu.matmul %12, %13, %cst_9 {dimension_numbers = #tpu.dot_dimension_numbers<[1], [0], [0], [1], [0, 0, 1, 1], [], []>} : vector<256x8xf32>, vector<8x32xf32>, vector<256x32xf32> -> vector<256x32xf32>
    %15 = vector.shape_cast %14 : vector<256x32xf32> to vector<16x16x32xf32>
    %c0_10 = arith.constant 0 : index
    %c0_11 = arith.constant 0 : index
    %c0_12 = arith.constant 0 : index
    %c0_13 = arith.constant 0 : index
    %16 = vector.load %arg6[%c0_10, %c0_11, %c0_12, %c0_13] : memref<1x16x16x32xf32, #tpu.memory_space<vmem>>, vector<1x16x16x32xf32>
    %17 = vector.shape_cast %16 : vector<1x16x16x32xf32> to vector<16x16x32xf32>
    %18 = vector.shape_cast %15 : vector<16x16x32xf32> to vector<1x16x16x32xf32>
    tpu.vector_store %arg6[%c0_10, %c0_11, %c0_12, %c0_13], %18 {strides = array<i32>} : memref<1x16x16x32xf32, #tpu.memory_space<vmem>>, vector<1x16x16x32xf32>,
    %cst_14 = arith.constant dense<0.000000e+00> : vector<32xf32>
    %19 = vector.multi_reduction <add>, %14, %cst_14 [0] : vector<256x32xf32> to vector<32xf32>
    %20 = vector.shape_cast %19 : vector<32xf32> to vector<1x32xf32>
    %c0_15 = arith.constant 0 : index
    %c0_16 = arith.constant 0 : index
    %c0_17 = arith.constant 0 : index
    %21 = vector.load %arg7[%c0_15, %c0_16, %c0_17] : memref<1x1x32xf32, #tpu.memory_space<vmem>>, vector<1x1x32xf32>
    %22 = vector.shape_cast %21 : vector<1x1x32xf32> to vector<1x32xf32>
    %23 = vector.shape_cast %20 : vector<1x32xf32> to vector<1x1x32xf32>
    tpu.vector_store %arg7[%c0_15, %c0_16, %c0_17], %23 {strides = array<i32>} : memref<1x1x32xf32, #tpu.memory_space<vmem>>, vector<1x1x32xf32>,
    %24 = arith.mulf %14, %14 : vector<256x32xf32>
    %cst_18 = arith.constant dense<0.000000e+00> : vector<32xf32>
    %25 = vector.multi_reduction <add>, %24, %cst_18 [0] : vector<256x32xf32> to vector<32xf32>
    %26 = vector.shape_cast %25 : vector<32xf32> to vector<1x32xf32>
    %c0_19 = arith.constant 0 : index
    %c0_20 = arith.constant 0 : index
    %c0_21 = arith.constant 0 : index
    %27 = vector.load %arg8[%c0_19, %c0_20, %c0_21] : memref<1x1x32xf32, #tpu.memory_space<vmem>>, vector<1x1x32xf32>
    %28 = vector.shape_cast %27 : vector<1x1x32xf32> to vector<1x32xf32>
    %29 = vector.shape_cast %26 : vector<1x32xf32> to vector<1x1x32xf32>
    tpu.vector_store %arg8[%c0_19, %c0_20, %c0_21], %29 {strides = array<i32>} : memref<1x1x32xf32, #tpu.memory_space<vmem>>, vector<1x1x32xf32>,
    return
  }
  func.func @transform_0(%arg0: i32, %arg1: i32) -> (i32, i32, i32, i32) {
    %c0_i32 = arith.constant 0 : i32
    %c0_i32_0 = arith.constant 0 : i32
    %c0_i32_1 = arith.constant 0 : i32
    return %arg0, %arg1, %c0_i32, %c0_i32_0 : i32, i32, i32, i32
  }
  func.func @transform_1(%arg0: i32, %arg1: i32) -> (i32, i32) {
    %c0_i32 = arith.constant 0 : i32
    %c0_i32_0 = arith.constant 0 : i32
    %c0_i32_1 = arith.constant 0 : i32
    return %c0_i32, %c0_i32_0 : i32, i32
  }
  func.func @transform_2(%arg0: i32, %arg1: i32) -> (i32, i32) {
    %c0_i32 = arith.constant 0 : i32
    %c0_i32_0 = arith.constant 0 : i32
    %c0_i32_1 = arith.constant 0 : i32
    return %c0_i32, %c0_i32_0 : i32, i32
  }
  func.func @transform_3(%arg0: i32, %arg1: i32) -> (i32, i32) {
    %c0_i32 = arith.constant 0 : i32
    %c0_i32_0 = arith.constant 0 : i32
    %c0_i32_1 = arith.constant 0 : i32
    return %c0_i32, %c0_i32_0 : i32, i32
  }
  func.func @transform_4(%arg0: i32, %arg1: i32) -> (i32, i32, i32, i32) {
    %c0_i32 = arith.constant 0 : i32
    %c0_i32_0 = arith.constant 0 : i32
    %c0_i32_1 = arith.constant 0 : i32
    return %arg0, %arg1, %c0_i32, %c0_i32_0 : i32, i32, i32, i32
  }
  func.func @transform_5(%arg0: i32, %arg1: i32) -> (i32, i32, i32) {
    %c1_i32 = arith.constant 1 : i32
    %0 = arith.muli %arg0, %c1_i32 : i32
    %1 = arith.addi %0, %arg1 : i32
    %c0_i32 = arith.constant 0 : i32
    %c0_i32_0 = arith.constant 0 : i32
    %c0_i32_1 = arith.constant 0 : i32
    return %1, %c0_i32, %c0_i32_0 : i32, i32, i32
  }
  func.func @transform_6(%arg0: i32, %arg1: i32) -> (i32, i32, i32) {
    %c1_i32 = arith.constant 1 : i32
    %0 = arith.muli %arg0, %c1_i32 : i32
    %1 = arith.addi %0, %arg1 : i32
    %c0_i32 = arith.constant 0 : i32
    %c0_i32_0 = arith.constant 0 : i32
    %c0_i32_1 = arith.constant 0 : i32
    return %1, %c0_i32, %c0_i32_0 : i32, i32, i32
  }
}

module attributes {stable_mosaic.version = 11 : i64} {
  func.func @_bn_add_relu_kernel(%arg0: i32, %arg1: i32, %arg2: memref<1x16x16x32xf32, #tpu.memory_space<vmem>>, %arg3: memref<1x16x16x32xf32, #tpu.memory_space<vmem>>, %arg4: memref<1x32xf32, #tpu.memory_space<vmem>>, %arg5: memref<1x32xf32, #tpu.memory_space<vmem>>, %arg6: memref<1x16x16x32xf32, #tpu.memory_space<vmem>>) attributes {dimension_semantics = [#tpu.dimension_semantics<parallel>, #tpu.dimension_semantics<parallel>], iteration_bounds = array<i64: 2, 1>, scalar_prefetch = 0 : i64, scratch_operands = 0 : i64, tpu.core_type = #tpu.core_type<tc>, window_params = [{transform_indices = @transform_0, window_bounds = array<i64: 1, 16, 16, 32>}, {transform_indices = @transform_1, window_bounds = array<i64: 1, 16, 16, 32>}, {pipeline_mode = #tpu.pipeline_mode<synchronous>, transform_indices = @transform_2, window_bounds = array<i64: 1, 32>}, {pipeline_mode = #tpu.pipeline_mode<synchronous>, transform_indices = @transform_3, window_bounds = array<i64: 1, 32>}, {transform_indices = @transform_4, window_bounds = array<i64: 1, 16, 16, 32>}]} {
    %c0 = arith.constant 0 : index
    %c0_0 = arith.constant 0 : index
    %c0_1 = arith.constant 0 : index
    %c0_2 = arith.constant 0 : index
    %0 = vector.load %arg2[%c0, %c0_0, %c0_1, %c0_2] : memref<1x16x16x32xf32, #tpu.memory_space<vmem>>, vector<1x16x16x32xf32>
    %1 = vector.shape_cast %0 : vector<1x16x16x32xf32> to vector<16x16x32xf32>
    %c0_3 = arith.constant 0 : index
    %c0_4 = arith.constant 0 : index
    %c0_5 = arith.constant 0 : index
    %c0_6 = arith.constant 0 : index
    %2 = vector.load %arg3[%c0_3, %c0_4, %c0_5, %c0_6] : memref<1x16x16x32xf32, #tpu.memory_space<vmem>>, vector<1x16x16x32xf32>
    %3 = vector.shape_cast %2 : vector<1x16x16x32xf32> to vector<16x16x32xf32>
    %c0_7 = arith.constant 0 : index
    %c0_8 = arith.constant 0 : index
    %4 = vector.load %arg4[%c0_7, %c0_8] : memref<1x32xf32, #tpu.memory_space<vmem>>, vector<1x32xf32>
    %5 = vector.shape_cast %4 : vector<1x32xf32> to vector<1x1x32xf32>
    %6 = vector.broadcast %5 : vector<1x1x32xf32> to vector<16x16x32xf32>
    %7 = arith.mulf %1, %6 : vector<16x16x32xf32>
    %c0_9 = arith.constant 0 : index
    %c0_10 = arith.constant 0 : index
    %8 = vector.load %arg5[%c0_9, %c0_10] : memref<1x32xf32, #tpu.memory_space<vmem>>, vector<1x32xf32>
    %9 = vector.shape_cast %8 : vector<1x32xf32> to vector<1x1x32xf32>
    %10 = vector.broadcast %9 : vector<1x1x32xf32> to vector<16x16x32xf32>
    %11 = arith.addf %7, %10 : vector<16x16x32xf32>
    %12 = arith.addf %11, %3 : vector<16x16x32xf32>
    %cst = arith.constant 0.000000e+00 : f32
    %13 = vector.broadcast %cst : f32 to vector<16x16x32xf32>
    %14 = arith.maximumf %12, %13 : vector<16x16x32xf32>
    %c0_11 = arith.constant 0 : index
    %c0_12 = arith.constant 0 : index
    %c0_13 = arith.constant 0 : index
    %c0_14 = arith.constant 0 : index
    %15 = vector.load %arg6[%c0_11, %c0_12, %c0_13, %c0_14] : memref<1x16x16x32xf32, #tpu.memory_space<vmem>>, vector<1x16x16x32xf32>
    %16 = vector.shape_cast %15 : vector<1x16x16x32xf32> to vector<16x16x32xf32>
    %17 = vector.shape_cast %14 : vector<16x16x32xf32> to vector<1x16x16x32xf32>
    tpu.vector_store %arg6[%c0_11, %c0_12, %c0_13, %c0_14], %17 {strides = array<i32>} : memref<1x16x16x32xf32, #tpu.memory_space<vmem>>, vector<1x16x16x32xf32>,
    return
  }
  func.func @transform_0(%arg0: i32, %arg1: i32) -> (i32, i32, i32, i32) {
    %c0_i32 = arith.constant 0 : i32
    %c0_i32_0 = arith.constant 0 : i32
    %c0_i32_1 = arith.constant 0 : i32
    return %arg0, %arg1, %c0_i32, %c0_i32_0 : i32, i32, i32, i32
  }
  func.func @transform_1(%arg0: i32, %arg1: i32) -> (i32, i32, i32, i32) {
    %c0_i32 = arith.constant 0 : i32
    %c0_i32_0 = arith.constant 0 : i32
    %c0_i32_1 = arith.constant 0 : i32
    return %arg0, %arg1, %c0_i32, %c0_i32_0 : i32, i32, i32, i32
  }
  func.func @transform_2(%arg0: i32, %arg1: i32) -> (i32, i32) {
    %c0_i32 = arith.constant 0 : i32
    %c0_i32_0 = arith.constant 0 : i32
    %c0_i32_1 = arith.constant 0 : i32
    return %c0_i32, %c0_i32_0 : i32, i32
  }
  func.func @transform_3(%arg0: i32, %arg1: i32) -> (i32, i32) {
    %c0_i32 = arith.constant 0 : i32
    %c0_i32_0 = arith.constant 0 : i32
    %c0_i32_1 = arith.constant 0 : i32
    return %c0_i32, %c0_i32_0 : i32, i32
  }
  func.func @transform_4(%arg0: i32, %arg1: i32) -> (i32, i32, i32, i32) {
    %c0_i32 = arith.constant 0 : i32
    %c0_i32_0 = arith.constant 0 : i32
    %c0_i32_1 = arith.constant 0 : i32
    return %arg0, %arg1, %c0_i32, %c0_i32_0 : i32, i32, i32, i32
  }
}

</mosaic_0001>

<bundles_post_ra>
// kernel: bottleneck_forward.4
= control target key start
LH: loop header
LB: loop body
LE: loop exit
PB: predicated region body
PF: predicated region fallthrough
CT: control target
= control target key end

     0   :  { %12 = vsyncpa [#allocation3], 0  ;;  %s2378_s0 = inlined_call_operand.hbm [shape: f32[2,16,16,32], index: 0, kind: input, shape index: {}]   ;;  %s2379_s1 = inlined_call_operand.hbm [shape: f32[32,8], index: 1, kind: input, shape index: {}]   ;;  %s2380_s2 = inlined_call_operand.hbm [shape: f32[1,32], index: 2, kind: input, shape index: {}]   ;;  %s2381_s3 = inlined_call_operand.hbm [shape: f32[1,32], index: 3, kind: input, shape index: {}]   ;;  %s2382_s4 = inlined_call_operand.hbm [shape: f32[2,16,16,8], index: 4, kind: output, shape index: {0}]   ;;  %s2383_s5 = inlined_call_operand.hbm [shape: f32[2,1,8], index: 5, kind: output, shape index: {1}]   ;;  %s2384_s6 = inlined_call_operand.hbm [shape: f32[2,1,8], index: 6, kind: output, shape index: {2}]  }
   0x1   :  { %14 = vsyncpa [#allocation3 + $0x1], 0 }
   0x2   :  { %15 = vsyncpa [#allocation6], 0 }
   0x3   :  { %16 = vsyncpa [#allocation9], 0 }
   0x4   :  { %17 = vsyncpa [#allocation4], 0 }
   0x5   :  { %19 = vsyncpa [#allocation4 + $0x1], 0 }
   0x6   :  { %20 = vsyncpa [#allocation12], 0 }
   0x7   :  { %22 = vsyncpa [#allocation12 + $0x1], 0  ;;  %s1721_s21 = smov 0   ;;  %s1723_s22 = smov 0  }
   0x8   :  { %s1725_s23 = smov 0   ;;  %s1727_s24 = smov 0  }
   0x9   :  { %s1729_s25 = smov 0   ;;  %s1731_s26 = smov 0  }
   0xa LB: > { %2391 = sst [smem:[#allocation19_spill]] %s1653_s21  ;;  %s1752_s27 = sadd.s32 4294967295, %s1673_s26   ;;  %s1673_s26 = sphi %s1731_s26, %s28_s26   ;;  %s1669_s25 = sphi %s1729_s25, %s2416_s25   ;;  %s1665_s24 = sphi %s1727_s24, %s2415_s24   ;;  %s1661_s23 = sphi %s1725_s23, %s2414_s23   ;;  %s1657_s22 = sphi %s1723_s22, %s2413_s22   ;;  %s1653_s21 = sphi %s1721_s21, %s2412_s21  }
   0xb   : > { %s2386_s28 = sadd.s32 4294967294, %s1673_s26   ;;  %p62_p0 = scmp.ne.s32.totalorder %s1657_s22, %s1653_s21 }
   0xc   : > { %p2385_p1 = scmp.eq.s32.totalorder %s1752_s27, 0  ;;  %p157_p3 = scmp.eq.s32.totalorder %s2386_s28, 1 }
   0xd   : > { %p1143_p5 = scmp.ge.s32.totalorder %s1673_s26, 1  ;;  %p220_p7 = scmp.lt.s32.totalorder %s1673_s26, 3 }
   0xe   : > { %p1763_p4 = por %p2385_p1, %p62_p0  ;;  %p1768_p6 = por %p157_p3, %p62_p0 }
   0xf   : > { %p1773_p8 = pnand %p1143_p5, %p220_p7  ;;  %s1675_s8 = smov [#allocation5]  }
  0x10   : > { %s2392_s29 = scalar_select %p1763_p4, 1, 0 }
  0x11   : > { %s2393_s30 = scalar_select %p1768_p6, 1, 0 }
  0x12   : > { %s2395_s7 = scalar_select %p1773_p8, 1, 0 }
  0x13   : > { %2394 = sst [smem:[#allocation20_spill]] %s2393_s30  ;;  %s232_s9 = sshll.u32 %s1675_s8, 4  ;;  %s1777_s9 = int_to_ptr.vmem [resolvable:$true] %s232_s9 }
  0x14   : > { %p1322_p9 = pneg %p1773_p8  ;;  %s1676_s11 = smov [#allocation7]  }
  0x15   : > { %s246_s12 = sshll.u32 %s1676_s11, 4  ;;  %s1677_s13 = smov [#allocation8]   ;;  %s1788_s12 = int_to_ptr.vmem [resolvable:$true] %s246_s12 }
  0x16   : > { %p1784_p11 = pnand %p1322_p9, %p2385_p1  ;;  %s1790_s14 = sshll.u32 %s1677_s13, 4  ;;  %s258_s14 = int_to_ptr.vmem [resolvable:$true] %s1790_s14 }
  0x17   : > { %s1409_s17 = scalar_lea.hbm %s2379_s1, 512 }
  0x18   : > { %p1410_p12 = scmp.ne.s32.totalorder %s2379_s1, %s1409_s17  ;;  %p1800_p13 = pneg %p1784_p11 }
  0x19   : > { %p1416_p5 = scmp.lt.u32.totalorder %s1409_s17, %s2379_s1 }
  0x1a   : > { %p1412_p0 = pnand %p1800_p13, %p1410_p12 }
  0x1c   : > { %p1413_p3 = pneg %p1412_p0 }
  0x1e   : > { %p1418_p7 = pnand %p1416_p5, %p1413_p3 }
  0x20   : > { %1421 = shalt.err (!%p1418_p7)
}
  0x21   : > { %s1422_s13 = scalar_lea.vmem %s1777_s9, 512  ;;  %p1430_p2 = scmp.lt.s32.totalorder %s1777_s9, %s1777_s9 }
  0x22   : > { %p1423_p9 = scmp.ne.s32.totalorder %s1777_s9, %s1422_s13  ;;  %p1431_p6 = scmp.lt.s32.totalorder %s1422_s13, %s1422_s13 }
  0x24   : > { %p1425_p10 = pnand %p1423_p9, %p1800_p13  ;;  %p1432_p12 = por %p1431_p6, %p1430_p2 }
  0x26   : > { %p1426_p1 = pneg %p1425_p10 }
  0x28   : > { %p1433_p0 = pnand %p1432_p12, %p1426_p1 }
  0x2a   : > { %1436 = shalt.err (!%p1433_p0)
}
  0x2b   : > { %s1678_s15 = smov 128   ;;  %s1679_s16 = smov 8  }
  0x2c   : > { %1325 = dma.hbm_to_vmem [thread:$0]  (!%p1784_p11), %s2379_s1, 512, %s1777_s9, [#allocation6], %s1678_s15, %s1678_s15, %s1679_s16  }
  0x2d   : > { %s1437_s11 = scalar_lea.hbm %s2380_s2, 16 }
  0x2e   : > { %p1438_p1 = scmp.ne.s32.totalorder %s2380_s2, %s1437_s11  ;;  %p1444_p10 = scmp.lt.u32.totalorder %s1437_s11, %s2380_s2 }
  0x30   : > { %p1440_p2 = pnand %p1438_p1, %p1800_p13 }
  0x32   : > { %p1441_p6 = pneg %p1440_p2 }
  0x34   : > { %p1446_p3 = pnand %p1444_p10, %p1441_p6 }
  0x36   : > { %1449 = shalt.err (!%p1446_p3)
}
  0x37   : > { %s1450_s9 = scalar_lea.vmem %s1788_s12, 16  ;;  %s1457_s28 = scalar_lea.vmem %s1788_s12, 32 }
  0x38   : > { %p1451_p5 = scmp.ne.s32.totalorder %s1788_s12, %s1450_s9  ;;  %p1458_p12 = scmp.lt.s32.totalorder %s1788_s12, %s1788_s12 }
  0x39   : > { %p1459_p0 = scmp.lt.s32.totalorder %s1457_s28, %s1450_s9 }
  0x3a   : > { %p1453_p7 = pnand %p1451_p5, %p1800_p13 }
  0x3b   : > { %p1460_p1 = por %p1459_p0, %p1458_p12 }
  0x3c   : > { %p1454_p9 = pneg %p1453_p7 }
  0x3e   : > { %p1461_p2 = pnand %p1460_p1, %p1454_p9 }
  0x40   : > { %1464 = shalt.err (!%p1461_p2)
}
  0x41   : > { %1328 = dma.hbm_to_vmem [thread:$0]  (!%p1784_p11), %s2380_s2, 16, %s1788_s12, [#allocation6]  }
  0x42   : > { %s1465_s19 = scalar_lea.hbm %s2381_s3, 16 }
  0x43   : > { %p1466_p6 = scmp.ne.s32.totalorder %s2381_s3, %s1465_s19  ;;  %p1472_p5 = scmp.lt.u32.totalorder %s1465_s19, %s2381_s3 }
  0x45   : > { %p1468_p10 = pnand %p1466_p6, %p1800_p13 }
  0x47   : > { %p1469_p3 = pneg %p1468_p10 }
  0x49   : > { %p1474_p7 = pnand %p1472_p5, %p1469_p3 }
  0x4b   : > { %1477 = shalt.err (!%p1474_p7)
}
  0x4c   : > { %s1478_s28 = scalar_lea.vmem %s258_s14, 16  ;;  %s1485_s12 = scalar_lea.vmem %s258_s14, 32 }
  0x4d   : > { %p1479_p9 = scmp.ne.s32.totalorder %s258_s14, %s1478_s28  ;;  %p1486_p1 = scmp.lt.s32.totalorder %s258_s14, %s258_s14 }
  0x4e   : > { %p1487_p2 = scmp.lt.s32.totalorder %s1485_s12, %s1478_s28 }
  0x4f   : > { %p1481_p12 = pnand %p1479_p9, %p1800_p13 }
  0x50   : > { %p1488_p4 = por %p1487_p2, %p1486_p1 }
  0x51   : > { %p1482_p0 = pneg %p1481_p12 }
  0x53   : > { %p1489_p8 = pnand %p1488_p4, %p1482_p0 }
  0x55   : > { %1492 = shalt.err (!%p1489_p8)
}
  0x56   : > { %1331 = dma.hbm_to_vmem [thread:$0]  (!%p1784_p11), %s2381_s3, 16, %s258_s14, [#allocation9]  }
  0x57   : > { %s49_s20 = sadd.s32 1, %s1661_s23  ;;  %s40_s17 = sadd.s32 1, %s1669_s25 }
  0x58   : > { %p56_p4 = scmp.ne.s32.totalorder %s1661_s23, %s1657_s22  ;;  %p42_p8 = scmp.ge.s32.totalorder %s40_s17, 2 }
  0x59   : > { %p57_p13 = scmp.eq.s32.totalorder %s1673_s26, 0  ;;  %p2398_p6 = scmp.eq.s32.totalorder %s1752_s27, 1 }
  0x5a   : > { %p1349_p3 = scmp.lt.s32.totalorder %s1673_s26, 2  ;;  %s2418_s17 = smov (%p42_p8, %s40_s17), 0 }
  0x5b   : > { %p1874_p10 = por %p2398_p6, %p56_p4  ;;  %p58_p5 = por %p57_p13, %p56_p4 }
  0x5c   : > { %s268_s18 = sand.u32 1, %s1661_s23   ;;  %s44_s19 = ssub.s32 %s1669_s25, %s2418_s17 }
  0x5d   : > { %p47_p7 = scmp.eq.s32.totalorder %s44_s19, 0  ;;  %s1148_s14 = sshll.u32 %s268_s18, 8 }
  0x5e   : > { %s1196_s8 = sshll.u32 %s1669_s25, 12  ;;  %s272_s12 = scalar_lea.vmem [#allocation2], %s1148_s14 }
  0x5f   : > { %s1886_s11 = scalar_select %p47_p7, %s1661_s23, %s49_s20  }
  0x60   : > { %s1891_s28 = scalar_lea.hbm %s2378_s0, %s1196_s8  ;;  %s282_s21 = sshll.u32 %s272_s12, 4  ;;  %s1893_s21 = int_to_ptr.vmem [resolvable:$true] %s282_s21 }
  0x61   : > { %p1897_p11 = pnand %p1349_p3, %p58_p5  ;;  %s1901_s20 = scalar_lea.sflag [#allocation3], %s268_s18 }
  0x62   : > { %s1493_s19 = scalar_lea.hbm %s1891_s28, 4096  ;;  %s1498_s13 = scalar_lea.hbm %s2378_s0, 8192 }
  0x63   : > { %p1494_p9 = scmp.ne.s32.totalorder %s1891_s28, %s1493_s19  ;;  %p1495_p12 = pneg %p1897_p11 }
  0x64   : > { %p1499_p2 = scmp.lt.u32.totalorder %s1891_s28, %s2378_s0  ;;  %p1500_p4 = scmp.lt.u32.totalorder %s1498_s13, %s1493_s19 }
  0x65   : > { %p1496_p0 = pnand %p1495_p12, %p1494_p9  ;;  %p1502_p13 = scmp.lt.u32.totalorder %s1493_s19, %s1891_s28 }
  0x66   : > { %p1501_p8 = por %p1500_p4, %p1499_p2 }
  0x67   : > { %p1497_p1 = pneg %p1496_p0 }
  0x68   : > { %p1503_p6 = por %p1502_p13, %p1501_p8 }
  0x6a   : > { %p1504_p3 = pnand %p1503_p6, %p1497_p1 }
  0x6c   : > { %1507 = shalt.err (!%p1504_p3)
}
  0x6d   : > { %s1508_s18 = scalar_lea.vmem %s1893_s21, 4096  ;;  %s1680_s14 = smov [#allocation2]  }
  0x6e   : > { %p1509_p5 = scmp.ne.s32.totalorder %s1893_s21, %s1508_s18  ;;  %s1513_s8 = sshll.u32 %s1680_s14, 4  ;;  %s1514_s8 = int_to_ptr.vmem [resolvable:$false] %s1513_s8 }
  0x6f   : > { %s1515_s9 = scalar_lea.vmem %s1514_s8, 8192  ;;  %p1516_p0 = scmp.lt.s32.totalorder %s1893_s21, %s1514_s8 }
  0x70   : > { %p1511_p7 = pnand %p1509_p5, %p1495_p12  ;;  %p1517_p2 = scmp.lt.s32.totalorder %s1515_s9, %s1508_s18 }
  0x72   : > { %p1512_p9 = pneg %p1511_p7  ;;  %p1518_p4 = por %p1517_p2, %p1516_p0 }
  0x74   : > { %p1519_p8 = pnand %p1518_p4, %p1512_p9 }
  0x76   : > { %1522 = shalt.err (!%p1519_p8)
}
  0x77   : > { %1335 = dma.hbm_to_vmem [thread:$0]  (!%p1897_p11), %s1891_s28, 4096, %s1893_s21, %s1901_s20, %s1678_s15, %s1678_s15, %s1679_s16  }
  0x78   : > { %p2401_p12 = scmp.ne.s32.totalorder %s2395_s7, 0 }
  0x79   : > { %s1935_s19 = sand.u32 (!%p2401_p12), 1, %s1657_s22   ;;  %p2402_p1 = scmp.ne.s32.totalorder (!%p2401_p12), %s2392_s29, 0 }
  0x7a   : > { %294 = sbr.rel (%p2401_p12) target bundleno = 485 (0x1e5), region = 36  ;;  %s1152_s13 = sshll.u32 (!%p2401_p12), %s1935_s19, 8 }
  0x7b   : > { %s297_s12 = scalar_lea.sflag (!%p2401_p12), [#allocation3], %s1935_s19  ;;  %s1941_s30 = scalar_lea.vmem (!%p2401_p12), [#allocation2], %s1152_s13 }
  0x81   : > { %1632 = dma.done.wait (%p2402_p1), %s297_s12, 4096  }
  0x82   : > { %1634 = vsyncadd (%p2402_p1), %s297_s12, 4294963200  ;;  %p2403_p11 = scmp.eq.s32.totalorder %s1752_s27, 0 }
  0x84   : > { %1636 = dma.done.wait (%p2403_p11), [#allocation6], 528   ;;  %p2404_p13 = pmov %p2403_p11 }
  0x85   : > { %p2405_p6 = pmov %p2403_p11 }
  0x86   : > { %1638 = vsyncadd (%p2404_p13), [#allocation6], 4294966768 }
  0x87   : > { %1640 = dma.done.wait (%p2405_p6), [#allocation9], 16   ;;  %p2406_p3 = pmov %p2405_p6 }
  0x88   : > { %vm389_vm0 = vcmask 261120   ;;  %v385_v0 = vld [vmem:[#allocation5] sm:$0xff]  ;;  %v386_v1 = vld [vmem:[#allocation5 + $0x8] sm:$0xff]  ;;  %v387_v2 = vld [vmem:[#allocation5 + $0x10] sm:$0xff]  ;;  %vm711_vm1 = vcmask 64512   ;;  %s2023_s29 = scalar_lea.vmem [#allocation10], %s1152_s13 }
  0x89   : > { %1642 = vsyncadd (%p2406_p3), [#allocation9], 4294967280  ;;  %v1290_v3 = vpack.c.bf16 %v386_v1, %v385_v0  ;;  %v388_v4 = vld [vmem:[#allocation5 + $0x18] sm:$0xff]  ;;  %v353_v5 = vld [vmem:[%s1941_s30] sm:$0xff]  ;;  %s1197_s7 = sshll.u32 %s1665_s24, 12  ;;  %s942_s15 = sshll.u32 %s2023_s29, 4  ;;  %s2153_s15 = int_to_ptr.vmem [resolvable:$true] %s942_s15 }
  0x8a   : > { %v1294_v6 = vpack.c.bf16 %v388_v4, %v387_v2  ;;  %1242 = vmatprep.mubr.msk.f32.mxu0 %vm389_vm0, %v353_v5  ;;  %v369_v7 = vld [vmem:[%s1941_s30 + $0x80] sm:$0xff]  ;;  %v354_v8 = vld [vmem:[%s1941_s30 + $0x8] sm:$0xff]  ;;  %v355_v10 = vld [vmem:[%s1941_s30 + $0x10] sm:$0xff]  ;;  %s2151_s21 = scalar_lea.hbm %s2382_s4, %s1197_s7  ;;  %s918_s20 = scalar_lea.sflag [#allocation4], %s1935_s19 }
  0x8b   : > { %1291 = vmatprep.subr.bf16.mxu0 %v1290_v3  ;;  %1298 = vmatprep.subr.bf16.mxu1 %v1290_v3  ;;  %v370_v9 = vld [vmem:[%s1941_s30 + $0x88] sm:$0xff]  ;;  %v371_v11 = vld [vmem:[%s1941_s30 + $0x90] sm:$0xff]  ;;  %v356_v12 = vld [vmem:[%s1941_s30 + $0x18] sm:$0xff]  ;;  %s1523_s18 = scalar_lea.vmem %s2153_s15, 4096  ;;  %s1681_s14 = smov [#allocation10]  }
  0x8c   : > { %1293 = vmatpush3.bf16.msra.mxu0 %v1290_v3  ;;  %1300 = vmatpush3.bf16.msra.mxu1 %v1290_v3  ;;  %v372_v13 = vld [vmem:[%s1941_s30 + $0x98] sm:$0xff]  ;;  %v357_v14 = vld [vmem:[%s1941_s30 + $0x20] sm:$0xff]  ;;  %v358_v16 = vld [vmem:[%s1941_s30 + $0x28] sm:$0xff]  ;;  %p1524_p5 = scmp.ne.s32.totalorder %s2153_s15, %s1523_s18  ;;  %s1527_s8 = sshll.u32 %s1681_s14, 4  ;;  %s1528_s8 = int_to_ptr.vmem [resolvable:$false] %s1527_s8 }
  0x8d   : > { %1295 = vmatprep.subr.bf16.mxu0 %v1294_v6  ;;  %1299 = vmatprep.subr.bf16.mxu1 %v1294_v6  ;;  %v373_v15 = vld [vmem:[%s1941_s30 + $0xa0] sm:$0xff]  ;;  %v374_v17 = vld [vmem:[%s1941_s30 + $0xa8] sm:$0xff]  ;;  %v359_v18 = vld [vmem:[%s1941_s30 + $0x30] sm:$0xff]  ;;  %s1529_s9 = scalar_lea.vmem %s1528_s8, 8192  ;;  %p1530_p0 = scmp.lt.s32.totalorder %s2153_s15, %s1528_s8 }
  0x8e   : > { %1266 = vmatprep.mubr.msk.f32.mxu1 %vm389_vm0, %v369_v7  ;;  %v375_v19 = vld [vmem:[%s1941_s30 + $0xb0] sm:$0xff]  ;;  %v360_v20 = vld [vmem:[%s1941_s30 + $0x38] sm:$0xff]  ;;  %v361_v22 = vld [vmem:[%s1941_s30 + $0x40] sm:$0xff]  ;;  %p1525_p7 = pnand %p1524_p5, %p1874_p10  ;;  %p1531_p2 = scmp.lt.s32.totalorder %s1529_s9, %s1523_s18 }
  0x8f   : > { %v376_v21 = vld [vmem:[%s1941_s30 + $0xb8] sm:$0xff]  ;;  %v377_v23 = vld [vmem:[%s1941_s30 + $0xc0] sm:$0xff]  ;;  %v362_v24 = vld [vmem:[%s1941_s30 + $0x48] sm:$0xff] }
  0x90   : > { %1297 = vmatpush3.bf16.msra.mxu0 %v1294_v6  ;;  %1301 = vmatpush3.bf16.msra.mxu1 %v1294_v6  ;;  %v378_v25 = vld [vmem:[%s1941_s30 + $0xc8] sm:$0xff]  ;;  %v363_v26 = vld [vmem:[%s1941_s30 + $0x50] sm:$0xff]  ;;  %v364_v28 = vld [vmem:[%s1941_s30 + $0x58] sm:$0xff]  ;;  %p1526_p9 = pneg %p1525_p7  ;;  %p1532_p4 = por %p1531_p2, %p1530_p0 }
  0x91   : > { %v379_v27 = vld [vmem:[%s1941_s30 + $0xd0] sm:$0xff]  ;;  %v380_v29 = vld [vmem:[%s1941_s30 + $0xd8] sm:$0xff]  ;;  %v365_v30 = vld [vmem:[%s1941_s30 + $0x60] sm:$0xff] }
  0x92   : > { %v381_v31 = vld [vmem:[%s1941_s30 + $0xe0] sm:$0xff]  ;;  %v366_v32 = vld [vmem:[%s1941_s30 + $0x68] sm:$0xff]  ;;  %v367_v34 = vld [vmem:[%s1941_s30 + $0x70] sm:$0xff]  ;;  %p1533_p8 = pnand %p1532_p4, %p1526_p9 }
  0x93   : > { %1243 = vmatmul.mubr.msk.f32.vlgmr.msra.gmra.mrb[0].mxu0 %vm389_vm0, %v354_v8  ;;  %1267 = vmatmul.mubr.msk.f32.vlgmr.msra.gmra.mrb[0].mxu1 %vm389_vm0, %v370_v9  ;;  %v382_v33 = vld [vmem:[%s1941_s30 + $0xe8] sm:$0xff]  ;;  %v383_v35 = vld [vmem:[%s1941_s30 + $0xf0] sm:$0xff]  ;;  %v368_v36 = vld [vmem:[%s1941_s30 + $0x78] sm:$0xff] }
  0x94   : > { %1245 = vmatprep.mubr.msk.f32.mxu0 %vm389_vm0, %v355_v10  ;;  %1269 = vmatprep.mubr.msk.f32.mxu1 %vm389_vm0, %v371_v11  ;;  %v384_v37 = vld [vmem:[%s1941_s30 + $0xf8] sm:$0xff] }
  0x97   : > { %1246 = vmatmul.mubr.msk.f32.gmra.mrb[2].mxu0 %vm389_vm0, %v356_v12  ;;  %1270 = vmatmul.mubr.msk.f32.gmra.mrb[2].mxu1 %vm389_vm0, %v372_v13 }
  0x98   : > { %1248 = vmatprep.mubr.msk.f32.mxu0 %vm389_vm0, %v357_v14  ;;  %1272 = vmatprep.mubr.msk.f32.mxu1 %vm389_vm0, %v373_v15 }
  0x9b   : > { %1249 = vmatmul.mubr.msk.f32.gmra.mrb[4].mxu0 %vm389_vm0, %v358_v16  ;;  %1273 = vmatmul.mubr.msk.f32.gmra.mrb[4].mxu1 %vm389_vm0, %v374_v17 }
  0x9c   : > { %1251 = vmatprep.mubr.msk.f32.mxu0 %vm389_vm0, %v359_v18  ;;  %1275 = vmatprep.mubr.msk.f32.mxu1 %vm389_vm0, %v375_v19 }
  0x9f   : > { %1252 = vmatmul.mubr.msk.f32.gmra.mrb[6].mxu0 %vm389_vm0, %v360_v20  ;;  %1276 = vmatmul.mubr.msk.f32.gmra.mrb[6].mxu1 %vm389_vm0, %v376_v21 }
  0xa0   : > { %1254 = vmatprep.mubr.msk.f32.mxu0 %vm389_vm0, %v361_v22  ;;  %1278 = vmatprep.mubr.msk.f32.mxu1 %vm389_vm0, %v377_v23 }
  0xa3   : > { %1255 = vmatmul.mubr.msk.f32.gmra.mrb[8].mxu0 %vm389_vm0, %v362_v24  ;;  %1279 = vmatmul.mubr.msk.f32.gmra.mrb[8].mxu1 %vm389_vm0, %v378_v25 }
  0xa4   : > { %1257 = vmatprep.mubr.msk.f32.mxu0 %vm389_vm0, %v363_v26  ;;  %1281 = vmatprep.mubr.msk.f32.mxu1 %vm389_vm0, %v379_v27 }
  0xa7   : > { %1258 = vmatmul.mubr.msk.f32.gmra.mrb[10].mxu0 %vm389_vm0, %v364_v28  ;;  %1282 = vmatmul.mubr.msk.f32.gmra.mrb[10].mxu1 %vm389_vm0, %v380_v29 }
  0xa8   : > { %1260 = vmatprep.mubr.msk.f32.mxu0 %vm389_vm0, %v365_v30  ;;  %1284 = vmatprep.mubr.msk.f32.mxu1 %vm389_vm0, %v381_v31 }
  0xab   : > { %1261 = vmatmul.mubr.msk.f32.gmra.mrb[12].mxu0 %vm389_vm0, %v366_v32  ;;  %1285 = vmatmul.mubr.msk.f32.gmra.mrb[12].mxu1 %vm389_vm0, %v382_v33 }
  0xac   : > { %1263 = vmatprep.mubr.msk.f32.mxu0 %vm389_vm0, %v367_v34  ;;  %1287 = vmatprep.mubr.msk.f32.mxu1 %vm389_vm0, %v383_v35 }
  0xaf   : > { %1264 = vmatmul.mubr.msk.f32.gmra.mrb[14].mxu0 %vm389_vm0, %v368_v36  ;;  %1288 = vmatmul.mubr.msk.f32.gmra.mrb[14].mxu1 %vm389_vm0, %v384_v37 }
 0x166   : > { %v1244_v38 = vpop.f32.mrb[0].mxu0  ;;  %v2019_v39 = vpop.f32.mrb[0].mxu1 }
 0x167   : > { %713 = vst.msk [vmem:[%s2023_s29 + $0x8] sm:$0xff] %vm711_vm1, %v1244_v38  ;;  %v745_v40 = vsel %vm711_vm1, %v1244_v38, 0.0  ;;  %v816_v41 = vmul.f32 %v1244_v38, %v1244_v38  ;;  %v552_v42 = vpop.f32.mrb[1].mxu0  ;;  %729 = vst.msk [vmem:[%s2023_s29 + $0x88] sm:$0xff] %vm711_vm1, %v2019_v39  ;;  %v2031_v43 = vpop.f32.mrb[1].mxu1 }
 0x168   : > { %712 = vst.msk [vmem:[%s2023_s29] sm:$0xff] %vm711_vm1, %v552_v42  ;;  %v744_v44 = vsel %vm711_vm1, %v552_v42, 0.0  ;;  %v815_v45 = vmul.f32 %v552_v42, %v552_v42  ;;  %728 = vst.msk [vmem:[%s2023_s29 + $0x80] sm:$0xff] %vm711_vm1, %v2031_v43 }
 0x169   : > { %v848_v46 = vsel %vm711_vm1, %v816_v41, 0.0  ;;  %v746_v47 = vadd.f32 %v745_v40, %v744_v44 }
 0x16a   : > { %v847_v48 = vsel %vm711_vm1, %v815_v45, 0.0  ;;  %v1247_v49 = vpop.f32.mrb[2].mxu0  ;;  %v2041_v50 = vpop.f32.mrb[2].mxu1 }
 0x16b   : > { %v849_v51 = vadd.f32 %v848_v46, %v847_v48  ;;  %715 = vst.msk [vmem:[%s2023_s29 + $0x18] sm:$0xff] %vm711_vm1, %v1247_v49  ;;  %v562_v52 = vpop.f32.mrb[3].mxu0  ;;  %731 = vst.msk [vmem:[%s2023_s29 + $0x98] sm:$0xff] %vm711_vm1, %v2041_v50  ;;  %v2048_v53 = vpop.f32.mrb[3].mxu1  ;;  %v818_v54 = vmul.f32 %v1247_v49, %v1247_v49  ;;  %v749_v58 = vsel %vm711_vm1, %v1247_v49, 0.0 }
 0x16c   : > { %714 = vst.msk [vmem:[%s2023_s29 + $0x10] sm:$0xff] %vm711_vm1, %v562_v52  ;;  %v747_v55 = vsel %vm711_vm1, %v562_v52, 0.0  ;;  %v817_v56 = vmul.f32 %v562_v52, %v562_v52  ;;  %730 = vst.msk [vmem:[%s2023_s29 + $0x90] sm:$0xff] %vm711_vm1, %v2048_v53 }
 0x16d   : > { %v748_v57 = vadd.f32 %v747_v55, %v746_v47  ;;  %v852_v2 = vsel %vm711_vm1, %v818_v54, 0.0 }
 0x16e   : > { %v850_v59 = vsel %vm711_vm1, %v817_v56, 0.0  ;;  %v1250_v60 = vpop.f32.mrb[4].mxu0  ;;  %v2058_v61 = vpop.f32.mrb[4].mxu1 }
 0x16f   : > { %v851_v62 = vadd.f32 %v850_v59, %v849_v51  ;;  %717 = vst.msk [vmem:[%s2023_s29 + $0x28] sm:$0xff] %vm711_vm1, %v1250_v60  ;;  %v572_v63 = vpop.f32.mrb[5].mxu0  ;;  %v750_v0 = vadd.f32 %v749_v58, %v748_v57  ;;  %733 = vst.msk [vmem:[%s2023_s29 + $0xa8] sm:$0xff] %vm711_vm1, %v2058_v61  ;;  %v2065_v1 = vpop.f32.mrb[5].mxu1  ;;  %v820_v3 = vmul.f32 %v1250_v60, %v1250_v60  ;;  %v753_v8 = vsel %vm711_vm1, %v1250_v60, 0.0 }
 0x170   : > { %716 = vst.msk [vmem:[%s2023_s29 + $0x20] sm:$0xff] %vm711_vm1, %v572_v63  ;;  %v751_v4 = vsel %vm711_vm1, %v572_v63, 0.0  ;;  %v819_v5 = vmul.f32 %v572_v63, %v572_v63  ;;  %732 = vst.msk [vmem:[%s2023_s29 + $0xa0] sm:$0xff] %vm711_vm1, %v2065_v1 }
 0x171   : > { %v752_v6 = vadd.f32 %v751_v4, %v750_v0  ;;  %v853_v7 = vadd.f32 %v852_v2, %v851_v62  ;;  %v856_v16 = vsel %vm711_vm1, %v820_v3, 0.0 }
 0x172   : > { %v854_v9 = vsel %vm711_vm1, %v819_v5, 0.0  ;;  %v1253_v10 = vpop.f32.mrb[6].mxu0  ;;  %v2076_v11 = vpop.f32.mrb[6].mxu1 }
 0x173   : > { %v855_v12 = vadd.f32 %v854_v9, %v853_v7  ;;  %719 = vst.msk [vmem:[%s2023_s29 + $0x38] sm:$0xff] %vm711_vm1, %v1253_v10  ;;  %v582_v13 = vpop.f32.mrb[7].mxu0  ;;  %v754_v14 = vadd.f32 %v753_v8, %v752_v6  ;;  %735 = vst.msk [vmem:[%s2023_s29 + $0xb8] sm:$0xff] %vm711_vm1, %v2076_v11  ;;  %v2083_v15 = vpop.f32.mrb[7].mxu1  ;;  %v822_v17 = vmul.f32 %v1253_v10, %v1253_v10  ;;  %v757_v22 = vsel %vm711_vm1, %v1253_v10, 0.0 }
 0x174   : > { %718 = vst.msk [vmem:[%s2023_s29 + $0x30] sm:$0xff] %vm711_vm1, %v582_v13  ;;  %v755_v18 = vsel %vm711_vm1, %v582_v13, 0.0  ;;  %v821_v19 = vmul.f32 %v582_v13, %v582_v13  ;;  %734 = vst.msk [vmem:[%s2023_s29 + $0xb0] sm:$0xff] %vm711_vm1, %v2083_v15 }
 0x175   : > { %v756_v20 = vadd.f32 %v755_v18, %v754_v14  ;;  %v857_v21 = vadd.f32 %v856_v16, %v855_v12  ;;  %v860_v30 = vsel %vm711_vm1, %v822_v17, 0.0  ;;  %v831_v14 = vmul.f32 %v2031_v43, %v2031_v43 }
 0x176   : > { %v858_v23 = vsel %vm711_vm1, %v821_v19, 0.0  ;;  %v1256_v24 = vpop.f32.mrb[8].mxu0  ;;  %v2094_v25 = vpop.f32.mrb[8].mxu1 }
 0x177   : > { %v859_v26 = vadd.f32 %v858_v23, %v857_v21  ;;  %721 = vst.msk [vmem:[%s2023_s29 + $0x48] sm:$0xff] %vm711_vm1, %v1256_v24  ;;  %v592_v27 = vpop.f32.mrb[9].mxu0  ;;  %v758_v28 = vadd.f32 %v757_v22, %v756_v20  ;;  %737 = vst.msk [vmem:[%s2023_s29 + $0xc8] sm:$0xff] %vm711_vm1, %v2094_v25  ;;  %v2101_v29 = vpop.f32.mrb[9].mxu1  ;;  %v824_v31 = vmul.f32 %v1256_v24, %v1256_v24  ;;  %v761_v36 = vsel %vm711_vm1, %v1256_v24, 0.0 }
 0x178   : > { %720 = vst.msk [vmem:[%s2023_s29 + $0x40] sm:$0xff] %vm711_vm1, %v592_v27  ;;  %v759_v32 = vsel %vm711_vm1, %v592_v27, 0.0  ;;  %v823_v33 = vmul.f32 %v592_v27, %v592_v27  ;;  %736 = vst.msk [vmem:[%s2023_s29 + $0xc0] sm:$0xff] %vm711_vm1, %v2101_v29 }
 0x179   : > { %v760_v34 = vadd.f32 %v759_v32, %v758_v28  ;;  %v861_v35 = vadd.f32 %v860_v30, %v859_v26  ;;  %v864_v46 = vsel %vm711_vm1, %v824_v31, 0.0 }
 0x17a   : > { %v862_v37 = vsel %vm711_vm1, %v823_v33, 0.0  ;;  %v1259_v38 = vpop.f32.mrb[10].mxu0  ;;  %v2112_v40 = vpop.f32.mrb[10].mxu1 }
 0x17b   : > { %v863_v41 = vadd.f32 %v862_v37, %v861_v35  ;;  %723 = vst.msk [vmem:[%s2023_s29 + $0x58] sm:$0xff] %vm711_vm1, %v1259_v38  ;;  %v602_v42 = vpop.f32.mrb[11].mxu0  ;;  %v762_v44 = vadd.f32 %v761_v36, %v760_v34  ;;  %739 = vst.msk [vmem:[%s2023_s29 + $0xd8] sm:$0xff] %vm711_vm1, %v2112_v40  ;;  %v2119_v45 = vpop.f32.mrb[11].mxu1  ;;  %v826_v47 = vmul.f32 %v1259_v38, %v1259_v38  ;;  %v765_v54 = vsel %vm711_vm1, %v1259_v38, 0.0 }
 0x17c   : > { %722 = vst.msk [vmem:[%s2023_s29 + $0x50] sm:$0xff] %vm711_vm1, %v602_v42  ;;  %v763_v48 = vsel %vm711_vm1, %v602_v42, 0.0  ;;  %v825_v49 = vmul.f32 %v602_v42, %v602_v42  ;;  %738 = vst.msk [vmem:[%s2023_s29 + $0xd0] sm:$0xff] %vm711_vm1, %v2119_v45 }
 0x17d   : > { %v764_v51 = vadd.f32 %v763_v48, %v762_v44  ;;  %v865_v52 = vadd.f32 %v864_v46, %v863_v41  ;;  %v868_v63 = vsel %vm711_vm1, %v826_v47, 0.0 }
 0x17e   : > { %v866_v55 = vsel %vm711_vm1, %v825_v49, 0.0  ;;  %v1262_v56 = vpop.f32.mrb[12].mxu0  ;;  %v2130_v57 = vpop.f32.mrb[12].mxu1 }
 0x17f   : > { %v867_v58 = vadd.f32 %v866_v55, %v865_v52  ;;  %725 = vst.msk [vmem:[%s2023_s29 + $0x68] sm:$0xff] %vm711_vm1, %v1262_v56  ;;  %v612_v59 = vpop.f32.mrb[13].mxu0  ;;  %v766_v60 = vadd.f32 %v765_v54, %v764_v51  ;;  %741 = vst.msk [vmem:[%s2023_s29 + $0xe8] sm:$0xff] %vm711_vm1, %v2130_v57  ;;  %v2139_v62 = vpop.f32.mrb[13].mxu1  ;;  %v828_v0 = vmul.f32 %v1262_v56, %v1262_v56  ;;  %v769_v6 = vsel %vm711_vm1, %v1262_v56, 0.0 }
 0x180   : > { %724 = vst.msk [vmem:[%s2023_s29 + $0x60] sm:$0xff] %vm711_vm1, %v612_v59  ;;  %v767_v2 = vsel %vm711_vm1, %v612_v59, 0.0  ;;  %v827_v3 = vmul.f32 %v612_v59, %v612_v59  ;;  %740 = vst.msk [vmem:[%s2023_s29 + $0xe0] sm:$0xff] %vm711_vm1, %v2139_v62 }
 0x181   : > { %v768_v4 = vadd.f32 %v767_v2, %v766_v60  ;;  %v869_v5 = vadd.f32 %v868_v63, %v867_v58  ;;  %v872_v17 = vsel %vm711_vm1, %v828_v0, 0.0 }
 0x182   : > { %v870_v7 = vsel %vm711_vm1, %v827_v3, 0.0  ;;  %v1265_v8 = vpop.f32.mrb[14].mxu0  ;;  %v2157_v9 = vpop.f32.mrb[14].mxu1 }
 0x183   : > { %v871_v10 = vadd.f32 %v870_v7, %v869_v5  ;;  %727 = vst.msk [vmem:[%s2023_s29 + $0x78] sm:$0xff] %vm711_vm1, %v1265_v8  ;;  %v622_v12 = vpop.f32.mrb[15].mxu0  ;;  %v770_v13 = vadd.f32 %v769_v6, %v768_v4  ;;  %743 = vst.msk [vmem:[%s2023_s29 + $0xf8] sm:$0xff] %vm711_vm1, %v2157_v9  ;;  %v2166_v16 = vpop.f32.mrb[15].mxu1  ;;  %v830_v18 = vmul.f32 %v1265_v8, %v1265_v8 }
 0x184   : > { %726 = vst.msk [vmem:[%s2023_s29 + $0x70] sm:$0xff] %vm711_vm1, %v622_v12  ;;  %v771_v19 = vsel %vm711_vm1, %v622_v12, 0.0  ;;  %v829_v20 = vmul.f32 %v622_v12, %v622_v12  ;;  %742 = vst.msk [vmem:[%s2023_s29 + $0xf0] sm:$0xff] %vm711_vm1, %v2166_v16 }
 0x185   : > { %v772_v21 = vadd.f32 %v771_v19, %v770_v13  ;;  %v873_v22 = vadd.f32 %v872_v17, %v871_v10 }
 0x186   : > { %1536 = shalt.err (!%p1533_p8)
}
 0x187   : > { %s1537_s13 = scalar_lea.hbm %s2151_s21, 4096  ;;  %s1541_s29 = scalar_lea.hbm %s2382_s4, 8192 }
 0x188   : > { %p1538_p12 = scmp.ne.s32.totalorder %s2151_s21, %s1537_s13  ;;  %p1542_p13 = scmp.lt.u32.totalorder %s2151_s21, %s2382_s4 }
 0x189   : > { %p1543_p6 = scmp.lt.u32.totalorder %s1541_s29, %s1537_s13  ;;  %p1545_p5 = scmp.lt.u32.totalorder %s1537_s13, %s2151_s21 }
 0x18a   : > { %p1539_p1 = pnand %p1538_p12, %p1874_p10 }
 0x18b   : > { %p1544_p3 = por %p1543_p6, %p1542_p13 }
 0x18c   : > { %p1540_p11 = pneg %p1539_p1 }
 0x18d   : > { %p1546_p7 = por %p1545_p5, %p1544_p3 }
 0x18f   : > { %p1547_p9 = pnand %p1546_p7, %p1540_p11 }
 0x191   : > { %1550 = shalt.err (!%p1547_p9)
}
 0x192   : > { %s1682_s28 = smov 128   ;;  %s1683_s18 = smov 8   ;;  %v773_v23 = vsel %vm711_vm1, %v1265_v8, 0.0  ;;  %v874_v24 = vsel %vm711_vm1, %v829_v20, 0.0  ;;  %v775_v26 = vsel %vm711_vm1, %v2031_v43, 0.0  ;;  %v846_v27 = vmul.f32 %v2157_v9, %v2157_v9 }
 0x193   : > { %1316 = dma.vmem_to_hbm [thread:$0]  (%p1874_p10), %s2153_s15, 4096, %s2151_s21, %s918_s20, %s1682_s28, %s1682_s28, %s1683_s18   ;;  %v774_v28 = vadd.f32 %v773_v23, %v772_v21  ;;  %v875_v30 = vadd.f32 %v874_v24, %v873_v22  ;;  %v832_v31 = vmul.f32 %v2019_v39, %v2019_v39  ;;  %v876_v32 = vsel %vm711_vm1, %v830_v18, 0.0 }
 0x194   : > { %v878_v33 = vsel %vm711_vm1, %v831_v14, 0.0  ;;  %v833_v34 = vmul.f32 %v2048_v53, %v2048_v53  ;;  %v2212_v35 = vsel %vm711_vm1, %v846_v27, 0.0  ;;  %v777_v37 = vsel %vm711_vm1, %v2019_v39, 0.0  ;;  %s922_s15 = sand.u32 1, %s1752_s27   ;;  %s1192_s21 = sshll.u32 %s1665_s24, 4 }
 0x195   : > { %v877_v36 = vadd.f32 %v876_v32, %v875_v30  ;;  %v776_v43 = vadd.f32 %v775_v26, %v774_v28  ;;  %v779_v38 = vsel %vm711_vm1, %v2048_v53, 0.0  ;;  %v880_v44 = vsel %vm711_vm1, %v832_v31, 0.0  ;;  %s342_s20 = scalar_lea.vmem [#allocation11], %s1935_s19  ;;  %s348_s8 = scalar_lea.vmem [#allocation13], %s1935_s19 }
 0x196   : > { %v834_v46 = vmul.f32 %v2041_v50, %v2041_v50  ;;  %v882_v47 = vsel %vm711_vm1, %v833_v34, 0.0  ;;  %v835_v48 = vmul.f32 %v2065_v1, %v2065_v1  ;;  %v781_v39 = vsel %vm711_vm1, %v2041_v50, 0.0  ;;  %s959_s14 = sshll.u32 %s342_s20, 4  ;;  %s973_s9 = sshll.u32 %s348_s8, 4  ;;  %s2294_s14 = int_to_ptr.vmem [resolvable:$true] %s959_s14  ;;  %s2302_s9 = int_to_ptr.vmem [resolvable:$true] %s973_s9 }
 0x197   : > { %v879_v41 = vadd.f32 %v878_v33, %v877_v36  ;;  %v778_v42 = vadd.f32 %v777_v37, %v776_v43  ;;  %v783_v53 = vsel %vm711_vm1, %v2065_v1, 0.0  ;;  %v836_v56 = vmul.f32 %v2058_v61, %v2058_v61  ;;  %s2292_s30 = scalar_lea.hbm %s2383_s5, %s1192_s21  ;;  %s2300_s29 = scalar_lea.hbm %s2384_s6, %s1192_s21 }
 0x198   : > { %v884_v55 = vsel %vm711_vm1, %v834_v46, 0.0  ;;  %v886_v58 = vsel %vm711_vm1, %v835_v48, 0.0  ;;  %v837_v59 = vmul.f32 %v2083_v15, %v2083_v15  ;;  %v785_v50 = vsel %vm711_vm1, %v2058_v61, 0.0  ;;  %s2304_s7 = scalar_lea.sflag [#allocation12], %s922_s15  ;;  %s1551_s16 = scalar_lea.vmem %s2294_s14, 16 }
 0x199   : > { %v780_v49 = vadd.f32 %v779_v38, %v778_v42  ;;  %v881_v51 = vadd.f32 %v880_v44, %v879_v41  ;;  %v787_v1 = vsel %vm711_vm1, %v2083_v15, 0.0  ;;  %v888_v3 = vsel %vm711_vm1, %v836_v56, 0.0  ;;  %p1552_p0 = scmp.ne.s32.totalorder %s2294_s14, %s1551_s16  ;;  %s1684_s28 = smov [#allocation11]  }
 0x19a   : > { %v838_v4 = vmul.f32 %v2076_v11, %v2076_v11  ;;  %v890_v5 = vsel %vm711_vm1, %v837_v59, 0.0  ;;  %v839_v6 = vmul.f32 %v2101_v29, %v2101_v29  ;;  %v789_v61 = vsel %vm711_vm1, %v2076_v11, 0.0  ;;  %s1555_s18 = sshll.u32 %s1684_s28, 4  ;;  %s1556_s18 = int_to_ptr.vmem [resolvable:$false] %s1555_s18 }
 0x19b   : > { %v883_v52 = vadd.f32 %v882_v47, %v881_v51  ;;  %v782_v54 = vadd.f32 %v781_v39, %v780_v49  ;;  %v791_v15 = vsel %vm711_vm1, %v2101_v29, 0.0  ;;  %v840_v14 = vmul.f32 %v2094_v25, %v2094_v25  ;;  %p1553_p2 = pnand %p1552_p0, %p1874_p10  ;;  %s1557_s13 = scalar_lea.vmem %s1556_s18, 32 }
 0x19c   : > { %v892_v13 = vsel %vm711_vm1, %v838_v4, 0.0  ;;  %v894_v17 = vsel %vm711_vm1, %v839_v6, 0.0  ;;  %v841_v18 = vmul.f32 %v2119_v45, %v2119_v45  ;;  %v793_v11 = vsel %vm711_vm1, %v2094_v25, 0.0  ;;  %p1558_p8 = scmp.lt.s32.totalorder %s2294_s14, %s1556_s18  ;;  %p1559_p12 = scmp.lt.s32.totalorder %s1557_s13, %s1551_s16 }
 0x19d   : > { %v784_v60 = vadd.f32 %v783_v53, %v782_v54  ;;  %v885_v63 = vadd.f32 %v884_v55, %v883_v52  ;;  %v795_v29 = vsel %vm711_vm1, %v2119_v45, 0.0  ;;  %v896_v23 = vsel %vm711_vm1, %v840_v14, 0.0  ;;  %p1554_p4 = pneg %p1553_p2 }
 0x19e   : > { %v842_v24 = vmul.f32 %v2112_v40, %v2112_v40  ;;  %v898_v26 = vsel %vm711_vm1, %v841_v18, 0.0  ;;  %v843_v27 = vmul.f32 %v2139_v62, %v2139_v62  ;;  %v797_v25 = vsel %vm711_vm1, %v2112_v40, 0.0  ;;  %p1560_p1 = por %p1559_p12, %p1558_p8 }
 0x19f   : > { %v887_v0 = vadd.f32 %v886_v58, %v885_v63  ;;  %v786_v2 = vadd.f32 %v785_v50, %v784_v60  ;;  %v799_v45 = vsel %vm711_vm1, %v2139_v62, 0.0  ;;  %v844_v34 = vmul.f32 %v2130_v57, %v2130_v57 }
 0x1a0   : > { %v900_v33 = vsel %vm711_vm1, %v842_v24, 0.0  ;;  %v902_v36 = vsel %vm711_vm1, %v843_v27, 0.0  ;;  %v845_v43 = vmul.f32 %v2166_v16, %v2166_v16  ;;  %v801_v40 = vsel %vm711_vm1, %v2130_v57, 0.0  ;;  %p1561_p11 = pnand %p1560_p1, %p1554_p4 }
 0x1a1   : > { %v788_v7 = vadd.f32 %v787_v1, %v786_v2  ;;  %v889_v8 = vadd.f32 %v888_v3, %v887_v0  ;;  %v803_v62 = vsel %vm711_vm1, %v2166_v16, 0.0  ;;  %v904_v44 = vsel %vm711_vm1, %v844_v34, 0.0 }
 0x1a2   : > { %v906_v46 = vsel %vm711_vm1, %v845_v43, 0.0  ;;  %v805_v49 = vsel %vm711_vm1, %v2157_v9, 0.0  ;;  %vm813_vm2 = vcmask 57344  }
 0x1a3   : > { %v891_v10 = vadd.f32 %v890_v5, %v889_v8  ;;  %v790_v12 = vadd.f32 %v789_v61, %v788_v7 }
 0x1a5   : > { %v792_v19 = vadd.f32 %v791_v15, %v790_v12  ;;  %v893_v20 = vadd.f32 %v892_v13, %v891_v10 }
 0x1a7   : > { %v895_v21 = vadd.f32 %v894_v17, %v893_v20  ;;  %v794_v22 = vadd.f32 %v793_v11, %v792_v19 }
 0x1a9   : > { %v796_v28 = vadd.f32 %v795_v29, %v794_v22  ;;  %v897_v30 = vadd.f32 %v896_v23, %v895_v21 }
 0x1ab   : > { %v899_v31 = vadd.f32 %v898_v26, %v897_v30  ;;  %v798_v32 = vadd.f32 %v797_v25, %v796_v28 }
 0x1ad   : > { %v800_v37 = vadd.f32 %v799_v45, %v798_v32  ;;  %v901_v38 = vadd.f32 %v900_v33, %v899_v31 }
 0x1af   : > { %v903_v41 = vadd.f32 %v902_v36, %v901_v38  ;;  %v802_v42 = vadd.f32 %v801_v40, %v800_v37 }
 0x1b1   : > { %v804_v47 = vadd.f32 %v803_v62, %v802_v42  ;;  %v905_v48 = vadd.f32 %v904_v44, %v903_v41 }
 0x1b3   : > { %v806_v51 = vadd.f32 %v805_v49, %v804_v47  ;;  %v907_v39 = vadd.f32 %v906_v46, %v905_v48 }
 0x1b5   : > { %v807_v57 = vrot.slane %v806_v51, 4  ;;  %v909_v16 = vadd.f32 %v2212_v35, %v907_v39 }
 0x1b7   : > { %v808_v53 = vadd.f32 %v807_v57, %v806_v51  ;;  %v910_v52 = vrot.slane %v909_v16, 4 }
 0x1b9   : > { %v809_v54 = vrot.slane %v808_v53, 2  ;;  %v911_v55 = vadd.f32 %v910_v52, %v909_v16 }
 0x1bb   : > { %v810_v56 = vadd.f32 %v809_v54, %v808_v53  ;;  %v912_v58 = vrot.slane %v911_v55, 2 }
 0x1bd   : > { %v811_v59 = vrot.slane %v810_v56, 1  ;;  %v913_v9 = vadd.f32 %v912_v58, %v911_v55 }
 0x1bf   : > { %v812_v60 = vadd.f32 %v811_v59, %v810_v56  ;;  %v914_v63 = vrot.slane %v913_v9, 1 }
 0x1c1   : > { %v915_v35 = vadd.f32 %v914_v63, %v913_v9  ;;  %814 = vst.msk [vmem:[%s342_s20] sm:$0x1] %vm813_vm2, %v812_v60 }
 0x1c2   : > { %1564 = shalt.err (!%p1561_p11)
}
 0x1c3   : > { %s1565_s15 = scalar_lea.hbm %s2292_s30, 16  ;;  %s1569_s12 = scalar_lea.hbm %s2383_s5, 32 }
 0x1c4   : > { %p1566_p13 = scmp.ne.s32.totalorder %s2292_s30, %s1565_s15  ;;  %p1570_p5 = scmp.lt.u32.totalorder %s2292_s30, %s2383_s5 }
 0x1c5   : > { %p1571_p7 = scmp.lt.u32.totalorder %s1569_s12, %s1565_s15  ;;  %p1573_p0 = scmp.lt.u32.totalorder %s1565_s15, %s2292_s30 }
 0x1c6   : > { %p1567_p6 = pnand %p1566_p13, %p1874_p10 }
 0x1c7   : > { %p1572_p9 = por %p1571_p7, %p1570_p5 }
 0x1c8   : > { %p1568_p3 = pneg %p1567_p6 }
 0x1c9   : > { %p1574_p2 = por %p1573_p0, %p1572_p9 }
 0x1cb   : > { %p1575_p4 = pnand %p1574_p2, %p1568_p3 }
 0x1cd   : > { %1578 = shalt.err (!%p1575_p4)
}
 0x1ce   : > { %1317 = dma.vmem_to_hbm [thread:$0]  (%p1874_p10), %s2294_s14, 16, %s2292_s30, %s2304_s7   ;;  %916 = vst.msk [vmem:[%s348_s8] sm:$0x1] %vm813_vm2, %v915_v35 }
 0x1cf   : > { %s1579_s16 = scalar_lea.vmem %s2302_s9, 16  ;;  %s1685_s28 = smov [#allocation13]  }
 0x1d0   : > { %p1580_p8 = scmp.ne.s32.totalorder %s2302_s9, %s1579_s16  ;;  %s1583_s18 = sshll.u32 %s1685_s28, 4  ;;  %s1584_s18 = int_to_ptr.vmem [resolvable:$false] %s1583_s18 }
 0x1d1   : > { %s1585_s13 = scalar_lea.vmem %s1584_s18, 32  ;;  %p1586_p11 = scmp.lt.s32.totalorder %s2302_s9, %s1584_s18 }
 0x1d2   : > { %p1581_p12 = pnand %p1580_p8, %p1874_p10  ;;  %p1587_p13 = scmp.lt.s32.totalorder %s1585_s13, %s1579_s16 }
 0x1d4   : > { %p1582_p1 = pneg %p1581_p12  ;;  %p1588_p6 = por %p1587_p13, %p1586_p11 }
 0x1d6   : > { %p1589_p3 = pnand %p1588_p6, %p1582_p1 }
 0x1d8   : > { %1592 = shalt.err (!%p1589_p3)
}
 0x1d9   : > { %s1593_s19 = scalar_lea.hbm %s2300_s29, 16  ;;  %s1597_s30 = scalar_lea.hbm %s2384_s6, 32 }
 0x1da   : > { %p1594_p5 = scmp.ne.s32.totalorder %s2300_s29, %s1593_s19  ;;  %p1598_p0 = scmp.lt.u32.totalorder %s2300_s29, %s2384_s6 }
 0x1db   : > { %p1599_p2 = scmp.lt.u32.totalorder %s1597_s30, %s1593_s19  ;;  %p1601_p8 = scmp.lt.u32.totalorder %s1593_s19, %s2300_s29 }
 0x1dc   : > { %p1595_p7 = pnand %p1594_p5, %p1874_p10 }
 0x1dd   : > { %p1600_p4 = por %p1599_p2, %p1598_p0 }
 0x1de   : > { %p1596_p9 = pneg %p1595_p7 }
 0x1df   : > { %p1602_p12 = por %p1601_p8, %p1600_p4 }
 0x1e1   : > { %p1603_p1 = pnand %p1602_p12, %p1596_p9 }
 0x1e3   : > { %1606 = shalt.err (!%p1603_p1)
}
 0x1e4   : > { %1318 = dma.vmem_to_hbm [thread:$0]  (%p1874_p10), %s2302_s9, 16, %s2300_s29, %s2304_s7  }
 0x1e5 PF: > { %s2407_s20 = sld [smem:[#allocation19_spill]]  ;;  %s2408_s12 = sld [smem:[#allocation20_spill]] }
 0x1e6   : > { %p2410_p13 = scmp.ge.s32.totalorder %s1673_s26, 2 }
 0x1eb   : > { %s985_s24 = sand.u32 1, %s2407_s20   ;;  %p2409_p11 = scmp.ne.s32.totalorder %s2408_s12, 0 }
 0x1ec   : > { %s986_s27 = scalar_lea.sflag [#allocation4], %s985_s24 }
 0x1ed   : > { %p1337_p6 = pnand %p2410_p13, %p2409_p11 }
 0x1ef   : > { %1644 = dma.done.wait (!%p1337_p6), %s986_s27, 4096  }
 0x1f0   : > { %1646 = vsyncadd (!%p1337_p6), %s986_s27, 4294963200  ;;  %s2411_s16 = sadd.s32 4294967294, %s1673_s26  }
 0x1f1   : > { %s994_s28 = sand.u32 1, %s2411_s16  }
 0x1f2   : > { %s995_s18 = scalar_lea.sflag [#allocation12], %s994_s28 }
 0x1f3   : > { %1648 = dma.done.wait (!%p1337_p6), %s995_s18, 32  }
 0x1f4   : > { %1650 = vsyncadd (!%p1337_p6), %s995_s18, 4294967264  ;;  %s28_s26 = sadd.s32 1, %s1673_s26   ;;  %s2412_s21 = smov %s1657_s22 }
 0x1f5   : > { %p25_p10 = scmp.ge.s32.totalorder %s28_s26, 4   ;;  %s2413_s22 = smov %s1661_s23 }
 0x1f6   : > { %s2414_s23 = smov %s1886_s11  ;;  %s2415_s24 = smov %s1669_s25 }
 0x1f7   : > { %s2416_s25 = smov %s2418_s17  ;;  %27 = sbr.rel (!%p25_p10) target bundleno = 10 (0xa), region = 125 }
 0x1fe   :  { %1007 = vsyncpa [#allocation3], 1 }
 0x1ff   :  { %1009 = vsyncpa [#allocation3 + $0x1], 1 }
 0x200   :  { %1010 = vsyncpa [#allocation6], 1 }
 0x201   :  { %1011 = vsyncpa [#allocation9], 1 }
 0x202   :  { %1012 = vsyncpa [#allocation4], 1 }
 0x203   :  { %1014 = vsyncpa [#allocation4 + $0x1], 1 }
 0x204   :  { %1015 = vsyncpa [#allocation12], 1 }
 0x205   :  { %1017 = vsyncpa [#allocation12 + $0x1], 1 }

// kernel: bottleneck_forward.7
= control target key start
LH: loop header
LB: loop body
LE: loop exit
PB: predicated region body
PF: predicated region fallthrough
CT: control target
= control target key end

     0   :  { %s1576_s0 = inlined_call_operand.hbm [shape: f32[2,16,16,32], index: 0, kind: input, shape index: {}]   ;;  %s1577_s1 = inlined_call_operand.hbm [shape: f32[2,16,16,32], index: 1, kind: input, shape index: {}]   ;;  %s1578_s2 = inlined_call_operand.hbm [shape: f32[1,32], index: 2, kind: input, shape index: {}]   ;;  %s1579_s3 = inlined_call_operand.hbm [shape: f32[1,32], index: 3, kind: input, shape index: {}]   ;;  %s1580_s4 = inlined_call_operand.hbm [shape: f32[2,16,16,32], index: 4, kind: output, shape index: {}]  }
   0x1   :  { %1587 = sst [smem:[#allocation16_spill]] %s1576_s0 }
   0x2   :  { %1588 = sst [smem:[#allocation17_spill]] %s1578_s2 }
   0x3   :  { %1589 = sst [smem:[#allocation18_spill]] %s1579_s3 }
   0x4   :  { %9 = vsyncpa [#allocation3], 0 }
   0x5   :  { %11 = vsyncpa [#allocation3 + $0x1], 0 }
   0x6   :  { %12 = vsyncpa [#allocation6], 0 }
   0x7   :  { %14 = vsyncpa [#allocation6 + $0x1], 0 }
   0x8   :  { %15 = vsyncpa [#allocation9], 0 }
   0x9   :  { %16 = vsyncpa [#allocation4], 0 }
   0xa   :  { %18 = vsyncpa [#allocation4 + $0x1], 0  ;;  %s1062_s15 = smov 0   ;;  %s1064_s16 = smov 0  }
   0xb   :  { %s1066_s17 = smov 0   ;;  %s1068_s18 = smov 0  }
   0xc   :  { %s1070_s19 = smov 0   ;;  %s1072_s20 = smov 0  }
   0xd LB: > { %s1093_s21 = sadd.s32 4294967295, %s1026_s20   ;;  %s697_s22 = sadd.s32 4294967294, %s1026_s20   ;;  %s1026_s20 = sphi %s1072_s20, %s24_s20   ;;  %s1022_s19 = sphi %s1070_s19, %s1615_s19   ;;  %s1018_s18 = sphi %s1068_s18, %s1614_s18   ;;  %s1014_s17 = sphi %s1066_s17, %s1613_s17   ;;  %s1010_s16 = sphi %s1064_s16, %s1612_s16   ;;  %s1006_s15 = sphi %s1062_s15, %s1611_s15  }
   0xe   : > { %s45_s23 = sadd.s32 1, %s1014_s17  ;;  %p52_p0 = scmp.ne.s32.totalorder %s1014_s17, %s1010_s16 }
   0xf   : > { %p53_p1 = scmp.eq.s32.totalorder %s1026_s20, 0  ;;  %p58_p2 = scmp.ne.s32.totalorder %s1010_s16, %s1006_s15 }
  0x10   : > { %p1581_p3 = scmp.eq.s32.totalorder %s1093_s21, 0  ;;  %p154_p4 = scmp.eq.s32.totalorder %s1093_s21, 1 }
  0x11   : > { %p1104_p5 = por %p53_p1, %p52_p0  ;;  %p160_p6 = scmp.eq.s32.totalorder %s697_s22, 1 }
  0x12   : > { %p1110_p7 = por %p1581_p3, %p58_p2  ;;  %p1114_p8 = por %p154_p4, %p52_p0 }
  0x13   : > { %p1118_p9 = por %p160_p6, %p58_p2  ;;  %p698_p10 = scmp.ge.s32.totalorder %s1026_s20, 1 }
  0x14   : > { %s1591_s25 = scalar_select %p1110_p7, 1, 0 }
  0x15   : > { %s1592_s26 = scalar_select %p1114_p8, 1, 0 }
  0x16   : > { %s1593_s27 = scalar_select %p1118_p9, 1, 0 }
  0x17   : > { %p167_p11 = scmp.lt.s32.totalorder %s1026_s20, 3  ;;  %s1028_s29 = smov [#allocation7]  }
  0x18   : > { %s180_s30 = sshll.u32 %s1028_s29, 4  ;;  %p758_p1 = scmp.lt.s32.totalorder %s1026_s20, 2  ;;  %s181_s30 = int_to_ptr.vmem [resolvable:$true] %s180_s30 }
  0x19   : > { %p1125_p13 = pnand %p698_p10, %p167_p11  ;;  %s1029_s6 = smov [#allocation8]  }
  0x1a   : > { %p1134_p4 = pnand %p758_p1, %p1104_p5  ;;  %s191_s7 = sshll.u32 %s1029_s6, 4  ;;  %s1144_s7 = int_to_ptr.vmem [resolvable:$true] %s191_s7 }
  0x1b   : > { %s1594_s28 = scalar_select %p1125_p13, 1, 0 }
  0x1c   : > { %p738_p0 = pneg %p1125_p13  ;;  %s1597_s2 = sld [smem:[#allocation17_spill]] }
  0x1d   : > { %s1595_s5 = scalar_select %p1134_p4, 1, 0 }
  0x1e   : > { %p1140_p2 = pnand %p738_p0, %p1581_p3 }
  0x20   : > { %p818_p6 = pneg %p1140_p2 }
  0x22   : > { %s816_s11 = scalar_lea.hbm %s1597_s2, 16 }
  0x23   : > { %p817_p5 = scmp.ne.s32.totalorder %s1597_s2, %s816_s11  ;;  %p823_p1 = scmp.lt.u32.totalorder %s816_s11, %s1597_s2 }
  0x25   : > { %p819_p10 = pnand %p818_p6, %p817_p5 }
  0x27   : > { %p820_p11 = pneg %p819_p10 }
  0x29   : > { %p825_p0 = pnand %p823_p1, %p820_p11 }
  0x2b   : > { %828 = shalt.err (!%p825_p0)
}
  0x2c   : > { %s829_s24 = scalar_lea.vmem %s181_s30, 16  ;;  %s836_s29 = scalar_lea.vmem %s181_s30, 32 }
  0x2d   : > { %p830_p12 = scmp.ne.s32.totalorder %s181_s30, %s829_s24  ;;  %p837_p8 = scmp.lt.s32.totalorder %s181_s30, %s181_s30 }
  0x2e   : > { %p838_p7 = scmp.lt.s32.totalorder %s836_s29, %s829_s24 }
  0x2f   : > { %p832_p3 = pnand %p830_p12, %p818_p6 }
  0x30   : > { %p839_p13 = por %p838_p7, %p837_p8 }
  0x31   : > { %p833_p9 = pneg %p832_p3 }
  0x33   : > { %p840_p4 = pnand %p839_p13, %p833_p9 }
  0x35   : > { %843 = shalt.err (!%p840_p4)
}
  0x36   : > { %741 = dma.hbm_to_vmem [thread:$0]  (!%p1140_p2), %s1597_s2, 16, %s181_s30, [#allocation6]  }
  0x37   : > { %s1598_s3 = sld [smem:[#allocation18_spill]] }
  0x3d   : > { %s844_s12 = scalar_lea.hbm %s1598_s3, 16 }
  0x3e   : > { %p845_p3 = scmp.ne.s32.totalorder %s1598_s3, %s844_s12  ;;  %p851_p9 = scmp.lt.u32.totalorder %s844_s12, %s1598_s3 }
  0x40   : > { %p847_p7 = pnand %p845_p3, %p818_p6 }
  0x42   : > { %p848_p8 = pneg %p847_p7 }
  0x44   : > { %p853_p12 = pnand %p851_p9, %p848_p8 }
  0x46   : > { %856 = shalt.err (!%p853_p12)
}
  0x47   : > { %s857_s30 = scalar_lea.vmem %s1144_s7, 16  ;;  %s864_s29 = scalar_lea.vmem %s1144_s7, 32 }
  0x48   : > { %p858_p13 = scmp.ne.s32.totalorder %s1144_s7, %s857_s30  ;;  %p865_p10 = scmp.lt.s32.totalorder %s1144_s7, %s1144_s7 }
  0x49   : > { %p866_p11 = scmp.lt.s32.totalorder %s864_s29, %s857_s30 }
  0x4a   : > { %p860_p4 = pnand %p858_p13, %p818_p6 }
  0x4b   : > { %p867_p1 = por %p866_p11, %p865_p10 }
  0x4c   : > { %p861_p5 = pneg %p860_p4 }
  0x4e   : > { %p868_p0 = pnand %p867_p1, %p861_p5 }
  0x50   : > { %871 = shalt.err (!%p868_p0)
}
  0x51   : > { %744 = dma.hbm_to_vmem [thread:$0]  (!%p1140_p2), %s1598_s3, 16, %s1144_s7, [#allocation9]  }
  0x52   : > { %s36_s10 = sadd.s32 1, %s1022_s19  ;;  %s202_s11 = sand.u32 1, %s1014_s17  }
  0x53   : > { %p38_p6 = scmp.ge.s32.totalorder %s36_s10, 2  ;;  %s1196_s12 = sshll.u32 %s202_s11, 8 }
  0x54   : > { %s1586_s8 = sshll.u32 %s1022_s19, 12  ;;  %s1599_s0 = sld [smem:[#allocation16_spill]] }
  0x55   : > { %s1617_s10 = smov (%p38_p6, %s36_s10), 0  ;;  %s206_s24 = scalar_lea.vmem [#allocation2], %s1196_s12 }
  0x56   : > { %s40_s7 = ssub.s32 %s1022_s19, %s1617_s10  ;;  %s216_s30 = sshll.u32 %s206_s24, 4  ;;  %s1211_s30 = int_to_ptr.vmem [resolvable:$true] %s216_s30 }
  0x57   : > { %p43_p2 = scmp.eq.s32.totalorder %s40_s7, 0  ;;  %s1218_s6 = scalar_lea.sflag [#allocation3], %s202_s11 }
  0x58   : > { %p1600_p7 = scmp.ne.s32.totalorder %s1595_s5, 0 }
  0x59   : > { %s1216_s29 = scalar_select %p43_p2, %s1014_s17, %s45_s23  }
  0x5a   : > { %s1206_s22 = scalar_lea.hbm %s1599_s0, %s1586_s8  ;;  %p874_p8 = pneg %p1600_p7 }
  0x5b   : > { %s872_s9 = scalar_lea.hbm %s1206_s22, 4096  ;;  %s877_s24 = scalar_lea.hbm %s1599_s0, 8192 }
  0x5c   : > { %p873_p3 = scmp.ne.s32.totalorder %s1206_s22, %s872_s9  ;;  %p878_p13 = scmp.lt.u32.totalorder %s1206_s22, %s1599_s0 }
  0x5d   : > { %p879_p4 = scmp.lt.u32.totalorder %s877_s24, %s872_s9  ;;  %p881_p10 = scmp.lt.u32.totalorder %s872_s9, %s1206_s22 }
  0x5e   : > { %p875_p9 = pnand %p874_p8, %p873_p3 }
  0x5f   : > { %p880_p5 = por %p879_p4, %p878_p13 }
  0x60   : > { %p876_p12 = pneg %p875_p9 }
  0x61   : > { %p882_p11 = por %p881_p10, %p880_p5 }
  0x63   : > { %p883_p1 = pnand %p882_p11, %p876_p12 }
  0x65   : > { %886 = shalt.err (!%p883_p1)
}
  0x66   : > { %s887_s23 = scalar_lea.vmem %s1211_s30, 4096  ;;  %s1030_s11 = smov [#allocation2]  }
  0x67   : > { %p888_p0 = scmp.ne.s32.totalorder %s1211_s30, %s887_s23  ;;  %s892_s13 = sshll.u32 %s1030_s11, 4  ;;  %s893_s13 = int_to_ptr.vmem [resolvable:$false] %s892_s13 }
  0x68   : > { %s894_s8 = scalar_lea.vmem %s893_s13, 8192  ;;  %p895_p3 = scmp.lt.s32.totalorder %s1211_s30, %s893_s13 }
  0x69   : > { %p890_p6 = pnand %p888_p0, %p874_p8  ;;  %p896_p9 = scmp.lt.s32.totalorder %s894_s8, %s887_s23 }
  0x6b   : > { %p891_p2 = pneg %p890_p6  ;;  %p897_p13 = por %p896_p9, %p895_p3 }
  0x6d   : > { %p898_p4 = pnand %p897_p13, %p891_p2 }
  0x6f   : > { %901 = shalt.err (!%p898_p4)
}
  0x70   : > { %s1031_s9 = smov 128   ;;  %s1032_s14 = smov 8  }
  0x71   : > { %748 = dma.hbm_to_vmem [thread:$0]  (!%p1600_p7), %s1206_s22, 4096, %s1211_s30, %s1218_s6, %s1031_s9, %s1031_s9, %s1032_s14  }
  0x72   : > { %s1601_s24 = sshll.u32 %s1022_s19, 12  ;;  %s230_s13 = scalar_lea.vmem [#allocation5], %s1196_s12 }
  0x73   : > { %s1254_s11 = scalar_lea.hbm %s1577_s1, %s1601_s24  ;;  %s240_s8 = sshll.u32 %s230_s13, 4  ;;  %s1258_s8 = int_to_ptr.vmem [resolvable:$true] %s240_s8 }
  0x74   : > { %s226_s0 = sand.u32 1, %s1026_s20   ;;  %s902_s3 = scalar_lea.hbm %s1254_s11, 4096 }
  0x75   : > { %s1260_s2 = scalar_lea.sflag [#allocation6], %s226_s0  ;;  %p903_p12 = scmp.ne.s32.totalorder %s1254_s11, %s902_s3 }
  0x76   : > { %s907_s6 = scalar_lea.hbm %s1577_s1, 8192  ;;  %p908_p11 = scmp.lt.u32.totalorder %s1254_s11, %s1577_s1 }
  0x77   : > { %p905_p5 = pnand %p903_p12, %p874_p8  ;;  %p909_p1 = scmp.lt.u32.totalorder %s907_s6, %s902_s3 }
  0x78   : > { %p911_p6 = scmp.lt.u32.totalorder %s902_s3, %s1254_s11 }
  0x79   : > { %p906_p10 = pneg %p905_p5  ;;  %p910_p0 = por %p909_p1, %p908_p11 }
  0x7b   : > { %p912_p2 = por %p911_p6, %p910_p0 }
  0x7d   : > { %p913_p3 = pnand %p912_p2, %p906_p10 }
  0x7f   : > { %916 = shalt.err (!%p913_p3)
}
  0x80   : > { %s917_s0 = scalar_lea.vmem %s1258_s8, 4096  ;;  %s1033_s12 = smov [#allocation5]  }
  0x81   : > { %p918_p9 = scmp.ne.s32.totalorder %s1258_s8, %s917_s0  ;;  %s922_s23 = sshll.u32 %s1033_s12, 4  ;;  %s923_s23 = int_to_ptr.vmem [resolvable:$false] %s922_s23 }
  0x82   : > { %s924_s13 = scalar_lea.vmem %s923_s23, 8192  ;;  %p925_p12 = scmp.lt.s32.totalorder %s1258_s8, %s923_s23 }
  0x83   : > { %p920_p13 = pnand %p918_p9, %p874_p8  ;;  %p926_p5 = scmp.lt.s32.totalorder %s924_s13, %s917_s0 }
  0x85   : > { %p921_p4 = pneg %p920_p13  ;;  %p927_p11 = por %p926_p5, %p925_p12 }
  0x87   : > { %p928_p1 = pnand %p927_p11, %p921_p4 }
  0x89   : > { %931 = shalt.err (!%p928_p1)
}
  0x8a   : > { %751 = dma.hbm_to_vmem [thread:$0]  (!%p1600_p7), %s1254_s11, 4096, %s1258_s8, %s1260_s2, %s1031_s9, %s1031_s9, %s1032_s14  }
  0x8b   : > { %p1602_p8 = scmp.ne.s32.totalorder %s1594_s28, 0 }
  0x8c   : > { %s1292_s3 = sand.u32 (!%p1602_p8), 1, %s1010_s16   ;;  %p1603_p10 = scmp.ne.s32.totalorder (!%p1602_p8), %s1591_s25, 0 }
  0x8d   : > { %252 = sbr.rel (%p1602_p8) target bundleno = 213 (0xd5), region = 36  ;;  %s1295_s22 = sshll.u32 (!%p1602_p8), %s1292_s3, 8 }
  0x8e   : > { %s255_s5 = scalar_lea.sflag (!%p1602_p8), [#allocation3], %s1292_s3  ;;  %s1299_s30 = scalar_lea.vmem (!%p1602_p8), [#allocation2], %s1295_s22 }
  0x94   : > { %985 = dma.done.wait (%p1603_p10), %s255_s5, 4096  }
  0x95   : > { %987 = vsyncadd (%p1603_p10), %s255_s5, 4294963200  ;;  %s263_s2 = sand.u32 1, %s1093_s21   ;;  %s1307_s9 = scalar_lea.vmem [#allocation5], %s1295_s22 }
  0x96   : > { %s264_s28 = scalar_lea.sflag [#allocation6], %s263_s2 }
  0x97   : > { %989 = dma.done.wait (%p1603_p10), %s264_s28, 4096  }
  0x98   : > { %991 = vsyncadd (%p1603_p10), %s264_s28, 4294963200  ;;  %p1604_p7 = scmp.eq.s32.totalorder %s1093_s21, 0 }
  0x9a   : > { %993 = dma.done.wait (%p1604_p7), [#allocation6], 16   ;;  %p1605_p0 = pmov %p1604_p7 }
  0x9c   : > { %995 = vsyncadd (%p1605_p0), [#allocation6], 4294967280  ;;  %p1606_p6 = pmov %p1605_p0 }
  0x9d   : > { %p1607_p2 = pmov %p1605_p0 }
  0x9e   : > { %997 = dma.done.wait (%p1606_p6), [#allocation9], 16  }
  0x9f   : > { %999 = vsyncadd (%p1607_p2), [#allocation9], 4294967280  ;;  %v308_v0 = vld [vmem:[%s1299_s30] sm:$0xff]  ;;  %v309_v4 = vld [vmem:[%s1299_s30 + $0x8] sm:$0xff]  ;;  %vm514_vm0 = vcmask 261120   ;;  %s1362_s21 = scalar_lea.vmem [#allocation10], %s1295_s22 }
  0xa0   : > { %v1322_v1 = vld [vmem:[#allocation7] ss:$0 sm:$0xff]  ;;  %v1325_v3 = vld [vmem:[#allocation8] ss:$0 sm:$0xff]  ;;  %v310_v7 = vld [vmem:[%s1299_s30 + $0x10] sm:$0xff]  ;;  %s723_s25 = sshll.u32 %s1018_s18, 12 }
  0xa1   : > { %v379_v2 = vmul.f32 %v1322_v1, %v308_v0  ;;  %v340_v5 = vld [vmem:[%s1307_s9] sm:$0xff]  ;;  %v380_v6 = vmul.f32 %v1322_v1, %v309_v4  ;;  %v311_v8 = vld [vmem:[%s1299_s30 + $0x18] sm:$0xff]  ;;  %v341_v10 = vld [vmem:[%s1307_s9 + $0x8] sm:$0xff]  ;;  %v381_v12 = vmul.f32 %v1322_v1, %v310_v7  ;;  %s564_s14 = sshll.u32 %s1362_s21, 4  ;;  %s1517_s8 = scalar_lea.hbm %s1580_s4, %s723_s25  ;;  %s1519_s14 = int_to_ptr.vmem [resolvable:$true] %s564_s14 }
  0xa2   : > { %v342_v11 = vld [vmem:[%s1307_s9 + $0x10] sm:$0xff]  ;;  %v382_v13 = vmul.f32 %v1322_v1, %v311_v8  ;;  %v312_v14 = vld [vmem:[%s1299_s30 + $0x20] sm:$0xff]  ;;  %v343_v16 = vld [vmem:[%s1307_s9 + $0x18] sm:$0xff]  ;;  %s548_s6 = scalar_lea.sflag [#allocation4], %s1292_s3  ;;  %s932_s24 = scalar_lea.vmem %s1519_s14, 4096 }
  0xa3   : > { %v418_v9 = vadd.f32 %v1325_v3, %v379_v2  ;;  %v419_v15 = vadd.f32 %v1325_v3, %v380_v6  ;;  %v383_v17 = vmul.f32 %v1322_v1, %v312_v14  ;;  %v313_v18 = vld [vmem:[%s1299_s30 + $0x28] sm:$0xff]  ;;  %v314_v19 = vld [vmem:[%s1299_s30 + $0x30] sm:$0xff]  ;;  %v420_v21 = vadd.f32 %v1325_v3, %v381_v12  ;;  %v344_v23 = vld [vmem:[%s1307_s9 + $0x20] sm:$0xff]  ;;  %p933_p3 = scmp.ne.s32.totalorder %s1519_s14, %s932_s24  ;;  %p1608_p9 = scmp.ne.s32.totalorder %s1592_s26, 0 }
  0xa4   : > { %v421_v22 = vadd.f32 %v1325_v3, %v382_v13  ;;  %v384_v24 = vmul.f32 %v1322_v1, %v313_v18  ;;  %v315_v25 = vld [vmem:[%s1299_s30 + $0x38] sm:$0xff]  ;;  %v345_v28 = vld [vmem:[%s1307_s9 + $0x28] sm:$0xff]  ;;  %v385_v29 = vmul.f32 %v1322_v1, %v314_v19  ;;  %v316_v31 = vld [vmem:[%s1299_s30 + $0x40] sm:$0xff]  ;;  %s1034_s7 = smov [#allocation10]  }
  0xa5   : > { %v450_v20 = vadd.f32 %v418_v9, %v340_v5  ;;  %v451_v26 = vadd.f32 %v419_v15, %v341_v10  ;;  %v422_v27 = vadd.f32 %v1325_v3, %v383_v17  ;;  %v386_v30 = vmul.f32 %v1322_v1, %v315_v25  ;;  %v346_v36 = vld [vmem:[%s1307_s9 + $0x30] sm:$0xff]  ;;  %v347_v37 = vld [vmem:[%s1307_s9 + $0x38] sm:$0xff]  ;;  %v317_v38 = vld [vmem:[%s1299_s30 + $0x48] sm:$0xff]  ;;  %p934_p13 = pnand %p933_p3, %p1608_p9  ;;  %s936_s0 = sshll.u32 %s1034_s7, 4  ;;  %s937_s0 = int_to_ptr.vmem [resolvable:$false] %s936_s0 }
  0xa6   : > { %v452_v33 = vadd.f32 %v420_v21, %v342_v11  ;;  %v453_v34 = vadd.f32 %v421_v22, %v343_v16  ;;  %v423_v35 = vadd.f32 %v1325_v3, %v384_v24  ;;  %v424_v41 = vadd.f32 %v1325_v3, %v385_v29  ;;  %v318_v43 = vld [vmem:[%s1299_s30 + $0x50] sm:$0xff]  ;;  %v319_v44 = vld [vmem:[%s1299_s30 + $0x58] sm:$0xff]  ;;  %v320_v49 = vld [vmem:[%s1299_s30 + $0x60] sm:$0xff]  ;;  %s938_s12 = scalar_lea.vmem %s937_s0, 8192  ;;  %p939_p12 = scmp.lt.s32.totalorder %s1519_s14, %s937_s0 }
  0xa7   : > { %v482_v32 = vmax.f32 %v450_v20, 0.0  ;;  %v483_v39 = vmax.f32 %v451_v26, 0.0  ;;  %v454_v40 = vadd.f32 %v422_v27, %v344_v23  ;;  %v425_v42 = vadd.f32 %v1325_v3, %v386_v30  ;;  %v348_v53 = vld [vmem:[%s1307_s9 + $0x40] sm:$0xff]  ;;  %v321_v55 = vld [vmem:[%s1299_s30 + $0x68] sm:$0xff]  ;;  %v322_v61 = vld [vmem:[%s1299_s30 + $0x70] sm:$0xff]  ;;  %p935_p4 = pneg %p934_p13  ;;  %p940_p5 = scmp.lt.s32.totalorder %s938_s12, %s932_s24 }
  0xa8   : > { %v484_v45 = vmax.f32 %v452_v33, 0.0  ;;  %v485_v46 = vmax.f32 %v453_v34, 0.0  ;;  %v455_v47 = vadd.f32 %v423_v35, %v345_v28  ;;  %v387_v48 = vmul.f32 %v1322_v1, %v316_v31  ;;  %v349_v58 = vld [vmem:[%s1307_s9 + $0x48] sm:$0xff]  ;;  %v323_v62 = vld [vmem:[%s1299_s30 + $0x78] sm:$0xff]  ;;  %v350_v4 = vld [vmem:[%s1307_s9 + $0x50] sm:$0xff] }
  0xa9   : > { %515 = vst.msk [vmem:[%s1362_s21] sm:$0xff] %vm514_vm0, %v482_v32  ;;  %516 = vst.msk [vmem:[%s1362_s21 + $0x8] sm:$0xff] %vm514_vm0, %v483_v39  ;;  %v486_v50 = vmax.f32 %v454_v40, 0.0  ;;  %v456_v51 = vadd.f32 %v424_v41, %v346_v36  ;;  %v457_v52 = vadd.f32 %v425_v42, %v347_v37  ;;  %v388_v54 = vmul.f32 %v1322_v1, %v317_v38  ;;  %v351_v5 = vld [vmem:[%s1307_s9 + $0x58] sm:$0xff]  ;;  %v352_v10 = vld [vmem:[%s1307_s9 + $0x60] sm:$0xff]  ;;  %p941_p11 = por %p940_p5, %p939_p12 }
  0xaa   : > { %517 = vst.msk [vmem:[%s1362_s21 + $0x10] sm:$0xff] %vm514_vm0, %v484_v45  ;;  %518 = vst.msk [vmem:[%s1362_s21 + $0x18] sm:$0xff] %vm514_vm0, %v485_v46  ;;  %v487_v56 = vmax.f32 %v455_v47, 0.0  ;;  %v426_v57 = vadd.f32 %v1325_v3, %v387_v48  ;;  %v389_v59 = vmul.f32 %v1322_v1, %v318_v43  ;;  %v390_v60 = vmul.f32 %v1322_v1, %v319_v44  ;;  %v353_v14 = vld [vmem:[%s1307_s9 + $0x68] sm:$0xff]  ;;  %v324_v17 = vld [vmem:[%s1299_s30 + $0x80] sm:$0xff] }
  0xab   : > { %519 = vst.msk [vmem:[%s1362_s21 + $0x20] sm:$0xff] %vm514_vm0, %v486_v50  ;;  %v488_v63 = vmax.f32 %v456_v51, 0.0  ;;  %v489_v0 = vmax.f32 %v457_v52, 0.0  ;;  %v427_v2 = vadd.f32 %v1325_v3, %v388_v54  ;;  %v391_v6 = vmul.f32 %v1322_v1, %v320_v49  ;;  %v354_v22 = vld [vmem:[%s1307_s9 + $0x70] sm:$0xff]  ;;  %v355_v23 = vld [vmem:[%s1307_s9 + $0x78] sm:$0xff]  ;;  %v325_v24 = vld [vmem:[%s1299_s30 + $0x88] sm:$0xff]  ;;  %p942_p1 = pnand %p941_p11, %p935_p4 }
  0xac   : > { %520 = vst.msk [vmem:[%s1362_s21 + $0x28] sm:$0xff] %vm514_vm0, %v487_v56  ;;  %v458_v7 = vadd.f32 %v426_v57, %v348_v53  ;;  %v428_v8 = vadd.f32 %v1325_v3, %v389_v59  ;;  %v429_v9 = vadd.f32 %v1325_v3, %v390_v60  ;;  %v392_v11 = vmul.f32 %v1322_v1, %v321_v55  ;;  %v326_v29 = vld [vmem:[%s1299_s30 + $0x90] sm:$0xff]  ;;  %v327_v30 = vld [vmem:[%s1299_s30 + $0x98] sm:$0xff]  ;;  %v328_v35 = vld [vmem:[%s1299_s30 + $0xa0] sm:$0xff] }
  0xad   : > { %521 = vst.msk [vmem:[%s1362_s21 + $0x30] sm:$0xff] %vm514_vm0, %v488_v63  ;;  %522 = vst.msk [vmem:[%s1362_s21 + $0x38] sm:$0xff] %vm514_vm0, %v489_v0  ;;  %v459_v12 = vadd.f32 %v427_v2, %v349_v58  ;;  %v430_v13 = vadd.f32 %v1325_v3, %v391_v6  ;;  %v393_v15 = vmul.f32 %v1322_v1, %v322_v61  ;;  %v356_v39 = vld [vmem:[%s1307_s9 + $0x80] sm:$0xff]  ;;  %v329_v41 = vld [vmem:[%s1299_s30 + $0xa8] sm:$0xff] }
  0xae   : > { %v394_v16 = vmul.f32 %v1322_v1, %v323_v62  ;;  %v490_v18 = vmax.f32 %v458_v7, 0.0  ;;  %v460_v19 = vadd.f32 %v428_v8, %v350_v4  ;;  %v461_v20 = vadd.f32 %v429_v9, %v351_v5  ;;  %v357_v44 = vld [vmem:[%s1307_s9 + $0x88] sm:$0xff]  ;;  %v330_v47 = vld [vmem:[%s1299_s30 + $0xb0] sm:$0xff]  ;;  %v331_v48 = vld [vmem:[%s1299_s30 + $0xb8] sm:$0xff] }
  0xaf   : > { %v431_v21 = vadd.f32 %v1325_v3, %v392_v11  ;;  %v491_v25 = vmax.f32 %v459_v12, 0.0  ;;  %v462_v26 = vadd.f32 %v430_v13, %v352_v10  ;;  %v432_v27 = vadd.f32 %v1325_v3, %v393_v15  ;;  %v358_v52 = vld [vmem:[%s1307_s9 + $0x90] sm:$0xff]  ;;  %v359_v53 = vld [vmem:[%s1307_s9 + $0x98] sm:$0xff]  ;;  %v360_v58 = vld [vmem:[%s1307_s9 + $0xa0] sm:$0xff] }
  0xb0   : > { %v433_v28 = vadd.f32 %v1325_v3, %v394_v16  ;;  %523 = vst.msk [vmem:[%s1362_s21 + $0x40] sm:$0xff] %vm514_vm0, %v490_v18  ;;  %v492_v31 = vmax.f32 %v460_v19, 0.0  ;;  %v493_v32 = vmax.f32 %v461_v20, 0.0  ;;  %v395_v34 = vmul.f32 %v1322_v1, %v324_v17  ;;  %v361_v62 = vld [vmem:[%s1307_s9 + $0xa8] sm:$0xff]  ;;  %v332_v2 = vld [vmem:[%s1299_s30 + $0xc0] sm:$0xff]  ;;  %v362_v8 = vld [vmem:[%s1307_s9 + $0xb0] sm:$0xff] }
  0xb1   : > { %v463_v33 = vadd.f32 %v431_v21, %v353_v14  ;;  %524 = vst.msk [vmem:[%s1362_s21 + $0x48] sm:$0xff] %vm514_vm0, %v491_v25  ;;  %v494_v36 = vmax.f32 %v462_v26, 0.0  ;;  %v464_v37 = vadd.f32 %v432_v27, %v354_v22  ;;  %v396_v40 = vmul.f32 %v1322_v1, %v325_v24  ;;  %v363_v9 = vld [vmem:[%s1307_s9 + $0xb8] sm:$0xff]  ;;  %v333_v10 = vld [vmem:[%s1299_s30 + $0xc8] sm:$0xff]  ;;  %v334_v15 = vld [vmem:[%s1299_s30 + $0xd0] sm:$0xff] }
  0xb2   : > { %v465_v38 = vadd.f32 %v433_v28, %v355_v23  ;;  %525 = vst.msk [vmem:[%s1362_s21 + $0x50] sm:$0xff] %vm514_vm0, %v492_v31  ;;  %526 = vst.msk [vmem:[%s1362_s21 + $0x58] sm:$0xff] %vm514_vm0, %v493_v32  ;;  %v434_v43 = vadd.f32 %v1325_v3, %v395_v34  ;;  %v397_v45 = vmul.f32 %v1322_v1, %v326_v29  ;;  %v335_v16 = vld [vmem:[%s1299_s30 + $0xd8] sm:$0xff]  ;;  %v336_v21 = vld [vmem:[%s1299_s30 + $0xe0] sm:$0xff] }
  0xb3   : > { %v495_v42 = vmax.f32 %v463_v33, 0.0  ;;  %v398_v46 = vmul.f32 %v1322_v1, %v327_v30  ;;  %527 = vst.msk [vmem:[%s1362_s21 + $0x60] sm:$0xff] %vm514_vm0, %v494_v36  ;;  %v496_v49 = vmax.f32 %v464_v37, 0.0  ;;  %v435_v51 = vadd.f32 %v1325_v3, %v396_v40  ;;  %v364_v25 = vld [vmem:[%s1307_s9 + $0xc0] sm:$0xff]  ;;  %v337_v27 = vld [vmem:[%s1299_s30 + $0xe8] sm:$0xff]  ;;  %v338_v33 = vld [vmem:[%s1299_s30 + $0xf0] sm:$0xff] }
  0xb4   : > { %v497_v50 = vmax.f32 %v465_v38, 0.0  ;;  %v399_v54 = vmul.f32 %v1322_v1, %v328_v35  ;;  %v466_v55 = vadd.f32 %v434_v43, %v356_v39  ;;  %v436_v56 = vadd.f32 %v1325_v3, %v397_v45  ;;  %v365_v30 = vld [vmem:[%s1307_s9 + $0xc8] sm:$0xff]  ;;  %v339_v34 = vld [vmem:[%s1299_s30 + $0xf8] sm:$0xff]  ;;  %v366_v38 = vld [vmem:[%s1307_s9 + $0xd0] sm:$0xff] }
  0xb5   : > { %528 = vst.msk [vmem:[%s1362_s21 + $0x68] sm:$0xff] %vm514_vm0, %v495_v42  ;;  %v437_v57 = vadd.f32 %v1325_v3, %v398_v46  ;;  %v400_v59 = vmul.f32 %v1322_v1, %v329_v41  ;;  %529 = vst.msk [vmem:[%s1362_s21 + $0x70] sm:$0xff] %vm514_vm0, %v496_v49  ;;  %v467_v60 = vadd.f32 %v435_v51, %v357_v44  ;;  %v367_v39 = vld [vmem:[%s1307_s9 + $0xd8] sm:$0xff]  ;;  %v368_v44 = vld [vmem:[%s1307_s9 + $0xe0] sm:$0xff] }
  0xb6   : > { %530 = vst.msk [vmem:[%s1362_s21 + $0x78] sm:$0xff] %vm514_vm0, %v497_v50  ;;  %v438_v61 = vadd.f32 %v1325_v3, %v399_v54  ;;  %v401_v63 = vmul.f32 %v1322_v1, %v330_v47  ;;  %v402_v0 = vmul.f32 %v1322_v1, %v331_v48  ;;  %v498_v4 = vmax.f32 %v466_v55, 0.0  ;;  %v369_v48 = vld [vmem:[%s1307_s9 + $0xe8] sm:$0xff]  ;;  %v370_v55 = vld [vmem:[%s1307_s9 + $0xf0] sm:$0xff] }
  0xb7   : > { %v468_v5 = vadd.f32 %v436_v56, %v358_v52  ;;  %v469_v6 = vadd.f32 %v437_v57, %v359_v53  ;;  %v439_v7 = vadd.f32 %v1325_v3, %v400_v59  ;;  %v499_v11 = vmax.f32 %v467_v60, 0.0  ;;  %v371_v56 = vld [vmem:[%s1307_s9 + $0xf8] sm:$0xff] }
  0xb8   : > { %v470_v12 = vadd.f32 %v438_v61, %v360_v58  ;;  %v440_v13 = vadd.f32 %v1325_v3, %v401_v63  ;;  %v441_v14 = vadd.f32 %v1325_v3, %v402_v0  ;;  %531 = vst.msk [vmem:[%s1362_s21 + $0x80] sm:$0xff] %vm514_vm0, %v498_v4  ;;  %v403_v20 = vmul.f32 %v1322_v1, %v332_v2 }
  0xb9   : > { %v500_v17 = vmax.f32 %v468_v5, 0.0  ;;  %v501_v18 = vmax.f32 %v469_v6, 0.0  ;;  %v471_v19 = vadd.f32 %v439_v7, %v361_v62  ;;  %532 = vst.msk [vmem:[%s1362_s21 + $0x88] sm:$0xff] %vm514_vm0, %v499_v11  ;;  %v404_v26 = vmul.f32 %v1322_v1, %v333_v10 }
  0xba   : > { %v502_v22 = vmax.f32 %v470_v12, 0.0  ;;  %v472_v23 = vadd.f32 %v440_v13, %v362_v8  ;;  %v473_v24 = vadd.f32 %v441_v14, %v363_v9  ;;  %v442_v29 = vadd.f32 %v1325_v3, %v403_v20 }
  0xbb   : > { %533 = vst.msk [vmem:[%s1362_s21 + $0x90] sm:$0xff] %vm514_vm0, %v500_v17  ;;  %534 = vst.msk [vmem:[%s1362_s21 + $0x98] sm:$0xff] %vm514_vm0, %v501_v18  ;;  %v503_v28 = vmax.f32 %v471_v19, 0.0  ;;  %v405_v31 = vmul.f32 %v1322_v1, %v334_v15  ;;  %v406_v32 = vmul.f32 %v1322_v1, %v335_v16  ;;  %v443_v37 = vadd.f32 %v1325_v3, %v404_v26 }
  0xbc   : > { %535 = vst.msk [vmem:[%s1362_s21 + $0xa0] sm:$0xff] %vm514_vm0, %v502_v22  ;;  %v504_v35 = vmax.f32 %v472_v23, 0.0  ;;  %v505_v36 = vmax.f32 %v473_v24, 0.0  ;;  %v407_v40 = vmul.f32 %v1322_v1, %v336_v21  ;;  %v474_v41 = vadd.f32 %v442_v29, %v364_v25 }
  0xbd   : > { %536 = vst.msk [vmem:[%s1362_s21 + $0xa8] sm:$0xff] %vm514_vm0, %v503_v28  ;;  %v444_v42 = vadd.f32 %v1325_v3, %v405_v31  ;;  %v445_v43 = vadd.f32 %v1325_v3, %v406_v32  ;;  %v408_v45 = vmul.f32 %v1322_v1, %v337_v27  ;;  %v475_v46 = vadd.f32 %v443_v37, %v365_v30 }
  0xbe   : > { %537 = vst.msk [vmem:[%s1362_s21 + $0xb0] sm:$0xff] %vm514_vm0, %v504_v35  ;;  %538 = vst.msk [vmem:[%s1362_s21 + $0xb8] sm:$0xff] %vm514_vm0, %v505_v36  ;;  %v446_v47 = vadd.f32 %v1325_v3, %v407_v40  ;;  %v409_v49 = vmul.f32 %v1322_v1, %v338_v33  ;;  %v410_v50 = vmul.f32 %v1322_v1, %v339_v34  ;;  %v506_v51 = vmax.f32 %v474_v41, 0.0 }
  0xbf   : > { %v476_v52 = vadd.f32 %v444_v42, %v366_v38  ;;  %v477_v53 = vadd.f32 %v445_v43, %v367_v39  ;;  %v447_v54 = vadd.f32 %v1325_v3, %v408_v45  ;;  %v507_v57 = vmax.f32 %v475_v46, 0.0 }
  0xc0   : > { %v478_v58 = vadd.f32 %v446_v47, %v368_v44  ;;  %v448_v59 = vadd.f32 %v1325_v3, %v409_v49  ;;  %v449_v60 = vadd.f32 %v1325_v3, %v410_v50  ;;  %539 = vst.msk [vmem:[%s1362_s21 + $0xc0] sm:$0xff] %vm514_vm0, %v506_v51 }
  0xc1   : > { %v508_v1 = vmax.f32 %v476_v52, 0.0  ;;  %v509_v61 = vmax.f32 %v477_v53, 0.0  ;;  %v479_v62 = vadd.f32 %v447_v54, %v369_v48  ;;  %540 = vst.msk [vmem:[%s1362_s21 + $0xc8] sm:$0xff] %vm514_vm0, %v507_v57 }
  0xc2   : > { %v510_v63 = vmax.f32 %v478_v58, 0.0  ;;  %v480_v0 = vadd.f32 %v448_v59, %v370_v55  ;;  %v481_v2 = vadd.f32 %v449_v60, %v371_v56 }
  0xc3   : > { %541 = vst.msk [vmem:[%s1362_s21 + $0xd0] sm:$0xff] %vm514_vm0, %v508_v1  ;;  %542 = vst.msk [vmem:[%s1362_s21 + $0xd8] sm:$0xff] %vm514_vm0, %v509_v61  ;;  %v511_v3 = vmax.f32 %v479_v62, 0.0 }
  0xc4   : > { %543 = vst.msk [vmem:[%s1362_s21 + $0xe0] sm:$0xff] %vm514_vm0, %v510_v63  ;;  %v512_v4 = vmax.f32 %v480_v0, 0.0  ;;  %v513_v5 = vmax.f32 %v481_v2, 0.0 }
  0xc5   : > { %544 = vst.msk [vmem:[%s1362_s21 + $0xe8] sm:$0xff] %vm514_vm0, %v511_v3 }
  0xc6   : > { %545 = vst.msk [vmem:[%s1362_s21 + $0xf0] sm:$0xff] %vm514_vm0, %v512_v4  ;;  %546 = vst.msk [vmem:[%s1362_s21 + $0xf8] sm:$0xff] %vm514_vm0, %v513_v5 }
  0xc7   : > { %945 = shalt.err (!%p942_p1)
}
  0xc8   : > { %s946_s23 = scalar_lea.hbm %s1517_s8, 4096  ;;  %s950_s5 = scalar_lea.hbm %s1580_s4, 8192 }
  0xc9   : > { %p947_p8 = scmp.ne.s32.totalorder %s1517_s8, %s946_s23  ;;  %p951_p0 = scmp.lt.u32.totalorder %s1517_s8, %s1580_s4 }
  0xca   : > { %p952_p6 = scmp.lt.u32.totalorder %s950_s5, %s946_s23  ;;  %p954_p3 = scmp.lt.u32.totalorder %s946_s23, %s1517_s8 }
  0xcb   : > { %p948_p10 = pnand %p947_p8, %p1608_p9 }
  0xcc   : > { %p953_p2 = por %p952_p6, %p951_p0 }
  0xcd   : > { %p949_p7 = pneg %p948_p10 }
  0xce   : > { %p955_p13 = por %p954_p3, %p953_p2 }
  0xd0   : > { %p956_p4 = pnand %p955_p13, %p949_p7 }
  0xd2   : > { %959 = shalt.err (!%p956_p4)
}
  0xd3   : > { %s1035_s28 = smov 128   ;;  %s1036_s9 = smov 8  }
  0xd4   : > { %736 = dma.vmem_to_hbm [thread:$0]  (%p1608_p9), %s1519_s14, 4096, %s1517_s8, %s548_s6, %s1035_s28, %s1035_s28, %s1036_s9  }
  0xd5 PF: > { %s579_s21 = sand.u32 1, %s1006_s15   ;;  %p1609_p12 = scmp.ne.s32.totalorder %s1593_s27, 0 }
  0xd6   : > { %p1610_p5 = scmp.ge.s32.totalorder %s1026_s20, 2  ;;  %s580_s25 = scalar_lea.sflag [#allocation4], %s579_s21 }
  0xd8   : > { %p753_p11 = pnand %p1610_p5, %p1609_p12 }
  0xda   : > { %1001 = dma.done.wait (!%p753_p11), %s580_s25, 4096  }
  0xdb   : > { %1003 = vsyncadd (!%p753_p11), %s580_s25, 4294963200  ;;  %s24_s20 = sadd.s32 1, %s1026_s20   ;;  %s1611_s15 = smov %s1010_s16 }
  0xdc   : > { %p21_p1 = scmp.ge.s32.totalorder %s24_s20, 4   ;;  %s1612_s16 = smov %s1014_s17 }
  0xdd   : > { %s1613_s17 = smov %s1216_s29  ;;  %s1614_s18 = smov %s1022_s19 }
  0xde   : > { %s1615_s19 = smov %s1617_s10  ;;  %23 = sbr.rel (!%p21_p1) target bundleno = 13 (0xd), region = 102 }
  0xe5   :  { %585 = vsyncpa [#allocation3], 1 }
  0xe6   :  { %587 = vsyncpa [#allocation3 + $0x1], 1 }
  0xe7   :  { %588 = vsyncpa [#allocation6], 1 }
  0xe8   :  { %590 = vsyncpa [#allocation6 + $0x1], 1 }
  0xe9   :  { %591 = vsyncpa [#allocation9], 1 }
  0xea   :  { %592 = vsyncpa [#allocation4], 1 }
  0xeb   :  { %594 = vsyncpa [#allocation4 + $0x1], 1 }

// kernel: bottleneck_forward.6
= control target key start
LH: loop header
LB: loop body
LE: loop exit
PB: predicated region body
PF: predicated region fallthrough
CT: control target
= control target key end

     0   :  { %12 = vsyncpa [#allocation3], 0  ;;  %s2526_s0 = inlined_call_operand.hbm [shape: f32[2,16,16,8], index: 0, kind: input, shape index: {}]   ;;  %s2527_s1 = inlined_call_operand.hbm [shape: f32[8,32], index: 1, kind: input, shape index: {}]   ;;  %s2528_s2 = inlined_call_operand.hbm [shape: f32[1,8], index: 2, kind: input, shape index: {}]   ;;  %s2529_s3 = inlined_call_operand.hbm [shape: f32[1,8], index: 3, kind: input, shape index: {}]   ;;  %s2530_s4 = inlined_call_operand.hbm [shape: f32[2,16,16,32], index: 4, kind: output, shape index: {0}]   ;;  %s2531_s5 = inlined_call_operand.hbm [shape: f32[2,1,32], index: 5, kind: output, shape index: {1}]   ;;  %s2532_s6 = inlined_call_operand.hbm [shape: f32[2,1,32], index: 6, kind: output, shape index: {2}]  }
   0x1   :  { %14 = vsyncpa [#allocation3 + $0x1], 0 }
   0x2   :  { %15 = vsyncpa [#allocation6], 0 }
   0x3   :  { %16 = vsyncpa [#allocation9], 0 }
   0x4   :  { %17 = vsyncpa [#allocation4], 0 }
   0x5   :  { %19 = vsyncpa [#allocation4 + $0x1], 0 }
   0x6   :  { %20 = vsyncpa [#allocation12], 0 }
   0x7   :  { %22 = vsyncpa [#allocation12 + $0x1], 0  ;;  %s1809_s21 = smov 0   ;;  %s1811_s22 = smov 0  }
   0x8   :  { %s1813_s23 = smov 0   ;;  %s1815_s24 = smov 0  }
   0x9   :  { %s1817_s25 = smov 0   ;;  %s1819_s26 = smov 0  }
   0xa LB: > { %s1840_s27 = sadd.s32 4294967295, %s1761_s26   ;;  %s2536_s28 = sadd.s32 4294967294, %s1761_s26   ;;  %s1761_s26 = sphi %s1819_s26, %s28_s26   ;;  %s1757_s25 = sphi %s1817_s25, %s2560_s25   ;;  %s1753_s24 = sphi %s1815_s24, %s2559_s24   ;;  %s1749_s23 = sphi %s1813_s23, %s2558_s23   ;;  %s1745_s22 = sphi %s1811_s22, %s2557_s22   ;;  %s1741_s21 = sphi %s1809_s21, %s2556_s21  }
   0xb   : > { %p62_p0 = scmp.ne.s32.totalorder %s1745_s22, %s1741_s21  ;;  %p2533_p1 = scmp.eq.s32.totalorder %s1840_s27, 0 }
   0xc   : > { %p157_p3 = scmp.eq.s32.totalorder %s2536_s28, 1  ;;  %p1248_p5 = scmp.ge.s32.totalorder %s1761_s26, 1 }
   0xd   : > { %p1851_p4 = por %p2533_p1, %p62_p0  ;;  %p220_p7 = scmp.lt.s32.totalorder %s1761_s26, 3 }
   0xe   : > { %p1856_p6 = por %p157_p3, %p62_p0  ;;  %s1763_s8 = smov [#allocation5]  }
   0xf   : > { %s2538_s29 = scalar_select %p1851_p4, 1, 0 }
  0x10   : > { %s2539_s30 = scalar_select %p1856_p6, 1, 0 }
  0x11   : > { %p1861_p8 = pnand %p1248_p5, %p220_p7  ;;  %s233_s9 = sshll.u32 %s1763_s8, 4  ;;  %s234_s9 = int_to_ptr.vmem [resolvable:$true] %s233_s9 }
  0x12   : > { %s1764_s10 = smov [#allocation7]   ;;  %s1765_s13 = smov [#allocation8]  }
  0x13   : > { %s2540_s7 = scalar_select %p1861_p8, 1, 0 }
  0x14   : > { %p1410_p10 = pneg %p1861_p8  ;;  %s244_s11 = sshll.u32 %s1764_s10, 4  ;;  %s1874_s11 = int_to_ptr.vmem [resolvable:$true] %s244_s11 }
  0x15   : > { %s255_s14 = sshll.u32 %s1765_s13, 4  ;;  %s1497_s17 = scalar_lea.hbm %s2527_s1, 128  ;;  %s1876_s14 = int_to_ptr.vmem [resolvable:$true] %s255_s14 }
  0x16   : > { %p1870_p11 = pnand %p1410_p10, %p2533_p1  ;;  %p1498_p12 = scmp.ne.s32.totalorder %s2527_s1, %s1497_s17 }
  0x17   : > { %p1504_p5 = scmp.lt.u32.totalorder %s1497_s17, %s2527_s1 }
  0x18   : > { %p1886_p13 = pneg %p1870_p11 }
  0x1a   : > { %p1500_p0 = pnand %p1886_p13, %p1498_p12 }
  0x1c   : > { %p1501_p3 = pneg %p1500_p0 }
  0x1e   : > { %p1506_p7 = pnand %p1504_p5, %p1501_p3 }
  0x20   : > { %1509 = shalt.err (!%p1506_p7)
}
  0x21   : > { %s1510_s13 = scalar_lea.vmem %s234_s9, 128  ;;  %p1518_p2 = scmp.lt.s32.totalorder %s234_s9, %s234_s9 }
  0x22   : > { %p1511_p10 = scmp.ne.s32.totalorder %s234_s9, %s1510_s13  ;;  %p1519_p6 = scmp.lt.s32.totalorder %s1510_s13, %s1510_s13 }
  0x24   : > { %p1513_p9 = pnand %p1511_p10, %p1886_p13  ;;  %p1520_p4 = por %p1519_p6, %p1518_p2 }
  0x26   : > { %p1514_p1 = pneg %p1513_p9 }
  0x28   : > { %p1521_p8 = pnand %p1520_p4, %p1514_p1 }
  0x2a   : > { %1524 = shalt.err (!%p1521_p8)
}
  0x2b   : > { %1413 = dma.hbm_to_vmem [thread:$0]  (!%p1870_p11), %s2527_s1, 128, %s234_s9, [#allocation6]  }
  0x2c   : > { %s1525_s19 = scalar_lea.hbm %s2528_s2, 16 }
  0x2d   : > { %p1526_p9 = scmp.ne.s32.totalorder %s2528_s2, %s1525_s19  ;;  %p1532_p1 = scmp.lt.u32.totalorder %s1525_s19, %s2528_s2 }
  0x2f   : > { %p1528_p12 = pnand %p1526_p9, %p1886_p13 }
  0x31   : > { %p1529_p2 = pneg %p1528_p12 }
  0x33   : > { %p1534_p4 = pnand %p1532_p1, %p1529_p2 }
  0x35   : > { %1537 = shalt.err (!%p1534_p4)
}
  0x36   : > { %s1538_s9 = scalar_lea.vmem %s1874_s11, 16  ;;  %s1545_s15 = scalar_lea.vmem %s1874_s11, 32 }
  0x37   : > { %p1539_p6 = scmp.ne.s32.totalorder %s1874_s11, %s1538_s9  ;;  %p1546_p3 = scmp.lt.s32.totalorder %s1874_s11, %s1874_s11 }
  0x38   : > { %p1547_p5 = scmp.lt.s32.totalorder %s1545_s15, %s1538_s9 }
  0x39   : > { %p1541_p8 = pnand %p1539_p6, %p1886_p13 }
  0x3a   : > { %p1548_p7 = por %p1547_p5, %p1546_p3 }
  0x3b   : > { %p1542_p0 = pneg %p1541_p8 }
  0x3d   : > { %p1549_p10 = pnand %p1548_p7, %p1542_p0 }
  0x3f   : > { %1552 = shalt.err (!%p1549_p10)
}
  0x40   : > { %1416 = dma.hbm_to_vmem [thread:$0]  (!%p1870_p11), %s2528_s2, 16, %s1874_s11, [#allocation6]  }
  0x41   : > { %s1553_s19 = scalar_lea.hbm %s2529_s3, 16 }
  0x42   : > { %p1554_p9 = scmp.ne.s32.totalorder %s2529_s3, %s1553_s19  ;;  %p1560_p1 = scmp.lt.u32.totalorder %s1553_s19, %s2529_s3 }
  0x44   : > { %p1556_p12 = pnand %p1554_p9, %p1886_p13 }
  0x46   : > { %p1557_p2 = pneg %p1556_p12 }
  0x48   : > { %p1562_p4 = pnand %p1560_p1, %p1557_p2 }
  0x4a   : > { %1565 = shalt.err (!%p1562_p4)
}
  0x4b   : > { %s1566_s11 = scalar_lea.vmem %s1876_s14, 16  ;;  %s1573_s15 = scalar_lea.vmem %s1876_s14, 32 }
  0x4c   : > { %p1567_p6 = scmp.ne.s32.totalorder %s1876_s14, %s1566_s11  ;;  %p1574_p3 = scmp.lt.s32.totalorder %s1876_s14, %s1876_s14 }
  0x4d   : > { %p1575_p5 = scmp.lt.s32.totalorder %s1573_s15, %s1566_s11 }
  0x4e   : > { %p1569_p8 = pnand %p1567_p6, %p1886_p13 }
  0x4f   : > { %p1576_p7 = por %p1575_p5, %p1574_p3 }
  0x50   : > { %p1570_p0 = pneg %p1569_p8 }
  0x52   : > { %p1577_p10 = pnand %p1576_p7, %p1570_p0 }
  0x54   : > { %1580 = shalt.err (!%p1577_p10)
}
  0x55   : > { %1419 = dma.hbm_to_vmem [thread:$0]  (!%p1870_p11), %s2529_s3, 16, %s1876_s14, [#allocation9]  }
  0x56   : > { %s49_s20 = sadd.s32 1, %s1749_s23  ;;  %s40_s17 = sadd.s32 1, %s1757_s25 }
  0x57   : > { %p56_p13 = scmp.ne.s32.totalorder %s1749_s23, %s1745_s22  ;;  %p42_p9 = scmp.ge.s32.totalorder %s40_s17, 2 }
  0x58   : > { %p57_p12 = scmp.eq.s32.totalorder %s1761_s26, 0  ;;  %p2543_p2 = scmp.eq.s32.totalorder %s1840_s27, 1 }
  0x59   : > { %p1437_p4 = scmp.lt.s32.totalorder %s1761_s26, 2  ;;  %s2562_s17 = smov (%p42_p9, %s40_s17), 0 }
  0x5a   : > { %p1957_p1 = por %p2543_p2, %p56_p13  ;;  %p58_p6 = por %p57_p12, %p56_p13 }
  0x5b   : > { %s266_s18 = sand.u32 1, %s1749_s23   ;;  %s44_s19 = ssub.s32 %s1757_s25, %s2562_s17 }
  0x5c   : > { %p47_p8 = scmp.eq.s32.totalorder %s44_s19, 0  ;;  %s1253_s14 = sshll.u32 %s266_s18, 8 }
  0x5d   : > { %s1303_s8 = sshll.u32 %s1757_s25, 12  ;;  %s270_s15 = scalar_lea.vmem [#allocation2], %s1253_s14 }
  0x5e   : > { %s1969_s10 = scalar_select %p47_p8, %s1749_s23, %s49_s20  }
  0x5f   : > { %s1974_s11 = scalar_lea.hbm %s2526_s0, %s1303_s8  ;;  %s280_s28 = sshll.u32 %s270_s15, 4  ;;  %s1976_s28 = int_to_ptr.vmem [resolvable:$true] %s280_s28 }
  0x60   : > { %p1980_p11 = pnand %p1437_p4, %p58_p6  ;;  %s1984_s20 = scalar_lea.sflag [#allocation3], %s266_s18 }
  0x61   : > { %s1581_s19 = scalar_lea.hbm %s1974_s11, 4096  ;;  %s1586_s13 = scalar_lea.hbm %s2526_s0, 8192 }
  0x62   : > { %p1582_p0 = scmp.ne.s32.totalorder %s1974_s11, %s1581_s19  ;;  %p1583_p3 = pneg %p1980_p11 }
  0x63   : > { %p1587_p10 = scmp.lt.u32.totalorder %s1974_s11, %s2526_s0  ;;  %p1588_p13 = scmp.lt.u32.totalorder %s1586_s13, %s1581_s19 }
  0x64   : > { %p1584_p5 = pnand %p1583_p3, %p1582_p0  ;;  %p1590_p12 = scmp.lt.u32.totalorder %s1581_s19, %s1974_s11 }
  0x65   : > { %p1589_p9 = por %p1588_p13, %p1587_p10 }
  0x66   : > { %p1585_p7 = pneg %p1584_p5 }
  0x67   : > { %p1591_p2 = por %p1590_p12, %p1589_p9 }
  0x69   : > { %p1592_p4 = pnand %p1591_p2, %p1585_p7 }
  0x6b   : > { %1595 = shalt.err (!%p1592_p4)
}
  0x6c   : > { %s1596_s18 = scalar_lea.vmem %s1976_s28, 4096  ;;  %s1766_s14 = smov [#allocation2]  }
  0x6d   : > { %p1597_p6 = scmp.ne.s32.totalorder %s1976_s28, %s1596_s18  ;;  %s1601_s8 = sshll.u32 %s1766_s14, 4  ;;  %s1602_s8 = int_to_ptr.vmem [resolvable:$false] %s1601_s8 }
  0x6e   : > { %s1603_s9 = scalar_lea.vmem %s1602_s8, 8192  ;;  %p1604_p5 = scmp.lt.s32.totalorder %s1976_s28, %s1602_s8 }
  0x6f   : > { %p1599_p8 = pnand %p1597_p6, %p1583_p3  ;;  %p1605_p10 = scmp.lt.s32.totalorder %s1603_s9, %s1596_s18 }
  0x71   : > { %p1600_p0 = pneg %p1599_p8  ;;  %p1606_p13 = por %p1605_p10, %p1604_p5 }
  0x73   : > { %p1607_p9 = pnand %p1606_p13, %p1600_p0 }
  0x75   : > { %1610 = shalt.err (!%p1607_p9)
}
  0x76   : > { %s1767_s19 = smov 128   ;;  %s1768_s13 = smov 8  }
  0x77   : > { %1423 = dma.hbm_to_vmem [thread:$0]  (!%p1980_p11), %s1974_s11, 4096, %s1976_s28, %s1984_s20, %s1767_s19, %s1767_s19, %s1768_s13  }
  0x78   : > { %p2546_p3 = scmp.ne.s32.totalorder %s2540_s7, 0 }
  0x79   : > { %s2015_s15 = sand.u32 (!%p2546_p3), 1, %s1745_s22   ;;  %p2547_p7 = scmp.ne.s32.totalorder (!%p2546_p3), %s2538_s29, 0 }
  0x7a   : > { %292 = sbr.rel (%p2546_p3) target bundleno = 484 (0x1e4), region = 36  ;;  %s1257_s18 = sshll.u32 (!%p2546_p3), %s2015_s15, 8 }
  0x7b   : > { %s295_s14 = scalar_lea.sflag (!%p2546_p3), [#allocation3], %s2015_s15  ;;  %s2021_s8 = scalar_lea.vmem (!%p2546_p3), [#allocation2], %s1257_s18 }
  0x81   : > { %1720 = dma.done.wait (%p2547_p7), %s295_s14, 4096  }
  0x82   : > { %1722 = vsyncadd (%p2547_p7), %s295_s14, 4294963200  ;;  %p2548_p11 = scmp.eq.s32.totalorder %s1840_s27, 0 }
  0x84   : > { %1724 = dma.done.wait (%p2548_p11), [#allocation6], 144   ;;  %p2549_p12 = pmov %p2548_p11 }
  0x85   : > { %p2550_p2 = pmov %p2548_p11 }
  0x86   : > { %1726 = vsyncadd (%p2549_p12), [#allocation6], 4294967152 }
  0x87   : > { %1728 = dma.done.wait (%p2550_p2), [#allocation9], 16   ;;  %p2551_p4 = pmov %p2550_p2 }
  0x88   : > { %v493_v0 = vld [vmem:[#allocation5] sm:$0xff]  ;;  %v2036_v2 = vld [vmem:[#allocation7] ss:$0 sm:$0xff]  ;;  %v2039_v4 = vld [vmem:[#allocation8] ss:$0 sm:$0xff]  ;;  %vm494_vm0 = vcmask 64512  }
  0x89   : > { %1730 = vsyncadd (%p2551_p4), [#allocation9], 4294967280  ;;  %v351_v1 = vld [vmem:[%s2021_s8] sm:$0xff]  ;;  %1338 = vmatprep.subr.mxu0 %v493_v0  ;;  %v352_v5 = vld [vmem:[%s2021_s8 + $0x8] sm:$0xff]  ;;  %1388 = vmatprep.subr.mxu1 %v493_v0  ;;  %vm816_vm1 = vcmask 261120   ;;  %s2169_s29 = scalar_lea.vmem [#allocation10], %s1257_s18 }
  0x8a   : > { %v390_v3 = vmul.f32 %v2036_v2, %v351_v1  ;;  %v353_v6 = vld [vmem:[%s2021_s8 + $0x10] sm:$0xff]  ;;  %1339 = vmatpush3.msra.mxu0 %v493_v0  ;;  %v391_v7 = vmul.f32 %v2036_v2, %v352_v5  ;;  %v354_v9 = vld [vmem:[%s2021_s8 + $0x18] sm:$0xff]  ;;  %v355_v10 = vld [vmem:[%s2021_s8 + $0x20] sm:$0xff]  ;;  %1389 = vmatpush3.msra.mxu1 %v493_v0  ;;  %s1304_s7 = sshll.u32 %s1753_s24, 12  ;;  %s1047_s11 = sshll.u32 %s2169_s29, 4  ;;  %s2331_s11 = int_to_ptr.vmem [resolvable:$true] %s1047_s11 }
  0x8b   : > { %v392_v8 = vmul.f32 %v2036_v2, %v353_v6  ;;  %v356_v11 = vld [vmem:[%s2021_s8 + $0x28] sm:$0xff]  ;;  %v393_v13 = vmul.f32 %v2036_v2, %v354_v9  ;;  %v394_v14 = vmul.f32 %v2036_v2, %v355_v10  ;;  %v357_v15 = vld [vmem:[%s2021_s8 + $0x30] sm:$0xff]  ;;  %v358_v16 = vld [vmem:[%s2021_s8 + $0x38] sm:$0xff]  ;;  %s2329_s20 = scalar_lea.hbm %s2530_s4, %s1304_s7  ;;  %s1023_s9 = scalar_lea.sflag [#allocation4], %s2015_s15 }
  0x8c   : > { %v429_v12 = vadd.f32 %v2039_v4, %v390_v3  ;;  %v430_v17 = vadd.f32 %v2039_v4, %v391_v7  ;;  %v395_v19 = vmul.f32 %v2036_v2, %v356_v11  ;;  %v396_v20 = vmul.f32 %v2036_v2, %v357_v15  ;;  %v359_v25 = vld [vmem:[%s2021_s8 + $0x40] sm:$0xff]  ;;  %v360_v28 = vld [vmem:[%s2021_s8 + $0x48] sm:$0xff]  ;;  %v361_v32 = vld [vmem:[%s2021_s8 + $0x50] sm:$0xff]  ;;  %s1611_s19 = scalar_lea.vmem %s2331_s11, 4096  ;;  %s1769_s13 = smov [#allocation10]  }
  0x8d   : > { %v431_v18 = vadd.f32 %v2039_v4, %v392_v8  ;;  %v432_v22 = vadd.f32 %v2039_v4, %v393_v13  ;;  %v433_v23 = vadd.f32 %v2039_v4, %v394_v14  ;;  %v397_v24 = vmul.f32 %v2036_v2, %v358_v16  ;;  %v362_v37 = vld [vmem:[%s2021_s8 + $0x58] sm:$0xff]  ;;  %v367_v38 = vld [vmem:[%s2021_s8 + $0x80] sm:$0xff]  ;;  %v368_v41 = vld [vmem:[%s2021_s8 + $0x88] sm:$0xff]  ;;  %p1612_p6 = scmp.ne.s32.totalorder %s2331_s11, %s1611_s19  ;;  %s1615_s18 = sshll.u32 %s1769_s13, 4  ;;  %s1616_s18 = int_to_ptr.vmem [resolvable:$false] %s1615_s18 }
  0x8e   : > { %v461_v21 = vmax.f32 %v429_v12, 0.0  ;;  %v462_v26 = vmax.f32 %v430_v17, 0.0  ;;  %v434_v30 = vadd.f32 %v2039_v4, %v395_v19  ;;  %v398_v31 = vmul.f32 %v2036_v2, %v359_v25  ;;  %v363_v40 = vld [vmem:[%s2021_s8 + $0x60] sm:$0xff]  ;;  %v369_v42 = vld [vmem:[%s2021_s8 + $0x90] sm:$0xff]  ;;  %v370_v45 = vld [vmem:[%s2021_s8 + $0x98] sm:$0xff]  ;;  %s1617_s14 = scalar_lea.vmem %s1616_s18, 8192  ;;  %p1618_p5 = scmp.lt.s32.totalorder %s2331_s11, %s1616_s18 }
  0x8f   : > { %v463_v27 = vmax.f32 %v431_v18, 0.0  ;;  %v464_v29 = vmax.f32 %v432_v22, 0.0  ;;  %v465_v33 = vmax.f32 %v433_v23, 0.0  ;;  %v435_v34 = vadd.f32 %v2039_v4, %v396_v20  ;;  %v371_v46 = vld [vmem:[%s2021_s8 + $0xa0] sm:$0xff]  ;;  %v372_v51 = vld [vmem:[%s2021_s8 + $0xa8] sm:$0xff]  ;;  %v373_v56 = vld [vmem:[%s2021_s8 + $0xb0] sm:$0xff]  ;;  %p1613_p8 = pnand %p1612_p6, %p1957_p1  ;;  %p1619_p10 = scmp.lt.s32.totalorder %s1617_s14, %s1611_s19 }
  0x90   : > { %1340 = vmatprep.mubr.msk.f32.mxu0 %vm494_vm0, %v461_v21  ;;  %v436_v35 = vadd.f32 %v2039_v4, %v397_v24  ;;  %v399_v36 = vmul.f32 %v2036_v2, %v360_v28  ;;  %v400_v39 = vmul.f32 %v2036_v2, %v361_v32  ;;  %v466_v43 = vmax.f32 %v434_v30, 0.0  ;;  %v364_v62 = vld [vmem:[%s2021_s8 + $0x68] sm:$0xff]  ;;  %v365_v63 = vld [vmem:[%s2021_s8 + $0x70] sm:$0xff]  ;;  %v374_v9 = vld [vmem:[%s2021_s8 + $0xb8] sm:$0xff] }
  0x91   : > { %1341 = vmatmul.mubr.msk.f32.vlgmr.msra.gmra.mrb[0].mxu0 %vm494_vm0, %v462_v26  ;;  %v437_v44 = vadd.f32 %v2039_v4, %v398_v31  ;;  %v467_v47 = vmax.f32 %v435_v34, 0.0  ;;  %v401_v49 = vmul.f32 %v2036_v2, %v362_v37  ;;  %v406_v50 = vmul.f32 %v2036_v2, %v367_v38  ;;  %v375_v12 = vld [vmem:[%s2021_s8 + $0xc0] sm:$0xff]  ;;  %v366_v18 = vld [vmem:[%s2021_s8 + $0x78] sm:$0xff]  ;;  %v376_v26 = vld [vmem:[%s2021_s8 + $0xc8] sm:$0xff]  ;;  %p1614_p0 = pneg %p1613_p8  ;;  %p1620_p13 = por %p1619_p10, %p1618_p5 }
  0x92   : > { %1343 = vmatprep.mubr.msk.f32.mxu0 %vm494_vm0, %v463_v27  ;;  %v468_v48 = vmax.f32 %v436_v35, 0.0  ;;  %v438_v52 = vadd.f32 %v2039_v4, %v399_v36  ;;  %v402_v53 = vmul.f32 %v2036_v2, %v363_v40  ;;  %v407_v54 = vmul.f32 %v2036_v2, %v368_v41  ;;  %v377_v27 = vld [vmem:[%s2021_s8 + $0xd0] sm:$0xff]  ;;  %v379_v40 = vld [vmem:[%s2021_s8 + $0xe0] sm:$0xff] }
  0x93   : > { %v408_v55 = vmul.f32 %v2036_v2, %v369_v42  ;;  %v439_v57 = vadd.f32 %v2039_v4, %v400_v39  ;;  %v445_v58 = vadd.f32 %v2039_v4, %v406_v50  ;;  %v409_v59 = vmul.f32 %v2036_v2, %v370_v45  ;;  %v378_v39 = vld [vmem:[%s2021_s8 + $0xd8] sm:$0xff]  ;;  %v380_v50 = vld [vmem:[%s2021_s8 + $0xe8] sm:$0xff]  ;;  %p1621_p9 = pnand %p1620_p13, %p1614_p0 }
  0x94   : > { %v410_v60 = vmul.f32 %v2036_v2, %v371_v46  ;;  %v469_v61 = vmax.f32 %v437_v44, 0.0  ;;  %v446_v0 = vadd.f32 %v2039_v4, %v407_v54  ;;  %v411_v3 = vmul.f32 %v2036_v2, %v372_v51  ;;  %v381_v51 = vld [vmem:[%s2021_s8 + $0xf0] sm:$0xff] }
  0x95   : > { %1344 = vmatmul.mubr.msk.f32.gmra.mrb[2].mxu0 %vm494_vm0, %v464_v29  ;;  %v447_v1 = vadd.f32 %v2039_v4, %v408_v55  ;;  %v477_v5 = vmax.f32 %v445_v58, 0.0  ;;  %v448_v6 = vadd.f32 %v2039_v4, %v409_v59  ;;  %v412_v8 = vmul.f32 %v2036_v2, %v373_v56  ;;  %v382_v59 = vld [vmem:[%s2021_s8 + $0xf8] sm:$0xff] }
  0x96   : > { %1346 = vmatprep.mubr.msk.f32.mxu0 %vm494_vm0, %v465_v33  ;;  %v449_v7 = vadd.f32 %v2039_v4, %v410_v60  ;;  %v478_v10 = vmax.f32 %v446_v0, 0.0  ;;  %v440_v13 = vadd.f32 %v2039_v4, %v401_v49  ;;  %v441_v14 = vadd.f32 %v2039_v4, %v402_v53 }
  0x97   : > { %v479_v11 = vmax.f32 %v447_v1, 0.0  ;;  %v403_v15 = vmul.f32 %v2036_v2, %v364_v62  ;;  %v404_v16 = vmul.f32 %v2036_v2, %v365_v63  ;;  %1364 = vmatprep.mubr.msk.f32.mxu1 %vm494_vm0, %v477_v5  ;;  %v470_v17 = vmax.f32 %v438_v52, 0.0 }
  0x98   : > { %1365 = vmatmul.mubr.msk.f32.vlgmr.msra.gmra.mrb[0].mxu1 %vm494_vm0, %v478_v10  ;;  %v480_v19 = vmax.f32 %v448_v6, 0.0  ;;  %v450_v20 = vadd.f32 %v2039_v4, %v411_v3  ;;  %v413_v21 = vmul.f32 %v2036_v2, %v374_v9  ;;  %v471_v22 = vmax.f32 %v439_v57, 0.0 }
  0x99   : > { %1347 = vmatmul.mubr.msk.f32.gmra.mrb[4].mxu0 %vm494_vm0, %v466_v43  ;;  %1367 = vmatprep.mubr.msk.f32.mxu1 %vm494_vm0, %v479_v11  ;;  %v481_v23 = vmax.f32 %v449_v7, 0.0  ;;  %v451_v24 = vadd.f32 %v2039_v4, %v412_v8  ;;  %v414_v25 = vmul.f32 %v2036_v2, %v375_v12  ;;  %v442_v28 = vadd.f32 %v2039_v4, %v403_v15 }
  0x9a   : > { %1349 = vmatprep.mubr.msk.f32.mxu0 %vm494_vm0, %v467_v47  ;;  %v443_v29 = vadd.f32 %v2039_v4, %v404_v16  ;;  %v405_v30 = vmul.f32 %v2036_v2, %v366_v18  ;;  %v472_v31 = vmax.f32 %v440_v13, 0.0  ;;  %v482_v32 = vmax.f32 %v450_v20, 0.0 }
  0x9b   : > { %v452_v33 = vadd.f32 %v2039_v4, %v413_v21  ;;  %v415_v34 = vmul.f32 %v2036_v2, %v376_v26  ;;  %v473_v35 = vmax.f32 %v441_v14, 0.0  ;;  %v483_v36 = vmax.f32 %v451_v24, 0.0 }
  0x9c   : > { %1368 = vmatmul.mubr.msk.f32.gmra.mrb[2].mxu1 %vm494_vm0, %v480_v19  ;;  %v453_v37 = vadd.f32 %v2039_v4, %v414_v25  ;;  %v416_v38 = vmul.f32 %v2036_v2, %v377_v27  ;;  %v444_v41 = vadd.f32 %v2039_v4, %v405_v30  ;;  %v474_v42 = vmax.f32 %v442_v28, 0.0 }
  0x9d   : > { %1350 = vmatmul.mubr.msk.f32.gmra.mrb[6].mxu0 %vm494_vm0, %v468_v48  ;;  %1370 = vmatprep.mubr.msk.f32.mxu1 %vm494_vm0, %v481_v23  ;;  %v484_v43 = vmax.f32 %v452_v33, 0.0  ;;  %v454_v44 = vadd.f32 %v2039_v4, %v415_v34  ;;  %v417_v45 = vmul.f32 %v2036_v2, %v378_v39  ;;  %v475_v46 = vmax.f32 %v443_v29, 0.0 }
  0x9e   : > { %1352 = vmatprep.mubr.msk.f32.mxu0 %vm494_vm0, %v469_v61  ;;  %v485_v47 = vmax.f32 %v453_v37, 0.0  ;;  %v455_v48 = vadd.f32 %v2039_v4, %v416_v38  ;;  %v418_v49 = vmul.f32 %v2036_v2, %v379_v40  ;;  %v476_v52 = vmax.f32 %v444_v41, 0.0 }
  0x9f   : > { %v486_v53 = vmax.f32 %v454_v44, 0.0  ;;  %v456_v54 = vadd.f32 %v2039_v4, %v417_v45  ;;  %v419_v55 = vmul.f32 %v2036_v2, %v380_v50  ;;  %v420_v58 = vmul.f32 %v2036_v2, %v381_v51 }
  0xa0   : > { %1371 = vmatmul.mubr.msk.f32.gmra.mrb[4].mxu1 %vm494_vm0, %v482_v32  ;;  %v487_v56 = vmax.f32 %v455_v48, 0.0  ;;  %v457_v57 = vadd.f32 %v2039_v4, %v418_v49  ;;  %v421_v62 = vmul.f32 %v2036_v2, %v382_v59 }
  0xa1   : > { %1353 = vmatmul.mubr.msk.f32.gmra.mrb[8].mxu0 %vm494_vm0, %v470_v17  ;;  %1373 = vmatprep.mubr.msk.f32.mxu1 %vm494_vm0, %v483_v36  ;;  %v488_v60 = vmax.f32 %v456_v54, 0.0  ;;  %v458_v61 = vadd.f32 %v2039_v4, %v419_v55  ;;  %v459_v0 = vadd.f32 %v2039_v4, %v420_v58 }
  0xa2   : > { %1355 = vmatprep.mubr.msk.f32.mxu0 %vm494_vm0, %v471_v22  ;;  %v489_v63 = vmax.f32 %v457_v57, 0.0  ;;  %v460_v3 = vadd.f32 %v2039_v4, %v421_v62 }
  0xa3   : > { %v490_v1 = vmax.f32 %v458_v61, 0.0  ;;  %v491_v5 = vmax.f32 %v459_v0, 0.0 }
  0xa4   : > { %1374 = vmatmul.mubr.msk.f32.gmra.mrb[6].mxu1 %vm494_vm0, %v484_v43  ;;  %v492_v6 = vmax.f32 %v460_v3, 0.0 }
  0xa5   : > { %1356 = vmatmul.mubr.msk.f32.gmra.mrb[10].mxu0 %vm494_vm0, %v472_v31  ;;  %1376 = vmatprep.mubr.msk.f32.mxu1 %vm494_vm0, %v485_v47 }
  0xa6   : > { %1358 = vmatprep.mubr.msk.f32.mxu0 %vm494_vm0, %v473_v35 }
  0xa8   : > { %1377 = vmatmul.mubr.msk.f32.gmra.mrb[8].mxu1 %vm494_vm0, %v486_v53 }
  0xa9   : > { %1359 = vmatmul.mubr.msk.f32.gmra.mrb[12].mxu0 %vm494_vm0, %v474_v42  ;;  %1379 = vmatprep.mubr.msk.f32.mxu1 %vm494_vm0, %v487_v56 }
  0xaa   : > { %1361 = vmatprep.mubr.msk.f32.mxu0 %vm494_vm0, %v475_v46 }
  0xac   : > { %1380 = vmatmul.mubr.msk.f32.gmra.mrb[10].mxu1 %vm494_vm0, %v488_v60 }
  0xad   : > { %1362 = vmatmul.mubr.msk.f32.gmra.mrb[14].mxu0 %vm494_vm0, %v476_v52  ;;  %1382 = vmatprep.mubr.msk.f32.mxu1 %vm494_vm0, %v489_v63 }
  0xb0   : > { %1383 = vmatmul.mubr.msk.f32.gmra.mrb[12].mxu1 %vm494_vm0, %v490_v1 }
  0xb1   : > { %1385 = vmatprep.mubr.msk.f32.mxu1 %vm494_vm0, %v491_v5 }
  0xb4   : > { %1386 = vmatmul.mubr.msk.f32.gmra.mrb[14].mxu1 %vm494_vm0, %v492_v6 }
 0x164   : > { %v1342_v2 = vpop.f32.mrb[0].mxu0 }
 0x165   : > { %818 = vst.msk [vmem:[%s2169_s29 + $0x8] sm:$0xff] %vm816_vm1, %v1342_v2  ;;  %v850_v4 = vsel %vm816_vm1, %v1342_v2, 0.0  ;;  %v921_v7 = vmul.f32 %v1342_v2, %v1342_v2  ;;  %v657_v8 = vpop.f32.mrb[1].mxu0 }
 0x166   : > { %817 = vst.msk [vmem:[%s2169_s29] sm:$0xff] %vm816_vm1, %v657_v8  ;;  %v849_v9 = vsel %vm816_vm1, %v657_v8, 0.0  ;;  %v920_v10 = vmul.f32 %v657_v8, %v657_v8 }
 0x167   : > { %v953_v11 = vsel %vm816_vm1, %v921_v7, 0.0  ;;  %v851_v12 = vadd.f32 %v850_v4, %v849_v9 }
 0x168   : > { %v952_v13 = vsel %vm816_vm1, %v920_v10, 0.0  ;;  %v1345_v14 = vpop.f32.mrb[2].mxu0 }
 0x169   : > { %v954_v15 = vadd.f32 %v953_v11, %v952_v13  ;;  %820 = vst.msk [vmem:[%s2169_s29 + $0x18] sm:$0xff] %vm816_vm1, %v1345_v14  ;;  %v667_v16 = vpop.f32.mrb[3].mxu0  ;;  %v923_v17 = vmul.f32 %v1345_v14, %v1345_v14  ;;  %v854_v21 = vsel %vm816_vm1, %v1345_v14, 0.0 }
 0x16a   : > { %819 = vst.msk [vmem:[%s2169_s29 + $0x10] sm:$0xff] %vm816_vm1, %v667_v16  ;;  %v852_v18 = vsel %vm816_vm1, %v667_v16, 0.0  ;;  %v922_v19 = vmul.f32 %v667_v16, %v667_v16 }
 0x16b   : > { %v853_v20 = vadd.f32 %v852_v18, %v851_v12  ;;  %v957_v27 = vsel %vm816_vm1, %v923_v17, 0.0  ;;  %v2194_v36 = vpop.f32.mrb[0].mxu1 }
 0x16c   : > { %v955_v22 = vsel %vm816_vm1, %v922_v19, 0.0  ;;  %v1348_v23 = vpop.f32.mrb[4].mxu0  ;;  %834 = vst.msk [vmem:[%s2169_s29 + $0x88] sm:$0xff] %vm816_vm1, %v2194_v36  ;;  %v2201_v40 = vpop.f32.mrb[1].mxu1 }
 0x16d   : > { %v956_v24 = vadd.f32 %v955_v22, %v954_v15  ;;  %822 = vst.msk [vmem:[%s2169_s29 + $0x28] sm:$0xff] %vm816_vm1, %v1348_v23  ;;  %v677_v25 = vpop.f32.mrb[5].mxu0  ;;  %v855_v26 = vadd.f32 %v854_v21, %v853_v20  ;;  %v925_v28 = vmul.f32 %v1348_v23, %v1348_v23  ;;  %v858_v33 = vsel %vm816_vm1, %v1348_v23, 0.0  ;;  %833 = vst.msk [vmem:[%s2169_s29 + $0x80] sm:$0xff] %vm816_vm1, %v2201_v40 }
 0x16e   : > { %821 = vst.msk [vmem:[%s2169_s29 + $0x20] sm:$0xff] %vm816_vm1, %v677_v25  ;;  %v856_v29 = vsel %vm816_vm1, %v677_v25, 0.0  ;;  %v924_v30 = vmul.f32 %v677_v25, %v677_v25 }
 0x16f   : > { %v857_v31 = vadd.f32 %v856_v29, %v855_v26  ;;  %v958_v32 = vadd.f32 %v957_v27, %v956_v24  ;;  %v961_v41 = vsel %vm816_vm1, %v925_v28, 0.0  ;;  %v2212_v50 = vpop.f32.mrb[2].mxu1 }
 0x170   : > { %v959_v34 = vsel %vm816_vm1, %v924_v30, 0.0  ;;  %v1351_v35 = vpop.f32.mrb[6].mxu0  ;;  %836 = vst.msk [vmem:[%s2169_s29 + $0x98] sm:$0xff] %vm816_vm1, %v2212_v50  ;;  %v2219_v54 = vpop.f32.mrb[3].mxu1 }
 0x171   : > { %v960_v37 = vadd.f32 %v959_v34, %v958_v32  ;;  %824 = vst.msk [vmem:[%s2169_s29 + $0x38] sm:$0xff] %vm816_vm1, %v1351_v35  ;;  %v687_v38 = vpop.f32.mrb[7].mxu0  ;;  %v859_v39 = vadd.f32 %v858_v33, %v857_v31  ;;  %v927_v42 = vmul.f32 %v1351_v35, %v1351_v35  ;;  %v862_v47 = vsel %vm816_vm1, %v1351_v35, 0.0  ;;  %835 = vst.msk [vmem:[%s2169_s29 + $0x90] sm:$0xff] %vm816_vm1, %v2219_v54 }
 0x172   : > { %823 = vst.msk [vmem:[%s2169_s29 + $0x30] sm:$0xff] %vm816_vm1, %v687_v38  ;;  %v860_v43 = vsel %vm816_vm1, %v687_v38, 0.0  ;;  %v926_v44 = vmul.f32 %v687_v38, %v687_v38  ;;  %v936_v32 = vmul.f32 %v2201_v40, %v2201_v40 }
 0x173   : > { %v861_v45 = vadd.f32 %v860_v43, %v859_v39  ;;  %v962_v46 = vadd.f32 %v961_v41, %v960_v37  ;;  %v965_v55 = vsel %vm816_vm1, %v927_v42, 0.0  ;;  %v2230_v0 = vpop.f32.mrb[4].mxu1 }
 0x174   : > { %v963_v48 = vsel %vm816_vm1, %v926_v44, 0.0  ;;  %v1354_v49 = vpop.f32.mrb[8].mxu0  ;;  %838 = vst.msk [vmem:[%s2169_s29 + $0xa8] sm:$0xff] %vm816_vm1, %v2230_v0  ;;  %v2237_v6 = vpop.f32.mrb[5].mxu1  ;;  %v880_v44 = vsel %vm816_vm1, %v2201_v40, 0.0  ;;  %v938_v40 = vmul.f32 %v2219_v54, %v2219_v54 }
 0x175   : > { %v964_v51 = vadd.f32 %v963_v48, %v962_v46  ;;  %826 = vst.msk [vmem:[%s2169_s29 + $0x48] sm:$0xff] %vm816_vm1, %v1354_v49  ;;  %v697_v52 = vpop.f32.mrb[9].mxu0  ;;  %v863_v53 = vadd.f32 %v862_v47, %v861_v45  ;;  %v929_v56 = vmul.f32 %v1354_v49, %v1354_v49  ;;  %v866_v61 = vsel %vm816_vm1, %v1354_v49, 0.0  ;;  %837 = vst.msk [vmem:[%s2169_s29 + $0xa0] sm:$0xff] %vm816_vm1, %v2237_v6 }
 0x176   : > { %825 = vst.msk [vmem:[%s2169_s29 + $0x40] sm:$0xff] %vm816_vm1, %v697_v52  ;;  %v864_v57 = vsel %vm816_vm1, %v697_v52, 0.0  ;;  %v928_v58 = vmul.f32 %v697_v52, %v697_v52  ;;  %v983_v52 = vsel %vm816_vm1, %v936_v32, 0.0 }
 0x177   : > { %v865_v59 = vadd.f32 %v864_v57, %v863_v53  ;;  %v966_v60 = vadd.f32 %v965_v55, %v964_v51  ;;  %v969_v2 = vsel %vm816_vm1, %v929_v56, 0.0  ;;  %v2248_v14 = vpop.f32.mrb[6].mxu1  ;;  %v937_v51 = vmul.f32 %v2194_v36, %v2194_v36 }
 0x178   : > { %v967_v62 = vsel %vm816_vm1, %v928_v58, 0.0  ;;  %v1357_v63 = vpop.f32.mrb[10].mxu0  ;;  %840 = vst.msk [vmem:[%s2169_s29 + $0xb8] sm:$0xff] %vm816_vm1, %v2248_v14  ;;  %v2255_v18 = vpop.f32.mrb[7].mxu1  ;;  %v882_v56 = vsel %vm816_vm1, %v2194_v36, 0.0  ;;  %v884_v57 = vsel %vm816_vm1, %v2219_v54, 0.0  ;;  %v939_v36 = vmul.f32 %v2212_v50, %v2212_v50 }
 0x179   : > { %v968_v1 = vadd.f32 %v967_v62, %v966_v60  ;;  %828 = vst.msk [vmem:[%s2169_s29 + $0x58] sm:$0xff] %vm816_vm1, %v1357_v63  ;;  %v707_v3 = vpop.f32.mrb[11].mxu0  ;;  %v867_v5 = vadd.f32 %v866_v61, %v865_v59  ;;  %v931_v4 = vmul.f32 %v1357_v63, %v1357_v63  ;;  %v870_v11 = vsel %vm816_vm1, %v1357_v63, 0.0  ;;  %839 = vst.msk [vmem:[%s2169_s29 + $0xb0] sm:$0xff] %vm816_vm1, %v2255_v18 }
 0x17a   : > { %827 = vst.msk [vmem:[%s2169_s29 + $0x50] sm:$0xff] %vm816_vm1, %v707_v3  ;;  %v868_v7 = vsel %vm816_vm1, %v707_v3, 0.0  ;;  %v930_v8 = vmul.f32 %v707_v3, %v707_v3  ;;  %v985_v62 = vsel %vm816_vm1, %v937_v51, 0.0  ;;  %v987_v63 = vsel %vm816_vm1, %v938_v40, 0.0 }
 0x17b   : > { %v869_v9 = vadd.f32 %v868_v7, %v867_v5  ;;  %v970_v10 = vadd.f32 %v969_v2, %v968_v1  ;;  %v973_v19 = vsel %vm816_vm1, %v931_v4, 0.0  ;;  %v2266_v28 = vpop.f32.mrb[8].mxu1  ;;  %v940_v54 = vmul.f32 %v2237_v6, %v2237_v6 }
 0x17c   : > { %v971_v12 = vsel %vm816_vm1, %v930_v8, 0.0  ;;  %v1360_v13 = vpop.f32.mrb[12].mxu0  ;;  %842 = vst.msk [vmem:[%s2169_s29 + $0xc8] sm:$0xff] %vm816_vm1, %v2266_v28  ;;  %v2275_v33 = vpop.f32.mrb[9].mxu1  ;;  %v886_v5 = vsel %vm816_vm1, %v2212_v50, 0.0  ;;  %v888_v2 = vsel %vm816_vm1, %v2237_v6, 0.0  ;;  %v941_v6 = vmul.f32 %v2230_v0, %v2230_v0 }
 0x17d   : > { %v972_v15 = vadd.f32 %v971_v12, %v970_v10  ;;  %830 = vst.msk [vmem:[%s2169_s29 + $0x68] sm:$0xff] %vm816_vm1, %v1360_v13  ;;  %v717_v16 = vpop.f32.mrb[13].mxu0  ;;  %v871_v17 = vadd.f32 %v870_v11, %v869_v9  ;;  %v933_v20 = vmul.f32 %v1360_v13, %v1360_v13  ;;  %v874_v25 = vsel %vm816_vm1, %v1360_v13, 0.0  ;;  %841 = vst.msk [vmem:[%s2169_s29 + $0xc0] sm:$0xff] %vm816_vm1, %v2275_v33 }
 0x17e   : > { %829 = vst.msk [vmem:[%s2169_s29 + $0x60] sm:$0xff] %vm816_vm1, %v717_v16  ;;  %v872_v21 = vsel %vm816_vm1, %v717_v16, 0.0  ;;  %v932_v22 = vmul.f32 %v717_v16, %v717_v16  ;;  %v989_v50 = vsel %vm816_vm1, %v939_v36, 0.0  ;;  %v991_v11 = vsel %vm816_vm1, %v940_v54, 0.0 }
 0x17f   : > { %v873_v23 = vadd.f32 %v872_v21, %v871_v17  ;;  %v974_v24 = vadd.f32 %v973_v19, %v972_v15  ;;  %v977_v34 = vsel %vm816_vm1, %v933_v20, 0.0  ;;  %v2288_v45 = vpop.f32.mrb[10].mxu1  ;;  %v942_v12 = vmul.f32 %v2255_v18, %v2255_v18 }
 0x180   : > { %v975_v26 = vsel %vm816_vm1, %v932_v22, 0.0  ;;  %v1363_v27 = vpop.f32.mrb[14].mxu0  ;;  %844 = vst.msk [vmem:[%s2169_s29 + $0xd8] sm:$0xff] %vm816_vm1, %v2288_v45  ;;  %v2293_v48 = vpop.f32.mrb[11].mxu1 }
 0x181   : > { %v976_v29 = vadd.f32 %v975_v26, %v974_v24  ;;  %832 = vst.msk [vmem:[%s2169_s29 + $0x78] sm:$0xff] %vm816_vm1, %v1363_v27  ;;  %v727_v30 = vpop.f32.mrb[15].mxu0  ;;  %v875_v31 = vadd.f32 %v874_v25, %v873_v23  ;;  %v935_v35 = vmul.f32 %v1363_v27, %v1363_v27  ;;  %v878_v42 = vsel %vm816_vm1, %v1363_v27, 0.0  ;;  %843 = vst.msk [vmem:[%s2169_s29 + $0xd0] sm:$0xff] %vm816_vm1, %v2293_v48 }
 0x182   : > { %831 = vst.msk [vmem:[%s2169_s29 + $0x70] sm:$0xff] %vm816_vm1, %v727_v30  ;;  %v876_v37 = vsel %vm816_vm1, %v727_v30, 0.0  ;;  %v934_v38 = vmul.f32 %v727_v30, %v727_v30 }
 0x183   : > { %v877_v39 = vadd.f32 %v876_v37, %v875_v31  ;;  %v978_v41 = vadd.f32 %v977_v34, %v976_v29  ;;  %v981_v49 = vsel %vm816_vm1, %v935_v35, 0.0  ;;  %v2308_v58 = vpop.f32.mrb[12].mxu1 }
 0x184   : > { %v979_v43 = vsel %vm816_vm1, %v934_v38, 0.0  ;;  %846 = vst.msk [vmem:[%s2169_s29 + $0xe8] sm:$0xff] %vm816_vm1, %v2308_v58  ;;  %v2315_v61 = vpop.f32.mrb[13].mxu1 }
 0x185   : > { %v879_v46 = vadd.f32 %v878_v42, %v877_v39  ;;  %v980_v47 = vadd.f32 %v979_v43, %v978_v41  ;;  %845 = vst.msk [vmem:[%s2169_s29 + $0xe0] sm:$0xff] %vm816_vm1, %v2315_v61 }
 0x187   : > { %v982_v53 = vadd.f32 %v981_v49, %v980_v47  ;;  %v881_v55 = vadd.f32 %v880_v44, %v879_v46  ;;  %v2337_v4 = vpop.f32.mrb[14].mxu1 }
 0x188   : > { %848 = vst.msk [vmem:[%s2169_s29 + $0xf8] sm:$0xff] %vm816_vm1, %v2337_v4  ;;  %v951_v9 = vmul.f32 %v2337_v4, %v2337_v4  ;;  %v2344_v10 = vpop.f32.mrb[15].mxu1 }
 0x189   : > { %v984_v59 = vadd.f32 %v983_v52, %v982_v53  ;;  %v883_v60 = vadd.f32 %v882_v56, %v881_v55  ;;  %847 = vst.msk [vmem:[%s2169_s29 + $0xf0] sm:$0xff] %vm816_vm1, %v2344_v10 }
 0x18a   : > { %v2356_v16 = vsel %vm816_vm1, %v951_v9, 0.0 }
 0x18b   : > { %v885_v1 = vadd.f32 %v884_v57, %v883_v60  ;;  %v986_v3 = vadd.f32 %v985_v62, %v984_v59 }
 0x18d   : > { %v988_v7 = vadd.f32 %v987_v63, %v986_v3  ;;  %v887_v8 = vadd.f32 %v886_v5, %v885_v1 }
 0x18f   : > { %v889_v13 = vadd.f32 %v888_v2, %v887_v8  ;;  %v990_v15 = vadd.f32 %v989_v50, %v988_v7 }
 0x190   : > { %1624 = shalt.err (!%p1621_p9)
}
 0x191   : > { %s1625_s8 = scalar_lea.hbm %s2329_s20, 4096  ;;  %s1629_s28 = scalar_lea.hbm %s2530_s4, 8192 }
 0x192   : > { %p1626_p3 = scmp.ne.s32.totalorder %s2329_s20, %s1625_s8  ;;  %p1630_p12 = scmp.lt.u32.totalorder %s2329_s20, %s2530_s4 }
 0x193   : > { %p1631_p2 = scmp.lt.u32.totalorder %s1629_s28, %s1625_s8  ;;  %p1633_p6 = scmp.lt.u32.totalorder %s1625_s8, %s2329_s20 }
 0x194   : > { %p1627_p7 = pnand %p1626_p3, %p1957_p1 }
 0x195   : > { %p1632_p4 = por %p1631_p2, %p1630_p12 }
 0x196   : > { %p1628_p11 = pneg %p1627_p7 }
 0x197   : > { %p1634_p8 = por %p1633_p6, %p1632_p4 }
 0x199   : > { %p1635_p0 = pnand %p1634_p8, %p1628_p11 }
 0x19b   : > { %1638 = shalt.err (!%p1635_p0)
}
 0x19c   : > { %s1770_s19 = smov 128   ;;  %s1771_s18 = smov 8   ;;  %v890_v17 = vsel %vm816_vm1, %v2230_v0, 0.0  ;;  %v892_v19 = vsel %vm816_vm1, %v2255_v18, 0.0  ;;  %v992_v20 = vadd.f32 %v991_v11, %v990_v15  ;;  %v993_v22 = vsel %vm816_vm1, %v941_v6, 0.0 }
 0x19d   : > { %1404 = dma.vmem_to_hbm [thread:$0]  (%p1957_p1), %s2331_s11, 4096, %s2329_s20, %s1023_s9, %s1770_s19, %s1770_s19, %s1771_s18   ;;  %v891_v21 = vadd.f32 %v890_v17, %v889_v13  ;;  %v943_v23 = vmul.f32 %v2248_v14, %v2248_v14  ;;  %v995_v24 = vsel %vm816_vm1, %v942_v12, 0.0  ;;  %v944_v25 = vmul.f32 %v2275_v33, %v2275_v33 }
 0x19e   : > { %v994_v27 = vadd.f32 %v993_v22, %v992_v20  ;;  %v894_v0 = vsel %vm816_vm1, %v2248_v14, 0.0  ;;  %v896_v18 = vsel %vm816_vm1, %v2275_v33, 0.0  ;;  %v945_v32 = vmul.f32 %v2266_v28, %v2266_v28  ;;  %s1027_s11 = sand.u32 1, %s1840_s27   ;;  %s1299_s20 = sshll.u32 %s1753_s24, 4 }
 0x19f   : > { %v893_v26 = vadd.f32 %v892_v19, %v891_v21  ;;  %v997_v31 = vsel %vm816_vm1, %v943_v23, 0.0  ;;  %v999_v34 = vsel %vm816_vm1, %v944_v25, 0.0  ;;  %v946_v35 = vmul.f32 %v2293_v48, %v2293_v48  ;;  %s340_s9 = scalar_lea.vmem [#allocation11], %s2015_s15  ;;  %s2537_s8 = scalar_lea.vmem [#allocation13], %s2015_s15 }
 0x1a0   : > { %v996_v29 = vadd.f32 %v995_v24, %v994_v27  ;;  %v898_v14 = vsel %vm816_vm1, %v2266_v28, 0.0  ;;  %v900_v33 = vsel %vm816_vm1, %v2293_v48, 0.0  ;;  %v1001_v42 = vsel %vm816_vm1, %v945_v32, 0.0  ;;  %s1064_s14 = sshll.u32 %s340_s9, 4  ;;  %s1078_s29 = sshll.u32 %s2537_s8, 4  ;;  %s2442_s14 = int_to_ptr.vmem [resolvable:$true] %s1064_s14  ;;  %s2450_s29 = int_to_ptr.vmem [resolvable:$true] %s1078_s29 }
 0x1a1   : > { %v895_v30 = vadd.f32 %v894_v0, %v893_v26  ;;  %v947_v43 = vmul.f32 %v2288_v45, %v2288_v45  ;;  %v1003_v44 = vsel %vm816_vm1, %v946_v35, 0.0  ;;  %v948_v46 = vmul.f32 %v2315_v61, %v2315_v61  ;;  %s2440_s16 = scalar_lea.hbm %s2531_s5, %s1299_s20  ;;  %s2448_s13 = scalar_lea.hbm %s2532_s6, %s1299_s20 }
 0x1a2   : > { %v998_v38 = vadd.f32 %v997_v31, %v996_v29  ;;  %v902_v28 = vsel %vm816_vm1, %v2288_v45, 0.0  ;;  %v904_v48 = vsel %vm816_vm1, %v2315_v61, 0.0  ;;  %v949_v53 = vmul.f32 %v2308_v58, %v2308_v58  ;;  %s2452_s19 = scalar_lea.sflag [#allocation12], %s1027_s11  ;;  %s1639_s18 = scalar_lea.vmem %s2442_s14, 16 }
 0x1a3   : > { %v897_v37 = vadd.f32 %v896_v18, %v895_v30  ;;  %v1005_v40 = vsel %vm816_vm1, %v947_v43, 0.0  ;;  %v1007_v55 = vsel %vm816_vm1, %v948_v46, 0.0  ;;  %v950_v56 = vmul.f32 %v2344_v10, %v2344_v10  ;;  %p1640_p5 = scmp.ne.s32.totalorder %s2442_s14, %s1639_s18  ;;  %s1772_s7 = smov [#allocation11]  }
 0x1a4   : > { %v1000_v39 = vadd.f32 %v999_v34, %v998_v38  ;;  %v906_v45 = vsel %vm816_vm1, %v2308_v58, 0.0  ;;  %v908_v60 = vsel %vm816_vm1, %v2344_v10, 0.0  ;;  %v1009_v36 = vsel %vm816_vm1, %v949_v53, 0.0  ;;  %s1643_s28 = sshll.u32 %s1772_s7, 4  ;;  %s1644_s28 = int_to_ptr.vmem [resolvable:$false] %s1643_s28 }
 0x1a5   : > { %v899_v41 = vadd.f32 %v898_v14, %v897_v37  ;;  %v1011_v63 = vsel %vm816_vm1, %v950_v56, 0.0  ;;  %v910_v3 = vsel %vm816_vm1, %v2337_v4, 0.0  ;;  %vm918_vm2 = vcmask 253952   ;;  %p1641_p10 = pnand %p1640_p5, %p1957_p1  ;;  %s1645_s8 = scalar_lea.vmem %s1644_s28, 32 }
 0x1a6   : > { %v1002_v49 = vadd.f32 %v1001_v42, %v1000_v39  ;;  %p1646_p9 = scmp.lt.s32.totalorder %s2442_s14, %s1644_s28  ;;  %p1647_p3 = scmp.lt.s32.totalorder %s1645_s8, %s1639_s18 }
 0x1a7   : > { %v901_v47 = vadd.f32 %v900_v33, %v899_v41  ;;  %p1642_p13 = pneg %p1641_p10 }
 0x1a8   : > { %v1004_v51 = vadd.f32 %v1003_v44, %v1002_v49  ;;  %p1648_p7 = por %p1647_p3, %p1646_p9 }
 0x1a9   : > { %v903_v52 = vadd.f32 %v902_v28, %v901_v47 }
 0x1aa   : > { %v1006_v59 = vadd.f32 %v1005_v40, %v1004_v51  ;;  %p1649_p11 = pnand %p1648_p7, %p1642_p13 }
 0x1ab   : > { %v905_v57 = vadd.f32 %v904_v48, %v903_v52 }
 0x1ac   : > { %v1008_v61 = vadd.f32 %v1007_v55, %v1006_v59 }
 0x1ad   : > { %v907_v62 = vadd.f32 %v906_v45, %v905_v57 }
 0x1ae   : > { %v1010_v1 = vadd.f32 %v1009_v36, %v1008_v61 }
 0x1af   : > { %v909_v54 = vadd.f32 %v908_v60, %v907_v62 }
 0x1b0   : > { %v1012_v2 = vadd.f32 %v1011_v63, %v1010_v1 }
 0x1b1   : > { %v911_v5 = vadd.f32 %v910_v3, %v909_v54 }
 0x1b2   : > { %v1014_v7 = vadd.f32 %v2356_v16, %v1012_v2 }
 0x1b3   : > { %v912_v58 = vrot.slane %v911_v5, 4 }
 0x1b4   : > { %v1015_v9 = vrot.slane %v1014_v7, 4 }
 0x1b5   : > { %v913_v8 = vadd.f32 %v912_v58, %v911_v5 }
 0x1b6   : > { %v1016_v50 = vadd.f32 %v1015_v9, %v1014_v7 }
 0x1b7   : > { %v914_v10 = vrot.slane %v913_v8, 2 }
 0x1b8   : > { %v1017_v11 = vrot.slane %v1016_v50, 2 }
 0x1b9   : > { %v915_v6 = vadd.f32 %v914_v10, %v913_v8 }
 0x1ba   : > { %v1018_v4 = vadd.f32 %v1017_v11, %v1016_v50 }
 0x1bb   : > { %v916_v12 = vrot.slane %v915_v6, 1 }
 0x1bc   : > { %v1019_v15 = vrot.slane %v1018_v4, 1 }
 0x1bd   : > { %v917_v13 = vadd.f32 %v916_v12, %v915_v6 }
 0x1be   : > { %v1020_v16 = vadd.f32 %v1019_v15, %v1018_v4 }
 0x1bf   : > { %919 = vst.msk [vmem:[%s340_s9] sm:$0x1] %vm918_vm2, %v917_v13 }
 0x1c0   : > { %1652 = shalt.err (!%p1649_p11)
}
 0x1c1   : > { %s1653_s11 = scalar_lea.hbm %s2440_s16, 16  ;;  %s1657_s24 = scalar_lea.hbm %s2531_s5, 32 }
 0x1c2   : > { %p1654_p12 = scmp.ne.s32.totalorder %s2440_s16, %s1653_s11  ;;  %p1658_p6 = scmp.lt.u32.totalorder %s2440_s16, %s2531_s5 }
 0x1c3   : > { %p1659_p8 = scmp.lt.u32.totalorder %s1657_s24, %s1653_s11  ;;  %p1661_p5 = scmp.lt.u32.totalorder %s1653_s11, %s2440_s16 }
 0x1c4   : > { %p1655_p2 = pnand %p1654_p12, %p1957_p1 }
 0x1c5   : > { %p1660_p0 = por %p1659_p8, %p1658_p6 }
 0x1c6   : > { %p1656_p4 = pneg %p1655_p2 }
 0x1c7   : > { %p1662_p10 = por %p1661_p5, %p1660_p0 }
 0x1c9   : > { %p1663_p13 = pnand %p1662_p10, %p1656_p4 }
 0x1cb   : > { %1666 = shalt.err (!%p1663_p13)
}
 0x1cc   : > { %1405 = dma.vmem_to_hbm [thread:$0]  (%p1957_p1), %s2442_s14, 16, %s2440_s16, %s2452_s19  }
 0x1cd   : > { %s2552_s8 = scalar_lea.vmem [#allocation13], %s2015_s15  ;;  %s1667_s18 = scalar_lea.vmem %s2450_s29, 16 }
 0x1ce   : > { %1021 = vst.msk [vmem:[%s2552_s8] sm:$0x1] %vm918_vm2, %v1020_v16  ;;  %p1668_p9 = scmp.ne.s32.totalorder %s2450_s29, %s1667_s18  ;;  %s1773_s28 = smov [#allocation13]  }
 0x1cf   : > { %s1671_s11 = sshll.u32 %s1773_s28, 4  ;;  %s1672_s11 = int_to_ptr.vmem [resolvable:$false] %s1671_s11 }
 0x1d0   : > { %p1669_p3 = pnand %p1668_p9, %p1957_p1  ;;  %s1673_s20 = scalar_lea.vmem %s1672_s11, 32 }
 0x1d1   : > { %p1674_p11 = scmp.lt.s32.totalorder %s2450_s29, %s1672_s11  ;;  %p1675_p12 = scmp.lt.s32.totalorder %s1673_s20, %s1667_s18 }
 0x1d2   : > { %p1670_p7 = pneg %p1669_p3 }
 0x1d3   : > { %p1676_p2 = por %p1675_p12, %p1674_p11 }
 0x1d5   : > { %p1677_p4 = pnand %p1676_p2, %p1670_p7 }
 0x1d7   : > { %1680 = shalt.err (!%p1677_p4)
}
 0x1d8   : > { %s1681_s15 = scalar_lea.hbm %s2448_s13, 16  ;;  %s1685_s9 = scalar_lea.hbm %s2532_s6, 32 }
 0x1d9   : > { %p1682_p6 = scmp.ne.s32.totalorder %s2448_s13, %s1681_s15  ;;  %p1686_p5 = scmp.lt.u32.totalorder %s2448_s13, %s2532_s6 }
 0x1da   : > { %p1687_p10 = scmp.lt.u32.totalorder %s1685_s9, %s1681_s15  ;;  %p1689_p9 = scmp.lt.u32.totalorder %s1681_s15, %s2448_s13 }
 0x1db   : > { %p1683_p8 = pnand %p1682_p6, %p1957_p1 }
 0x1dc   : > { %p1688_p13 = por %p1687_p10, %p1686_p5 }
 0x1dd   : > { %p1684_p0 = pneg %p1683_p8 }
 0x1de   : > { %p1690_p3 = por %p1689_p9, %p1688_p13 }
 0x1e0   : > { %p1691_p7 = pnand %p1690_p3, %p1684_p0 }
 0x1e2   : > { %1694 = shalt.err (!%p1691_p7)
}
 0x1e3   : > { %1406 = dma.vmem_to_hbm [thread:$0]  (%p1957_p1), %s2450_s29, 16, %s2448_s13, %s2452_s19  }
 0x1e4 PF: > { %s1090_s7 = sand.u32 1, %s1741_s21   ;;  %p2553_p11 = scmp.ne.s32.totalorder %s2539_s30, 0 }
 0x1e5   : > { %p2554_p12 = scmp.ge.s32.totalorder %s1761_s26, 2  ;;  %s1091_s8 = scalar_lea.sflag [#allocation4], %s1090_s7 }
 0x1e7   : > { %p1425_p2 = pnand %p2554_p12, %p2553_p11 }
 0x1e9   : > { %1732 = dma.done.wait (!%p1425_p2), %s1091_s8, 4096  }
 0x1ea   : > { %1734 = vsyncadd (!%p1425_p2), %s1091_s8, 4294963200  ;;  %s2555_s18 = sadd.s32 4294967294, %s1761_s26  }
 0x1eb   : > { %s1099_s28 = sand.u32 1, %s2555_s18  }
 0x1ec   : > { %s1100_s11 = scalar_lea.sflag [#allocation12], %s1099_s28 }
 0x1ed   : > { %1736 = dma.done.wait (!%p1425_p2), %s1100_s11, 32  }
 0x1ee   : > { %1738 = vsyncadd (!%p1425_p2), %s1100_s11, 4294967264  ;;  %s28_s26 = sadd.s32 1, %s1761_s26   ;;  %s2556_s21 = smov %s1745_s22 }
 0x1ef   : > { %p25_p1 = scmp.ge.s32.totalorder %s28_s26, 4   ;;  %s2557_s22 = smov %s1749_s23 }
 0x1f0   : > { %s2558_s23 = smov %s1969_s10  ;;  %s2559_s24 = smov %s1757_s25 }
 0x1f1   : > { %s2560_s25 = smov %s2562_s17  ;;  %27 = sbr.rel (!%p25_p1) target bundleno = 10 (0xa), region = 125 }
 0x1f8   :  { %1112 = vsyncpa [#allocation3], 1 }
 0x1f9   :  { %1114 = vsyncpa [#allocation3 + $0x1], 1 }
 0x1fa   :  { %1115 = vsyncpa [#allocation6], 1 }
 0x1fb   :  { %1116 = vsyncpa [#allocation9], 1 }
 0x1fc   :  { %1117 = vsyncpa [#allocation4], 1 }
 0x1fd   :  { %1119 = vsyncpa [#allocation4 + $0x1], 1 }
 0x1fe   :  { %1120 = vsyncpa [#allocation12], 1 }
 0x1ff   :  { %1122 = vsyncpa [#allocation12 + $0x1], 1 }

// kernel: bottleneck_forward.5
= control target key start
LH: loop header
LB: loop body
LE: loop exit
PB: predicated region body
PF: predicated region fallthrough
CT: control target
= control target key end

     0   :  { %s7572_s0 = inlined_call_operand.hbm [shape: f32[2,16,16,8], index: 0, kind: input, shape index: {}, may-alias: {0,1,2}]   ;;  %s7573_s1 = inlined_call_operand.hbm [shape: f32[2,16,16,8], index: 1, kind: input, shape index: {}, may-alias: {0,1,2}]   ;;  %s7574_s2 = inlined_call_operand.hbm [shape: f32[2,16,16,8], index: 2, kind: input, shape index: {}, may-alias: {0,1,2}]   ;;  %s7575_s3 = inlined_call_operand.hbm [shape: f32[3,3,8,8], index: 3, kind: input, shape index: {}]   ;;  %s7576_s4 = inlined_call_operand.hbm [shape: f32[1,8], index: 4, kind: input, shape index: {}]   ;;  %s7577_s5 = inlined_call_operand.hbm [shape: f32[1,8], index: 5, kind: input, shape index: {}]   ;;  %s7578_s6 = inlined_call_operand.hbm [shape: f32[2,16,16,8], index: 6, kind: output, shape index: {0}]   ;;  %s7579_s7 = inlined_call_operand.hbm [shape: f32[2,1,8], index: 7, kind: output, shape index: {1}]   ;;  %s7580_s8 = inlined_call_operand.hbm [shape: f32[2,1,8], index: 8, kind: output, shape index: {2}]  }
   0x1   :  { %7662 = sst [smem:[#allocation66_spill]] %s7573_s1 }
   0x2   :  { %7663 = sst [smem:[#allocation67_spill]] %s7575_s3 }
   0x3   :  { %7664 = sst [smem:[#allocation68_spill]] %s7578_s6 }
   0x4   :  { %7665 = sst [smem:[#allocation69_spill]] %s7579_s7 }
   0x5   :  { %7666 = sst [smem:[#allocation70_spill]] %s7580_s8 }
   0x6   :  { %14 = vsyncpa [#allocation3], 0 }
   0x7   :  { %16 = vsyncpa [#allocation3 + $0x1], 0 }
   0x8   :  { %17 = vsyncpa [#allocation6], 0 }
   0x9   :  { %19 = vsyncpa [#allocation6 + $0x1], 0 }
   0xa   :  { %20 = vsyncpa [#allocation9], 0 }
   0xb   :  { %21 = vsyncpa [#allocation12], 0 }
   0xc   :  { %22 = vsyncpa [#allocation4], 0 }
   0xd   :  { %24 = vsyncpa [#allocation4 + $0x1], 0 }
   0xe   :  { %25 = vsyncpa [#allocation15], 0 }
   0xf   :  { %27 = vsyncpa [#allocation15 + $0x1], 0  ;;  %s5917_s27 = smov 0   ;;  %s5919_s28 = smov 0  }
  0x10   :  { %s5921_s29 = smov 0   ;;  %s5923_s30 = smov 0  }
  0x11   :  { %s5925_s9 = smov 0   ;;  %s5927_s10 = smov 0  }
  0x12 LB: > { %7667 = sst [smem:[#allocation23_spill]] %s5836_s27  ;;  %s5948_s11 = sadd.s32 4294967295, %s5856_s10   ;;  %s5856_s10 = sphi %s5927_s10, %s33_s10   ;;  %s5852_s9 = sphi %s5925_s9, %s7787_s9   ;;  %s5848_s30 = sphi %s5923_s30, %s7786_s30   ;;  %s5844_s29 = sphi %s5921_s29, %s7790_s29   ;;  %s5840_s28 = sphi %s5919_s28, %s7789_s28   ;;  %s5836_s27 = sphi %s5917_s27, %s7788_s27  }
  0x13   : > { %7668 = sst [smem:[#allocation24_spill]] %s5852_s9  ;;  %s7581_s12 = sadd.s32 4294967294, %s5856_s10  }
  0x14   : > { %7669 = sst [smem:[#allocation25_spill]] %s5856_s10  ;;  %p67_p0 = scmp.ne.s32.totalorder %s5844_s29, %s5840_s28 }
  0x15   : > { %p68_p1 = scmp.eq.s32.totalorder %s5856_s10, 0  ;;  %p73_p2 = scmp.ne.s32.totalorder %s5840_s28, %s5836_s27 }
  0x16   : > { %p7584_p3 = scmp.eq.s32.totalorder %s5948_s11, 0  ;;  %p224_p5 = scmp.eq.s32.totalorder %s5948_s11, 1 }
  0x17   : > { %p5957_p4 = por %p68_p1, %p67_p0  ;;  %p230_p7 = scmp.eq.s32.totalorder %s7581_s12, 1 }
  0x18   : > { %p5964_p6 = por %p7584_p3, %p73_p2  ;;  %p5970_p8 = por %p224_p5, %p67_p0 }
  0x19   : > { %p4086_p9 = scmp.ge.s32.totalorder %s5856_s10, 1  ;;  %p5975_p10 = por %p230_p7, %p73_p2 }
  0x1a   : > { %s7671_s14 = scalar_select %p5964_p6, 1, 0 }
  0x1b   : > { %s7672_s15 = scalar_select %p5970_p8, 1, 0 }
  0x1c   : > { %s7674_s16 = scalar_select %p5975_p10, 1, 0 }
  0x1d   : > { %7673 = sst [smem:[#allocation26_spill]] %s7672_s15  ;;  %p293_p11 = scmp.lt.s32.totalorder %s5856_s10, 3 }
  0x1e   : > { %7675 = sst [smem:[#allocation27_spill]] %s7674_s16  ;;  %s5858_s18 = smov [#allocation8]  }
  0x1f   : > { %p5980_p12 = pnand %p4086_p9, %p293_p11  ;;  %s305_s19 = sshll.u32 %s5858_s18, 4  ;;  %s5984_s19 = int_to_ptr.vmem [resolvable:$true] %s305_s19 }
  0x20   : > { %s45_s21 = sadd.s32 1, %s5852_s9  ;;  %s7679_s3 = sld [smem:[#allocation67_spill]] }
  0x21   : > { %s7676_s17 = scalar_select %p5980_p12, 1, 0 }
  0x22   : > { %p5434_p13 = pneg %p5980_p12  ;;  %p5997_p2 = scmp.ge.s32.totalorder %s45_s21, 2 }
  0x24   : > { %p5991_p1 = pnand %p5434_p13, %p7584_p3 }
  0x26   : > { %s7677_s20 = scalar_select %p5991_p1, 1, 0 }
  0x27   : > { %s5528_s26 = scalar_lea.hbm %s7679_s3, 1152  ;;  %p6009_p7 = pneg %p5991_p1 }
  0x28   : > { %p5529_p5 = scmp.ne.s32.totalorder %s7679_s3, %s5528_s26  ;;  %p5535_p13 = scmp.lt.u32.totalorder %s5528_s26, %s7679_s3 }
  0x29   : > { %s7680_s16 = scalar_select %p6009_p7, 1, 0 }
  0x2a   : > { %p5531_p9 = pnand %p6009_p7, %p5529_p5 }
  0x2c   : > { %p5532_p11 = pneg %p5531_p9 }
  0x2e   : > { %p5537_p0 = pnand %p5535_p13, %p5532_p11 }
  0x30   : > { %5540 = shalt.err (!%p5537_p0)
}
  0x31   : > { %s5541_s12 = scalar_lea.vmem %s5984_s19, 1152  ;;  %p5549_p6 = scmp.lt.s32.totalorder %s5984_s19, %s5984_s19 }
  0x32   : > { %p5542_p3 = scmp.ne.s32.totalorder %s5984_s19, %s5541_s12  ;;  %p5550_p12 = scmp.lt.s32.totalorder %s5541_s12, %s5541_s12 }
  0x34   : > { %p5544_p10 = pnand %p5542_p3, %p6009_p7  ;;  %p5551_p5 = por %p5550_p12, %p5549_p6 }
  0x36   : > { %p5545_p8 = pneg %p5544_p10 }
  0x38   : > { %p5552_p9 = pnand %p5551_p5, %p5545_p8 }
  0x3a   : > { %5555 = shalt.err (!%p5552_p9)
}
  0x3b   : > { %s7590_s24 = smov 128   ;;  %s7593_s27 = smov 8  }
  0x3c   : > { %5437 = dma.hbm_to_vmem [thread:$0]  (!%p5991_p1), %s7679_s3, 1152, %s5984_s19, [#allocation9], %s7590_s24, %s7590_s24, %s7593_s27  }
  0x3d   : > { %s7792_s21 = smov (%p5997_p2, %s45_s21), 0  ;;  %p5467_p3 = scmp.lt.s32.totalorder %s5856_s10, 2 }
  0x3e   : > { %7681 = sst [smem:[#allocation28_spill]] %s7792_s21  ;;  %s7592_s26 = sand.u32 1, %s5844_s29  }
  0x3f   : > { %s55_s18 = ssub.s32 %s5852_s9, %s7792_s21  ;;  %s6043_s12 = sshll.u32 %s7592_s26, 8 }
  0x40   : > { %p58_p6 = scmp.eq.s32.totalorder %s55_s18, 0  ;;  %s6046_s8 = sshll.u32 %s5852_s9, 12 }
  0x41   : > { %p6050_p8 = pnand %p5467_p3, %p5957_p4  ;;  %s368_s19 = sand.u32 1, %s5856_s10  }
  0x42   : > { %s7683_s23 = sadd.s32 1, %s5844_s29  ;;  %s7685_s1 = sld [smem:[#allocation66_spill]] }
  0x43   : > { %s7682_s7 = scalar_select %p6050_p8, 1, 0 }
  0x44   : > { %s6058_s22 = scalar_select %p58_p6, %s5844_s29, %s7683_s23  }
  0x45   : > { %s372_s13 = scalar_lea.vmem [#allocation5], %s6043_s12  ;;  %s5861_s27 = smov [#allocation10]  }
  0x46   : > { %7684 = sst [smem:[#allocation29_spill]] %s6058_s22  ;;  %s382_s18 = sshll.u32 %s372_s13, 4  ;;  %s6067_s18 = int_to_ptr.vmem [resolvable:$true] %s382_s18 }
  0x47   : > { %s6069_s3 = sshll.u32 %s5861_s27, 4  ;;  %s6071_s21 = scalar_lea.sflag [#allocation6], %s368_s19  ;;  %s320_s3 = int_to_ptr.vmem [resolvable:$true] %s6069_s3 }
  0x48   : > { %s6064_s26 = scalar_lea.hbm %s7685_s1, %s6046_s8  ;;  %p6077_p10 = pneg %p6050_p8 }
  0x49   : > { %s5556_s23 = scalar_lea.hbm %s6064_s26, 4096  ;;  %s5561_s9 = scalar_lea.hbm %s7685_s1, 8192 }
  0x4a   : > { %p5557_p4 = scmp.ne.s32.totalorder %s6064_s26, %s5556_s23  ;;  %p5562_p2 = scmp.lt.u32.totalorder %s6064_s26, %s7685_s1 }
  0x4b   : > { %s7686_s24 = scalar_select %p6077_p10, 1, 0 }
  0x4c   : > { %p5559_p12 = pnand %p6077_p10, %p5557_p4  ;;  %p5563_p11 = scmp.lt.u32.totalorder %s5561_s9, %s5556_s23 }
  0x4d   : > { %p5565_p5 = scmp.lt.u32.totalorder %s5556_s23, %s6064_s26 }
  0x4e   : > { %p5560_p0 = pneg %p5559_p12  ;;  %p5564_p13 = por %p5563_p11, %p5562_p2 }
  0x50   : > { %p5566_p9 = por %p5565_p5, %p5564_p13 }
  0x52   : > { %p5567_p3 = pnand %p5566_p9, %p5560_p0 }
  0x54   : > { %5570 = shalt.err (!%p5567_p3)
}
  0x55   : > { %s5571_s19 = scalar_lea.vmem %s6067_s18, 4096  ;;  %s5862_s25 = smov [#allocation5]  }
  0x56   : > { %p5572_p6 = scmp.ne.s32.totalorder %s6067_s18, %s5571_s19  ;;  %s5576_s13 = sshll.u32 %s5862_s25, 4  ;;  %s5577_s13 = int_to_ptr.vmem [resolvable:$false] %s5576_s13 }
  0x57   : > { %s5578_s22 = scalar_lea.vmem %s5577_s13, 8192  ;;  %p5579_p1 = scmp.lt.s32.totalorder %s6067_s18, %s5577_s13 }
  0x58   : > { %p5574_p4 = pnand %p5572_p6, %p6077_p10  ;;  %p5580_p7 = scmp.lt.s32.totalorder %s5578_s22, %s5571_s19 }
  0x5a   : > { %p5575_p12 = pneg %p5574_p4  ;;  %p5581_p2 = por %p5580_p7, %p5579_p1 }
  0x5c   : > { %p5582_p11 = pnand %p5581_p2, %p5575_p12 }
  0x5e   : > { %5585 = shalt.err (!%p5582_p11)
}
  0x5f   : > { %s7687_s9 = smov 8   ;;  %s7688_s23 = smov 128  }
  0x60   : > { %5450 = dma.hbm_to_vmem [thread:$0]  (!%p6050_p8), %s6064_s26, 4096, %s6067_s18, %s6071_s21, %s7688_s23, %s7688_s23, %s7687_s9  }
  0x61   : > { %s5586_s13 = scalar_lea.hbm %s7576_s4, 16  ;;  %p7689_p7 = scmp.ne.s32.totalorder %s7680_s16, 0 }
  0x62   : > { %p5587_p1 = scmp.ne.s32.totalorder %s7576_s4, %s5586_s13  ;;  %p5593_p5 = scmp.lt.u32.totalorder %s5586_s13, %s7576_s4 }
  0x64   : > { %p5589_p0 = pnand %p5587_p1, %p7689_p7 }
  0x66   : > { %p5590_p13 = pneg %p5589_p0 }
  0x68   : > { %p5595_p9 = pnand %p5593_p5, %p5590_p13 }
  0x6a   : > { %5598 = shalt.err (!%p5595_p9)
}
  0x6b   : > { %s5599_s15 = scalar_lea.vmem %s320_s3, 16  ;;  %s5606_s26 = scalar_lea.vmem %s320_s3, 32 }
  0x6c   : > { %p5600_p3 = scmp.ne.s32.totalorder %s320_s3, %s5599_s15  ;;  %p5607_p12 = scmp.lt.s32.totalorder %s320_s3, %s320_s3 }
  0x6d   : > { %p5608_p2 = scmp.lt.s32.totalorder %s5606_s26, %s5599_s15 }
  0x6e   : > { %p5602_p6 = pnand %p5600_p3, %p7689_p7 }
  0x6f   : > { %p5609_p11 = por %p5608_p2, %p5607_p12 }
  0x70   : > { %p5603_p4 = pneg %p5602_p6 }
  0x72   : > { %p5610_p8 = pnand %p5609_p11, %p5603_p4 }
  0x74   : > { %5613 = shalt.err (!%p5610_p8)
}
  0x75   : > { %p7690_p1 = scmp.ne.s32.totalorder %s7677_s20, 0  ;;  %s5863_s1 = smov [#allocation11]  }
  0x76   : > { %s330_s10 = sshll.u32 %s5863_s1, 4  ;;  %s5614_s19 = scalar_lea.hbm %s7577_s5, 16  ;;  %s331_s10 = int_to_ptr.vmem [resolvable:$true] %s330_s10 }
  0x77   : > { %5440 = dma.hbm_to_vmem [thread:$0]  (!%p7690_p1), %s7576_s4, 16, %s320_s3, [#allocation9]  }
  0x78   : > { %p5615_p0 = scmp.ne.s32.totalorder %s7577_s5, %s5614_s19  ;;  %p5621_p5 = scmp.lt.u32.totalorder %s5614_s19, %s7577_s5 }
  0x7a   : > { %p5617_p8 = pnand %p5615_p0, %p7689_p7 }
  0x7c   : > { %p5618_p13 = pneg %p5617_p8 }
  0x7e   : > { %p5623_p9 = pnand %p5621_p5, %p5618_p13 }
  0x80   : > { %5626 = shalt.err (!%p5623_p9)
}
  0x81   : > { %s5627_s3 = scalar_lea.vmem %s331_s10, 16  ;;  %s5634_s18 = scalar_lea.vmem %s331_s10, 32 }
  0x82   : > { %p5628_p3 = scmp.ne.s32.totalorder %s331_s10, %s5627_s3  ;;  %p5635_p12 = scmp.lt.s32.totalorder %s331_s10, %s331_s10 }
  0x83   : > { %p5636_p2 = scmp.lt.s32.totalorder %s5634_s18, %s5627_s3 }
  0x84   : > { %p5630_p6 = pnand %p5628_p3, %p7689_p7 }
  0x85   : > { %p5637_p11 = por %p5636_p2, %p5635_p12 }
  0x86   : > { %p5631_p4 = pneg %p5630_p6 }
  0x88   : > { %p5638_p10 = pnand %p5637_p11, %p5631_p4 }
  0x8a   : > { %5641 = shalt.err (!%p5638_p10)
}
  0x8b   : > { %5443 = dma.hbm_to_vmem [thread:$0]  (!%p7690_p1), %s7577_s5, 16, %s331_s10, [#allocation12]  }
  0x8c   : > { %s6145_s25 = scalar_lea.hbm %s7572_s0, %s6046_s8  ;;  %s345_s13 = scalar_lea.vmem [#allocation2], %s6043_s12 }
  0x8d   : > { %s358_s19 = sshll.u32 %s345_s13, 4  ;;  %s7691_s20 = sand.u32 1, %s5844_s29   ;;  %s6148_s19 = int_to_ptr.vmem [resolvable:$true] %s358_s19 }
  0x8e   : > { %s6152_s22 = scalar_lea.sflag [#allocation3], %s7691_s20  ;;  %s5642_s15 = scalar_lea.hbm %s6145_s25, 4096 }
  0x8f   : > { %p5643_p10 = scmp.ne.s32.totalorder %s6145_s25, %s5642_s15  ;;  %p7692_p7 = scmp.ne.s32.totalorder %s7686_s24, 0 }
  0x90   : > { %s5647_s3 = scalar_lea.hbm %s7572_s0, 8192  ;;  %p5648_p8 = scmp.lt.u32.totalorder %s6145_s25, %s7572_s0 }
  0x91   : > { %p5645_p1 = pnand %p5643_p10, %p7692_p7  ;;  %p5649_p13 = scmp.lt.u32.totalorder %s5647_s3, %s5642_s15 }
  0x92   : > { %p5651_p9 = scmp.lt.u32.totalorder %s5642_s15, %s6145_s25 }
  0x93   : > { %p5646_p0 = pneg %p5645_p1  ;;  %p5650_p5 = por %p5649_p13, %p5648_p8 }
  0x95   : > { %p5652_p3 = por %p5651_p9, %p5650_p5 }
  0x97   : > { %p5653_p6 = pnand %p5652_p3, %p5646_p0 }
  0x99   : > { %5656 = shalt.err (!%p5653_p6)
}
  0x9a   : > { %s5657_s27 = scalar_lea.vmem %s6148_s19, 4096  ;;  %s5864_s1 = smov [#allocation2]  }
  0x9b   : > { %p5658_p4 = scmp.ne.s32.totalorder %s6148_s19, %s5657_s27  ;;  %s5662_s16 = sshll.u32 %s5864_s1, 4  ;;  %s5663_s16 = int_to_ptr.vmem [resolvable:$false] %s5662_s16 }
  0x9c   : > { %s5664_s13 = scalar_lea.vmem %s5663_s16, 8192  ;;  %p5665_p11 = scmp.lt.s32.totalorder %s6148_s19, %s5663_s16 }
  0x9d   : > { %p5660_p12 = pnand %p5658_p4, %p7692_p7  ;;  %p5666_p10 = scmp.lt.s32.totalorder %s5664_s13, %s5657_s27 }
  0x9f   : > { %p5661_p2 = pneg %p5660_p12  ;;  %p5667_p1 = por %p5666_p10, %p5665_p11 }
  0xa1   : > { %p5668_p8 = pnand %p5667_p1, %p5661_p2 }
  0xa3   : > { %5671 = shalt.err (!%p5668_p8)
}
  0xa4   : > { %p7693_p0 = scmp.ne.s32.totalorder %s7682_s7, 0  ;;  %s6183_s10 = scalar_lea.hbm %s7574_s2, %s6046_s8 }
  0xa5   : > { %s396_s26 = scalar_lea.vmem [#allocation7], %s6043_s12  ;;  %s5672_s18 = scalar_lea.hbm %s6183_s10, 4096 }
  0xa6   : > { %5447 = dma.hbm_to_vmem [thread:$0]  (!%p7693_p0), %s6145_s25, 4096, %s6148_s19, %s6152_s22, %s7688_s23, %s7688_s23, %s7687_s9  }
  0xa7   : > { %s409_s3 = sshll.u32 %s396_s26, 4  ;;  %p5673_p13 = scmp.ne.s32.totalorder %s6183_s10, %s5672_s18  ;;  %s6186_s3 = int_to_ptr.vmem [resolvable:$true] %s409_s3 }
  0xa8   : > { %s5677_s19 = scalar_lea.hbm %s7574_s2, 8192  ;;  %p5678_p3 = scmp.lt.u32.totalorder %s6183_s10, %s7574_s2 }
  0xa9   : > { %p5675_p5 = pnand %p5673_p13, %p7692_p7  ;;  %p5679_p6 = scmp.lt.u32.totalorder %s5677_s19, %s5672_s18 }
  0xaa   : > { %p5681_p12 = scmp.lt.u32.totalorder %s5672_s18, %s6183_s10 }
  0xab   : > { %p5676_p9 = pneg %p5675_p5  ;;  %p5680_p4 = por %p5679_p6, %p5678_p3 }
  0xad   : > { %p5682_p2 = por %p5681_p12, %p5680_p4 }
  0xaf   : > { %p5683_p11 = pnand %p5682_p2, %p5676_p9 }
  0xb1   : > { %5686 = shalt.err (!%p5683_p11)
}
  0xb2   : > { %s5687_s12 = scalar_lea.vmem %s6186_s3, 4096  ;;  %s5865_s27 = smov [#allocation7]  }
  0xb3   : > { %p5688_p10 = scmp.ne.s32.totalorder %s6186_s3, %s5687_s12  ;;  %s5692_s1 = sshll.u32 %s5865_s27, 4  ;;  %s5693_s1 = int_to_ptr.vmem [resolvable:$false] %s5692_s1 }
  0xb4   : > { %s5694_s16 = scalar_lea.vmem %s5693_s1, 8192  ;;  %p5695_p13 = scmp.lt.s32.totalorder %s6186_s3, %s5693_s1 }
  0xb5   : > { %p5690_p1 = pnand %p5688_p10, %p7692_p7  ;;  %p5696_p5 = scmp.lt.s32.totalorder %s5694_s16, %s5687_s12 }
  0xb7   : > { %p5691_p8 = pneg %p5690_p1  ;;  %p5697_p3 = por %p5696_p5, %p5695_p13 }
  0xb9   : > { %p5698_p6 = pnand %p5697_p3, %p5691_p8 }
  0xbb   : > { %5701 = shalt.err (!%p5698_p6)
}
  0xbc   : > { %5453 = dma.hbm_to_vmem [thread:$0]  (!%p7693_p0), %s6183_s10, 4096, %s6186_s3, %s6071_s21, %s7688_s23, %s7688_s23, %s7687_s9  }
  0xbd   : > { %p7694_p7 = scmp.ne.s32.totalorder %s7676_s17, 0 }
  0xbf   : > { %421 = sbr.rel (%p7694_p7) target bundleno = 785 (0x311), region = 44 }
  0xc6   : > { %s6216_s24 = sand.u32 1, %s5840_s28   ;;  %p7695_p9 = scmp.ne.s32.totalorder %s7671_s14, 0 }
  0xc7   : > { %s424_s13 = scalar_lea.sflag [#allocation3], %s6216_s24 }
  0xc8   : > { %5811 = dma.done.wait (%p7695_p9), %s424_s13, 4096  }
  0xc9   : > { %5813 = vsyncadd (%p7695_p9), %s424_s13, 4294963200  ;;  %s432_s7 = sand.u32 1, %s5948_s11   ;;  %s4102_s21 = sshll.u32 %s6216_s24, 8 }
  0xca   : > { %s433_s17 = scalar_lea.sflag [#allocation6], %s432_s7  ;;  %s6229_s9 = scalar_lea.vmem [#allocation5], %s4102_s21 }
  0xcb   : > { %5815 = dma.done.wait (%p7695_p9), %s433_s17, 8192  }
  0xcc   : > { %5817 = vsyncadd (%p7695_p9), %s433_s17, 4294959104  ;;  %p7696_p0 = scmp.eq.s32.totalorder %s5948_s11, 0 }
  0xce   : > { %5819 = dma.done.wait (%p7696_p0), [#allocation9], 1168   ;;  %p7697_p4 = pmov %p7696_p0 }
  0xcf   : > { %p7698_p12 = pmov %p7696_p0 }
  0xd0   : > { %5821 = vsyncadd (%p7697_p4), [#allocation9], 4294966128 }
  0xd1   : > { %5823 = dma.done.wait (%p7698_p12), [#allocation12], 16   ;;  %p7699_p2 = pmov %p7696_p0 }
  0xd2   : > { %v7610_v0 = vmov 0.0   ;;  %v1061_v1 = vld [vmem:[#allocation8 + $0x8] sm:$0xff]  ;;  %v6244_v2 = vld [vmem:[#allocation8 + $0x20] sm:$0xff]  ;;  %v527_v10 = vld [vmem:[%s6229_s9 + $0x10] sm:$0xff]  ;;  %vm1062_vm0 = vcmask 64512   ;;  %vm958_vm1 = vcmask 1045504  }
  0xd3   : > { %5825 = vsyncadd (%p7699_p2), [#allocation12], 4294967280  ;;  %4704 = vmatprep.mubr.f32.mxu1 %v7610_v0  ;;  %v1059_v3 = vld [vmem:[#allocation8] sm:$0xff]  ;;  %4702 = vmatprep.subr.mxu1 %v1061_v1  ;;  %v6248_v5 = vld [vmem:[#allocation10] ss:$0 sm:$0xff]  ;;  %vm857_vm2 = vcmask 1041408  }
  0xd4   : > { %4902 = vmatprep.subr.mxu0 %v6244_v2  ;;  %v525_v4 = vld [vmem:[%s6229_s9] sm:$0xff]  ;;  %v6250_v6 = vld [vmem:[#allocation11] ss:$0 sm:$0xff]  ;;  %4703 = vmatpush3.msra.mxu1 %v1061_v1  ;;  %v574_v12 = vmul.f32 %v6248_v5, %v527_v10  ;;  %v528_v13 = vld [vmem:[%s6229_s9 + $0x18] sm:$0xff]  ;;  %s7305_s14 = scalar_lea.vmem [#allocation13], %s4102_s21  ;;  %s4404_s23 = sshll.u32 %s5848_s30, 12 }
  0xd5   : > { %4903 = vmatpush3.msra.mxu0 %v6244_v2  ;;  %v572_v7 = vmul.f32 %v6248_v5, %v525_v4  ;;  %v2533_v8 = vld [vmem:[#allocation8 + $0x28] sm:$0xff]  ;;  %4705 = vmatmul.mubr.f32.vlgmr.msra.gmra.mrb[0].mxu1 %v7610_v0  ;;  %v529_v14 = vld [vmem:[%s6229_s9 + $0x20] sm:$0xff]  ;;  %v575_v17 = vmul.f32 %v6248_v5, %v528_v13  ;;  %v531_v19 = vld [vmem:[%s6229_s9 + $0x30] sm:$0xff]  ;;  %s3836_s20 = sshll.u32 %s7305_s14, 4  ;;  %s7774_s26 = sld [smem:[#allocation68_spill]]  ;;  %s7439_s20 = int_to_ptr.vmem [resolvable:$true] %s3836_s20 }
  0xd6   : > { %v526_v9 = vld [vmem:[%s6229_s9 + $0x8] sm:$0xff]  ;;  %4752 = vmatprep.subr.mxu1 %v1059_v3  ;;  %4707 = vmatprep.mubr.f32.mxu1 %v7610_v0  ;;  %v576_v18 = vmul.f32 %v6248_v5, %v529_v14  ;;  %v621_v21 = vadd.f32 %v6250_v6, %v574_v12  ;;  %v578_v26 = vmul.f32 %v6248_v5, %v531_v19  ;;  %v532_v27 = vld [vmem:[%s6229_s9 + $0x38] sm:$0xff]  ;;  %v533_v30 = vld [vmem:[%s6229_s9 + $0x40] sm:$0xff]  ;;  %s7775_s18 = sld [smem:[#allocation26_spill]]  ;;  %s3812_s6 = scalar_lea.sflag [#allocation4], %s6216_s24 }
  0xd7   : > { %v573_v11 = vmul.f32 %v6248_v5, %v526_v9  ;;  %v530_v15 = vld [vmem:[%s6229_s9 + $0x28] sm:$0xff]  ;;  %v619_v16 = vadd.f32 %v6250_v6, %v572_v7  ;;  %4952 = vmatprep.subr.mxu0 %v2533_v8  ;;  %4753 = vmatpush3.msra.mxu1 %v1059_v3  ;;  %v622_v24 = vadd.f32 %v6250_v6, %v575_v17  ;;  %v6292_v34 = vld [vmem:[#allocation8 + $0x30] sm:$0xff]  ;;  %v536_v47 = vld [vmem:[%s6229_s9 + $0x58] sm:$0xff]  ;;  %s5702_s25 = scalar_lea.vmem %s7439_s20, 4096  ;;  %s5867_s19 = smov [#allocation13]  }
  0xd8   : > { %v577_v22 = vmul.f32 %v6248_v5, %v530_v15  ;;  %v623_v25 = vadd.f32 %v6250_v6, %v576_v18  ;;  %v6279_v29 = vmax.f32 %v621_v21, 0.0  ;;  %v579_v33 = vmul.f32 %v6248_v5, %v532_v27  ;;  %v534_v38 = vld [vmem:[%s6229_s9 + $0x48] sm:$0xff]  ;;  %v535_v39 = vld [vmem:[%s6229_s9 + $0x50] sm:$0xff]  ;;  %v537_v48 = vld [vmem:[%s6229_s9 + $0x60] sm:$0xff]  ;;  %p5703_p11 = scmp.ne.s32.totalorder %s7439_s20, %s5702_s25  ;;  %s5706_s22 = sshll.u32 %s5867_s19, 4  ;;  %s5707_s22 = int_to_ptr.vmem [resolvable:$false] %s5706_s22 }
  0xd9   : > { %v620_v20 = vadd.f32 %v6250_v6, %v573_v11  ;;  %v6270_v23 = vmax.f32 %v619_v16, 0.0  ;;  %4708 = vmatmul.mubr.f32.gmra.mrb[2].mxu1 %v7610_v0  ;;  %v6288_v31 = vmax.f32 %v622_v24, 0.0  ;;  %v625_v36 = vadd.f32 %v6250_v6, %v578_v26  ;;  %v6304_v40 = vld [vmem:[#allocation8 + $0x10] sm:$0xff]  ;;  %v538_v55 = vld [vmem:[%s6229_s9 + $0x68] sm:$0xff]  ;;  %v540_v63 = vld [vmem:[%s6229_s9 + $0x78] sm:$0xff]  ;;  %s5708_s8 = scalar_lea.vmem %s5707_s22, 8192  ;;  %p5709_p13 = scmp.lt.s32.totalorder %s7439_s20, %s5707_s22 }
  0xda   : > { %v624_v32 = vadd.f32 %v6250_v6, %v577_v22  ;;  %v6296_v35 = vmax.f32 %v623_v25, 0.0  ;;  %v580_v37 = vmul.f32 %v6248_v5, %v533_v30  ;;  %v626_v42 = vadd.f32 %v6250_v6, %v579_v33  ;;  %4802 = vmatprep.subr.mxu1 %v6304_v40  ;;  %v539_v56 = vld [vmem:[%s6229_s9 + $0x70] sm:$0xff]  ;;  %v541_v7 = vld [vmem:[%s6229_s9 + $0x80] sm:$0xff]  ;;  %v542_v11 = vld [vmem:[%s6229_s9 + $0x88] sm:$0xff]  ;;  %p5710_p5 = scmp.lt.s32.totalorder %s5708_s8, %s5702_s25 }
  0xdb   : > { %v6277_v28 = vmax.f32 %v620_v20, 0.0  ;;  %4904 = vmatprep.mubr.msk.f32.mxu0 %vm1062_vm0, %v6270_v23  ;;  %4710 = vmatprep.mubr.msk.f32.mxu1 %vm1062_vm0, %v6270_v23  ;;  %v581_v43 = vmul.f32 %v6248_v5, %v534_v38  ;;  %v6318_v44 = vmax.f32 %v625_v36, 0.0  ;;  %v582_v46 = vmul.f32 %v6248_v5, %v535_v39  ;;  %v543_v14 = vld [vmem:[%s6229_s9 + $0x90] sm:$0xff]  ;;  %v544_v21 = vld [vmem:[%s6229_s9 + $0x98] sm:$0xff]  ;;  %v545_v22 = vld [vmem:[%s6229_s9 + $0xa0] sm:$0xff]  ;;  %s7437_s3 = scalar_lea.hbm %s7774_s26, %s4404_s23 }
  0xdc   : > { %v6311_v41 = vmax.f32 %v624_v32, 0.0  ;;  %v627_v45 = vadd.f32 %v6250_v6, %v580_v37  ;;  %v6330_v49 = vmax.f32 %v626_v42, 0.0  ;;  %v583_v51 = vmul.f32 %v6248_v5, %v536_v47  ;;  %v546_v38 = vld [vmem:[%s6229_s9 + $0xa8] sm:$0xff]  ;;  %p7776_p10 = scmp.ne.s32.totalorder %s7775_s18, 0  ;;  %p5711_p3 = por %p5710_p5, %p5709_p13 }
  0xdd   : > { %4905 = vmatmul.mubr.msk.f32.vlgmr.msra.gmra.mrb[0].mxu0 %vm1062_vm0, %v6277_v28  ;;  %4711 = vmatmul.mubr.msk.f32.gmra.mrb[4].mxu1 %vm1062_vm0, %v6277_v28  ;;  %v628_v50 = vadd.f32 %v6250_v6, %v581_v43  ;;  %v629_v53 = vadd.f32 %v6250_v6, %v582_v46  ;;  %v584_v54 = vmul.f32 %v6248_v5, %v537_v48  ;;  %v965_v16 = vrot.slane %v6270_v23, 2  ;;  %v547_v43 = vld [vmem:[%s6229_s9 + $0xb0] sm:$0xff] }
  0xde   : > { %4953 = vmatpush3.msra.mxu0 %v2533_v8  ;;  %4907 = vmatprep.mubr.msk.f32.mxu0 %vm1062_vm0, %v6279_v29  ;;  %7700 = vst [vmem:[#allocation30_spill] sm:$0xff] %v6330_v49  ;;  %v6336_v52 = vmax.f32 %v627_v45, 0.0  ;;  %v630_v58 = vadd.f32 %v6250_v6, %v583_v51  ;;  %v585_v59 = vmul.f32 %v6248_v5, %v538_v55  ;;  %v966_v17 = vrot.slane %v6277_v28, 2  ;;  %p5704_p1 = pnand %p5703_p11, %p7776_p10 }
  0xdf   : > { %4713 = vmatprep.mubr.msk.f32.mxu1 %vm1062_vm0, %v6279_v29  ;;  %5002 = vmatprep.subr.mxu0 %v6292_v34  ;;  %v6348_v57 = vmax.f32 %v628_v50, 0.0  ;;  %v6354_v60 = vmax.f32 %v629_v53, 0.0  ;;  %v631_v61 = vadd.f32 %v6250_v6, %v584_v54  ;;  %v586_v62 = vmul.f32 %v6248_v5, %v539_v56 }
  0xe0   : > { %7701 = vst [vmem:[#allocation31_spill] sm:$0xff] %v6336_v52  ;;  %v6365_v1 = vmax.f32 %v630_v58, 0.0  ;;  %v632_v3 = vadd.f32 %v6250_v6, %v585_v59  ;;  %v587_v4 = vmul.f32 %v6248_v5, %v540_v63  ;;  %v588_v10 = vmul.f32 %v6248_v5, %v541_v7  ;;  %v548_v58 = vld [vmem:[%s6229_s9 + $0xb8] sm:$0xff]  ;;  %v553_v63 = vld [vmem:[%s6229_s9 + $0xe0] sm:$0xff]  ;;  %p5705_p8 = pneg %p5704_p1 }
  0xe1   : > { %4908 = vmatmul.mubr.msk.f32.gmra.mrb[2].mxu0 %vm1062_vm0, %v6288_v31  ;;  %4714 = vmatmul.mubr.msk.f32.gmra.mrb[6].mxu1 %vm1062_vm0, %v6288_v31  ;;  %7702 = vst [vmem:[#allocation32_spill] sm:$0xff] %v6354_v60  ;;  %v6372_v8 = vmax.f32 %v631_v61, 0.0  ;;  %v633_v9 = vadd.f32 %v6250_v6, %v586_v62  ;;  %v589_v18 = vmul.f32 %v6248_v5, %v542_v11  ;;  %v968_v25 = vrot.slane %v6279_v29, 2  ;;  %v6457_v59 = vld [vmem:[#allocation8 + $0x38] sm:$0xff]  ;;  %v549_v62 = vld [vmem:[%s6229_s9 + $0xc0] sm:$0xff]  ;;  %v555_v11 = vld [vmem:[%s6229_s9 + $0xf0] sm:$0xff] }
  0xe2   : > { %4910 = vmatprep.mubr.msk.f32.mxu0 %vm1062_vm0, %v6296_v35  ;;  %4716 = vmatprep.mubr.msk.f32.mxu1 %vm1062_vm0, %v6296_v35  ;;  %7703 = vst [vmem:[#allocation33_spill] sm:$0xff] %v6365_v1  ;;  %v6383_v12 = vmax.f32 %v632_v3, 0.0  ;;  %v634_v13 = vadd.f32 %v6250_v6, %v587_v4  ;;  %v635_v19 = vadd.f32 %v6250_v6, %v588_v10  ;;  %v969_v26 = vrot.slane %v6288_v31, 2  ;;  %v554_v3 = vld [vmem:[%s6229_s9 + $0xe8] sm:$0xff]  ;;  %p5712_p6 = pnand %p5711_p3, %p5705_p8 }
  0xe3   : > { %7704 = vst [vmem:[#allocation34_spill] sm:$0xff] %v6372_v8  ;;  %v6389_v15 = vmax.f32 %v633_v9, 0.0  ;;  %v590_v20 = vmul.f32 %v6248_v5, %v543_v14  ;;  %v867_v27 = vrot.slane %v6279_v29, 6  ;;  %v868_v30 = vrot.slane %v6288_v31, 6 }
  0xe4   : > { %v6404_v24 = vmax.f32 %v634_v13, 0.0  ;;  %v6415_v32 = vsel %vm958_vm1, %v965_v16, %v966_v17  ;;  %v636_v33 = vadd.f32 %v6250_v6, %v589_v18  ;;  %v591_v36 = vmul.f32 %v6248_v5, %v544_v21  ;;  %v556_v13 = vld [vmem:[%s6229_s9 + $0xf8] sm:$0xff] }
  0xe5   : > { %4911 = vmatmul.mubr.msk.f32.gmra.mrb[4].mxu0 %vm1062_vm0, %v6311_v41  ;;  %4717 = vmatmul.mubr.msk.f32.gmra.mrb[8].mxu1 %vm1062_vm0, %v6311_v41  ;;  %v592_v37 = vmul.f32 %v6248_v5, %v545_v22  ;;  %v6423_v39 = vmax.f32 %v635_v19, 0.0  ;;  %v637_v31 = vadd.f32 %v6250_v6, %v590_v20  ;;  %v6429_v42 = vsel %vm857_vm2, %v867_v27, %v868_v30  ;;  %v550_v20 = vld [vmem:[%s6229_s9 + $0xc8] sm:$0xff]  ;;  %v551_v30 = vld [vmem:[%s6229_s9 + $0xd0] sm:$0xff] }
  0xe6   : > { %4913 = vmatprep.mubr.msk.f32.mxu0 %vm1062_vm0, %v6318_v44  ;;  %4719 = vmatprep.mubr.msk.f32.mxu1 %vm1062_vm0, %v6318_v44  ;;  %7705 = vst [vmem:[#allocation35_spill] sm:$0xff] %v6429_v42  ;;  %v6437_v45 = vsel %vm958_vm1, %v966_v17, 0.0  ;;  %v971_v46 = vrot.slane %v6296_v35, 2  ;;  %v972_v47 = vrot.slane %v6311_v41, 2  ;;  %v593_v48 = vmul.f32 %v6248_v5, %v546_v38 }
  0xe7   : > { %v6444_v50 = vmax.f32 %v636_v33, 0.0  ;;  %v6447_v51 = vsel %vm958_vm1, %v968_v25, %v969_v26  ;;  %v638_v53 = vadd.f32 %v6250_v6, %v591_v36  ;;  %v639_v54 = vadd.f32 %v6250_v6, %v592_v37 }
  0xe8   : > { %v6453_v55 = vmax.f32 %v637_v31, 0.0  ;;  %v594_v56 = vmul.f32 %v6248_v5, %v547_v43  ;;  %v6462_v61 = vsel %vm958_vm1, %v969_v26, 0.0  ;;  %v6471_v4 = vsel %vm958_vm1, %v971_v46, %v972_v47 }
  0xe9   : > { %4914 = vmatmul.mubr.msk.f32.gmra.mrb[6].mxu0 %vm1062_vm0, %v6330_v49  ;;  %4720 = vmatmul.mubr.msk.f32.gmra.mrb[10].mxu1 %vm1062_vm0, %v6330_v49  ;;  %v640_v7 = vadd.f32 %v6250_v6, %v593_v48  ;;  %v974_v9 = vrot.slane %v6318_v44, 2  ;;  %v975_v10 = vrot.slane %v6330_v49, 2  ;;  %v6483_v14 = vsel %vm958_vm1, %v972_v47, 0.0 }
  0xea   : > { %4916 = vmatprep.mubr.msk.f32.mxu0 %vm1062_vm0, %v6336_v52  ;;  %4722 = vmatprep.mubr.msk.f32.mxu1 %vm1062_vm0, %v6336_v52  ;;  %v6485_v16 = vmax.f32 %v639_v54, 0.0  ;;  %v595_v17 = vmul.f32 %v6248_v5, %v548_v58  ;;  %v641_v18 = vadd.f32 %v6250_v6, %v594_v56  ;;  %v596_v19 = vmul.f32 %v6248_v5, %v549_v62  ;;  %v552_v62 = vld [vmem:[%s6229_s9 + $0xd8] sm:$0xff] }
  0xeb   : > { %v600_v21 = vmul.f32 %v6248_v5, %v553_v63  ;;  %v601_v22 = vmul.f32 %v6248_v5, %v554_v3  ;;  %v977_v25 = vrot.slane %v6336_v52, 2  ;;  %v978_v26 = vrot.slane %v6348_v57, 2 }
  0xec   : > { %v602_v33 = vmul.f32 %v6248_v5, %v555_v11  ;;  %v603_v36 = vmul.f32 %v6248_v5, %v556_v13  ;;  %v6505_v37 = vmax.f32 %v640_v7, 0.0  ;;  %v6508_v38 = vsel %vm958_vm1, %v974_v9, %v975_v10 }
  0xed   : > { %4917 = vmatmul.mubr.msk.f32.gmra.mrb[8].mxu0 %vm1062_vm0, %v6348_v57  ;;  %4723 = vmatmul.mubr.msk.f32.gmra.mrb[12].mxu1 %vm1062_vm0, %v6348_v57  ;;  %v6511_v31 = vadd.f32 %v6250_v6, %v600_v21  ;;  %v6514_v43 = vadd.f32 %v6250_v6, %v601_v22  ;;  %v642_v46 = vadd.f32 %v6250_v6, %v595_v17  ;;  %v6528_v54 = vmax.f32 %v641_v18, 0.0 }
  0xee   : > { %4919 = vmatprep.mubr.msk.f32.mxu0 %vm1062_vm0, %v6354_v60  ;;  %4725 = vmatprep.mubr.msk.f32.mxu1 %vm1062_vm0, %v6354_v60  ;;  %v597_v47 = vmul.f32 %v6248_v5, %v550_v20  ;;  %v6521_v48 = vadd.f32 %v6250_v6, %v602_v33  ;;  %v643_v56 = vadd.f32 %v6250_v6, %v596_v19  ;;  %v6538_v63 = vsel %vm958_vm1, %v975_v10, 0.0 }
  0xef   : > { %v598_v58 = vmul.f32 %v6248_v5, %v551_v30  ;;  %v980_v3 = vrot.slane %v6354_v60, 2  ;;  %v981_v7 = vrot.slane %v6365_v1, 2  ;;  %v6544_v9 = vmax.f32 %v642_v46, 0.0 }
  0xf0   : > { %v6547_v11 = vsel %vm958_vm1, %v977_v25, %v978_v26  ;;  %v644_v13 = vadd.f32 %v6250_v6, %v597_v47  ;;  %v599_v17 = vmul.f32 %v6248_v5, %v552_v62  ;;  %v6553_v10 = vmax.f32 %v643_v56, 0.0 }
  0xf1   : > { %4920 = vmatmul.mubr.msk.f32.gmra.mrb[10].mxu0 %vm1062_vm0, %v6365_v1  ;;  %4726 = vmatmul.mubr.msk.f32.gmra.mrb[14].mxu1 %vm1062_vm0, %v6365_v1  ;;  %v645_v18 = vadd.f32 %v6250_v6, %v598_v58  ;;  %v6561_v19 = vsel %vm958_vm1, %v978_v26, 0.0  ;;  %v6564_v20 = vsel %vm958_vm1, %v980_v3, %v981_v7  ;;  %v983_v22 = vrot.slane %v6372_v8, 2 }
  0xf2   : > { %4922 = vmatprep.mubr.msk.f32.mxu0 %vm1062_vm0, %v6372_v8  ;;  %4728 = vmatprep.mubr.msk.f32.mxu1 %vm1062_vm0, %v6372_v8  ;;  %v6568_v5 = vmax.f32 %v644_v13, 0.0  ;;  %v646_v21 = vadd.f32 %v6250_v6, %v599_v17  ;;  %v984_v25 = vrot.slane %v6383_v12, 2  ;;  %v6580_v26 = vrot.slane %v7610_v0, 6 }
  0xf3   : > { %v6575_v30 = vmax.f32 %v645_v18, 0.0  ;;  %v986_v46 = vrot.slane %v6389_v15, 2  ;;  %v987_v47 = vrot.slane %v6404_v24, 2  ;;  %v989_v3 = vrot.slane %v6423_v39, 2  ;;  %v6626_v18 = vld [vmem:[#allocation8 + $0x18] sm:$0xff] }
  0xf4   : > { %v6589_v33 = vmax.f32 %v646_v21, 0.0  ;;  %v6602_v56 = vsel %vm857_vm2, 0.0, %v6580_v26  ;;  %v6607_v58 = vsel %vm958_vm1, %v984_v25, 0.0  ;;  %v864_v13 = vrot.slane %v6270_v23, 6 }
  0xf5   : > { %4923 = vmatmul.mubr.msk.f32.gmra.mrb[12].mxu0 %vm1062_vm0, %v6383_v12  ;;  %4729 = vmatmul.mubr.msk.f32.gmra.mrb[16].mxu1 %vm1062_vm0, %v6383_v12  ;;  %v6612_v62 = vsel %vm958_vm1, %v986_v46, %v987_v47  ;;  %v6624_v17 = vsel %vm958_vm1, %v987_v47, 0.0  ;;  %v865_v23 = vrot.slane %v6277_v28, 6  ;;  %v995_v28 = vrot.slane %v6485_v16, 2 }
  0xf6   : > { %4925 = vmatprep.mubr.msk.f32.mxu0 %vm1062_vm0, %v6389_v15  ;;  %4731 = vmatprep.mubr.msk.f32.mxu1 %vm1062_vm0, %v6389_v15  ;;  %v6642_v46 = vsel %vm857_vm2, 0.0, %v864_v13  ;;  %v999_v29 = vrot.slane %v6544_v9, 2 }
  0xf7   : > { %7707 = vst [vmem:[#allocation37_spill] sm:$0xff] %v6642_v46  ;;  %v6660_v0 = vsel %vm857_vm2, %v864_v13, %v865_v23  ;;  %v998_v23 = vrot.slane %v6528_v54, 2 }
  0xf8   : > { %7710 = vst [vmem:[#allocation40_spill] sm:$0xff] %v6660_v0 }
  0xf9   : > { %4926 = vmatmul.mubr.msk.f32.gmra.mrb[14].mxu0 %vm1062_vm0, %v6404_v24  ;;  %4732 = vmatmul.mubr.msk.f32.gmra.mrb[18].mxu1 %vm1062_vm0, %v6404_v24 }
  0xfa   : > { %4954 = vmatprep.mubr.msk.f32.mxu0 %vm1062_vm0, %v6415_v32  ;;  %4734 = vmatprep.mubr.msk.f32.mxu1 %vm1062_vm0, %v6423_v39 }
  0xfd   : > { %4955 = vmatmul.mubr.msk.f32.vlgmr.msra.gmra.mrb[0].mxu0 %vm1062_vm0, %v6437_v45  ;;  %4735 = vmatmul.mubr.msk.f32.gmra.mrb[20].mxu1 %vm1062_vm0, %v6444_v50 }
  0xfe   : > { %5003 = vmatpush3.msra.mxu0 %v6292_v34  ;;  %4957 = vmatprep.mubr.msk.f32.mxu0 %vm1062_vm0, %v6447_v51  ;;  %v6480_v34 = vmax.f32 %v638_v53, 0.0  ;;  %v6524_v53 = vadd.f32 %v6250_v6, %v603_v36  ;;  %v6585_v6 = vsel %vm958_vm1, %v981_v7, 0.0  ;;  %v6592_v36 = vsel %vm958_vm1, %v983_v22, %v984_v25 }
  0xff   : > { %5052 = vmatprep.subr.mxu0 %v6457_v59  ;;  %4737 = vmatprep.mubr.msk.f32.mxu1 %vm1062_vm0, %v6453_v55  ;;  %v990_v7 = vrot.slane %v6444_v50, 2  ;;  %v992_v22 = vrot.slane %v6453_v55, 2 }
 0x100   : > { %v993_v25 = vrot.slane %v6480_v34, 2 }
 0x101   : > { %4958 = vmatmul.mubr.msk.f32.gmra.mrb[2].mxu0 %vm1062_vm0, %v6462_v61  ;;  %4738 = vmatmul.mubr.msk.f32.gmra.mrb[22].mxu1 %vm1062_vm0, %v6480_v34  ;;  %v6631_v21 = vsel %vm958_vm1, %v989_v3, %v990_v7  ;;  %v6648_v47 = vsel %vm958_vm1, %v990_v7, 0.0  ;;  %v996_v3 = vrot.slane %v6505_v37, 2  ;;  %v6667_v7 = vsel %vm857_vm2, 0.0, %v867_v27 }
 0x102   : > { %4960 = vmatprep.mubr.msk.f32.mxu0 %vm1062_vm0, %v6471_v4  ;;  %4740 = vmatprep.mubr.msk.f32.mxu1 %vm1062_vm0, %v6485_v16  ;;  %7706 = vst [vmem:[#allocation36_spill] sm:$0xff] %v6631_v21  ;;  %7708 = vst [vmem:[#allocation38_spill] sm:$0xff] %v6648_v47  ;;  %v871_v27 = vrot.slane %v6311_v41, 6 }
 0x103   : > { %7711 = vst [vmem:[#allocation41_spill] sm:$0xff] %v6667_v7  ;;  %v6678_v13 = vsel %vm958_vm1, %v995_v28, %v996_v3  ;;  %v6694_v28 = vsel %vm958_vm1, %v996_v3, 0.0 }
 0x104   : > { %7713 = vst [vmem:[#allocation43_spill] sm:$0xff] %v6678_v13  ;;  %7715 = vst [vmem:[#allocation45_spill] sm:$0xff] %v6694_v28 }
 0x105   : > { %4961 = vmatmul.mubr.msk.f32.gmra.mrb[4].mxu0 %vm1062_vm0, %v6483_v14  ;;  %4741 = vmatmul.mubr.msk.f32.gmra.mrb[24].mxu1 %vm1062_vm0, %v6505_v37 }
 0x106   : > { %4963 = vmatprep.mubr.msk.f32.mxu0 %vm1062_vm0, %v6508_v38  ;;  %4743 = vmatprep.mubr.msk.f32.mxu1 %vm1062_vm0, %v6528_v54 }
 0x109   : > { %4964 = vmatmul.mubr.msk.f32.gmra.mrb[6].mxu0 %vm1062_vm0, %v6538_v63  ;;  %4744 = vmatmul.mubr.msk.f32.gmra.mrb[26].mxu1 %vm1062_vm0, %v6544_v9 }
 0x10a   : > { %4966 = vmatprep.mubr.msk.f32.mxu0 %vm1062_vm0, %v6547_v11  ;;  %4746 = vmatprep.mubr.msk.f32.mxu1 %vm1062_vm0, %v6553_v10 }
 0x10d   : > { %4967 = vmatmul.mubr.msk.f32.gmra.mrb[8].mxu0 %vm1062_vm0, %v6561_v19  ;;  %4747 = vmatmul.mubr.msk.f32.gmra.mrb[28].mxu1 %vm1062_vm0, %v6568_v5 }
 0x10e   : > { %4969 = vmatprep.mubr.msk.f32.mxu0 %vm1062_vm0, %v6564_v20  ;;  %4749 = vmatprep.mubr.msk.f32.mxu1 %vm1062_vm0, %v6575_v30 }
 0x111   : > { %4970 = vmatmul.mubr.msk.f32.gmra.mrb[10].mxu0 %vm1062_vm0, %v6585_v6  ;;  %4750 = vmatmul.mubr.msk.f32.gmra.mrb[30].mxu1 %vm1062_vm0, %v6589_v33 }
 0x112   : > { %4972 = vmatprep.mubr.msk.f32.mxu0 %vm1062_vm0, %v6592_v36  ;;  %4754 = vmatprep.mubr.msk.f32.mxu1 %vm1062_vm0, %v6602_v56 }
 0x115   : > { %4973 = vmatmul.mubr.msk.f32.gmra.mrb[12].mxu0 %vm1062_vm0, %v6607_v58  ;;  %4755 = vmatmul.mubr.msk.f32.vlgmr.msra.gmra.mrb[0].mxu1 %vm1062_vm0, %v6580_v26 }
 0x116   : > { %4975 = vmatprep.mubr.msk.f32.mxu0 %vm1062_vm0, %v6612_v62  ;;  %4757 = vmatprep.mubr.msk.f32.mxu1 %vm1062_vm0, %v6602_v56 }
 0x117   : > { %4803 = vmatpush3.msra.mxu1 %v6304_v40  ;;  %v6653_v40 = vsel %vm958_vm1, %v992_v22, %v993_v25  ;;  %v870_v22 = vrot.slane %v6296_v35, 6 }
 0x118   : > { %4852 = vmatprep.subr.mxu1 %v6626_v18  ;;  %7709 = vst [vmem:[#allocation39_spill] sm:$0xff] %v6653_v40 }
 0x119   : > { %4976 = vmatmul.mubr.msk.f32.gmra.mrb[14].mxu0 %vm1062_vm0, %v6624_v17  ;;  %4758 = vmatmul.mubr.msk.f32.gmra.mrb[2].mxu1 %vm1062_vm0, %v6580_v26 }
 0x11a   : > { %4978 = vmatprep.mubr.msk.f32.mxu0 %vm1062_vm0, %v6631_v21  ;;  %4760 = vmatprep.mubr.msk.f32.mxu1 %vm1062_vm0, %v6642_v46  ;;  %v6673_v21 = vsel %vm958_vm1, %v993_v25, 0.0  ;;  %v6688_v25 = vsel %vm857_vm2, 0.0, %v870_v22  ;;  %v1001_v46 = vrot.slane %v6553_v10, 2 }
 0x11b   : > { %7712 = vst [vmem:[#allocation42_spill] sm:$0xff] %v6673_v21  ;;  %7714 = vst [vmem:[#allocation44_spill] sm:$0xff] %v6688_v25 }
 0x11d   : > { %4979 = vmatmul.mubr.msk.f32.gmra.mrb[16].mxu0 %vm1062_vm0, %v6648_v47  ;;  %4761 = vmatmul.mubr.msk.f32.gmra.mrb[4].mxu1 %vm1062_vm0, %v6660_v0  ;;  %v873_v0 = vrot.slane %v6318_v44, 6  ;;  %v1004_v47 = vrot.slane %v6575_v30, 2 }
 0x11e   : > { %4981 = vmatprep.mubr.msk.f32.mxu0 %vm1062_vm0, %v6653_v40  ;;  %4763 = vmatprep.mubr.msk.f32.mxu1 %vm1062_vm0, %v6667_v7  ;;  %v6699_v7 = vsel %vm958_vm1, %v998_v23, %v999_v29  ;;  %v6706_v40 = vsel %vm857_vm2, %v870_v22, %v871_v27  ;;  %v876_v23 = vrot.slane %v6336_v52, 6  ;;  %v1005_v22 = vrot.slane %v6589_v33, 2 }
 0x11f   : > { %7716 = vst [vmem:[#allocation46_spill] sm:$0xff] %v6699_v7  ;;  %7717 = vst [vmem:[#allocation47_spill] sm:$0xff] %v6706_v40  ;;  %v6712_v3 = vsel %vm857_vm2, 0.0, %v873_v0  ;;  %v6731_v52 = vmax.f32 %v6514_v43, 0.0 }
 0x120   : > { %7718 = vst [vmem:[#allocation48_spill] sm:$0xff] %v6712_v3 }
 0x121   : > { %4982 = vmatmul.mubr.msk.f32.gmra.mrb[18].mxu0 %vm1062_vm0, %v6673_v21  ;;  %4764 = vmatmul.mubr.msk.f32.gmra.mrb[6].mxu1 %vm1062_vm0, %v6429_v42  ;;  %v1002_v21 = vrot.slane %v6568_v5, 2  ;;  %v6718_v42 = vsel %vm958_vm1, %v999_v29, 0.0 }
 0x122   : > { %4984 = vmatprep.mubr.msk.f32.mxu0 %vm1062_vm0, %v6678_v13  ;;  %4766 = vmatprep.mubr.msk.f32.mxu1 %vm1062_vm0, %v6688_v25  ;;  %v874_v13 = vrot.slane %v6330_v49, 6  ;;  %7719 = vst [vmem:[#allocation49_spill] sm:$0xff] %v6718_v42  ;;  %v6751_v49 = vsel %vm958_vm1, %v1004_v47, %v1005_v22  ;;  %v880_v47 = vrot.slane %v6365_v1, 6 }
 0x123   : > { %v6725_v27 = vsel %vm958_vm1, %v1001_v46, %v1002_v21  ;;  %v6742_v46 = vsel %vm857_vm2, 0.0, %v876_v23  ;;  %v6748_v43 = vsel %vm958_vm1, %v1002_v21, 0.0  ;;  %7724 = vst [vmem:[#allocation54_spill] sm:$0xff] %v6751_v49 }
 0x124   : > { %7720 = vst [vmem:[#allocation50_spill] sm:$0xff] %v6725_v27  ;;  %v6736_v29 = vsel %vm857_vm2, %v873_v0, %v874_v13  ;;  %7722 = vst [vmem:[#allocation52_spill] sm:$0xff] %v6742_v46  ;;  %v1008_v13 = vrot.slane %v6731_v52, 2 }
 0x125   : > { %4985 = vmatmul.mubr.msk.f32.gmra.mrb[20].mxu0 %vm1062_vm0, %v6694_v28  ;;  %4767 = vmatmul.mubr.msk.f32.gmra.mrb[8].mxu1 %vm1062_vm0, %v6706_v40  ;;  %v6728_v28 = vmax.f32 %v6511_v31, 0.0  ;;  %7721 = vst [vmem:[#allocation51_spill] sm:$0xff] %v6736_v29  ;;  %v879_v31 = vrot.slane %v6354_v60, 6  ;;  %7723 = vst [vmem:[#allocation53_spill] sm:$0xff] %v6748_v43  ;;  %v6761_v60 = vmax.f32 %v6524_v53, 0.0  ;;  %v6778_v53 = vsel %vm958_vm1, %v1005_v22, 0.0 }
 0x126   : > { %4987 = vmatprep.mubr.msk.f32.mxu0 %vm1062_vm0, %v6699_v7  ;;  %4769 = vmatprep.mubr.msk.f32.mxu1 %vm1062_vm0, %v6712_v3  ;;  %v877_v7 = vrot.slane %v6348_v57, 6  ;;  %7726 = vst [vmem:[#allocation56_spill] sm:$0xff] %v6778_v53  ;;  %v6802_v1 = vsel %vm958_vm1, %v1008_v13, 0.0 }
 0x127   : > { %v1007_v0 = vrot.slane %v6728_v28, 2  ;;  %7730 = vst [vmem:[#allocation60_spill] sm:$0xff] %v6802_v1 }
 0x128   : > { %v6766_v21 = vsel %vm857_vm2, %v876_v23, %v877_v7 }
 0x129   : > { %4988 = vmatmul.mubr.msk.f32.gmra.mrb[22].mxu0 %vm1062_vm0, %v6718_v42  ;;  %4770 = vmatmul.mubr.msk.f32.gmra.mrb[10].mxu1 %vm1062_vm0, %v6736_v29  ;;  %v6758_v42 = vmax.f32 %v6521_v48, 0.0  ;;  %7725 = vst [vmem:[#allocation55_spill] sm:$0xff] %v6766_v21  ;;  %v882_v48 = vrot.slane %v6372_v8, 6  ;;  %v6783_v7 = vsel %vm958_vm1, %v1007_v0, %v1008_v13  ;;  %v6790_v8 = vsel %vm857_vm2, %v879_v31, %v880_v47 }
 0x12a   : > { %4990 = vmatprep.mubr.msk.f32.mxu0 %vm1062_vm0, %v6725_v27  ;;  %4772 = vmatprep.mubr.msk.f32.mxu1 %vm1062_vm0, %v6742_v46  ;;  %v6772_v27 = vsel %vm857_vm2, 0.0, %v879_v31  ;;  %7727 = vst [vmem:[#allocation57_spill] sm:$0xff] %v6783_v7  ;;  %7728 = vst [vmem:[#allocation58_spill] sm:$0xff] %v6790_v8  ;;  %v885_v0 = vrot.slane %v6389_v15, 6 }
 0x12b   : > { %v1010_v23 = vrot.slane %v6758_v42, 2  ;;  %v6796_v22 = vsel %vm857_vm2, 0.0, %v882_v48 }
 0x12c   : > { %7729 = vst [vmem:[#allocation59_spill] sm:$0xff] %v6796_v22  ;;  %v6818_v13 = vsel %vm857_vm2, 0.0, %v885_v0 }
 0x12d   : > { %4991 = vmatmul.mubr.msk.f32.gmra.mrb[24].mxu0 %vm1062_vm0, %v6748_v43  ;;  %4773 = vmatmul.mubr.msk.f32.gmra.mrb[12].mxu1 %vm1062_vm0, %v6766_v21  ;;  %v1011_v43 = vrot.slane %v6761_v60, 2  ;;  %7732 = vst [vmem:[#allocation62_spill] sm:$0xff] %v6818_v13 }
 0x12e   : > { %4993 = vmatprep.mubr.msk.f32.mxu0 %vm1062_vm0, %v6751_v49  ;;  %4775 = vmatprep.mubr.msk.f32.mxu1 %vm1062_vm0, %v6772_v27  ;;  %v883_v49 = vrot.slane %v6383_v12, 6 }
 0x12f   : > { %v6807_v31 = vsel %vm958_vm1, %v1010_v23, %v1011_v43  ;;  %v6824_v23 = vsel %vm958_vm1, %v1011_v43, 0.0  ;;  %v891_v43 = vrot.slane %v6453_v55, 6 }
 0x130   : > { %7731 = vst [vmem:[#allocation61_spill] sm:$0xff] %v6807_v31  ;;  %v6812_v47 = vsel %vm857_vm2, %v882_v48, %v883_v49  ;;  %7733 = vst [vmem:[#allocation63_spill] sm:$0xff] %v6824_v23  ;;  %v889_v48 = vrot.slane %v6444_v50, 6 }
 0x131   : > { %4994 = vmatmul.mubr.msk.f32.gmra.mrb[26].mxu0 %vm1062_vm0, %v6778_v53  ;;  %4776 = vmatmul.mubr.msk.f32.gmra.mrb[14].mxu1 %vm1062_vm0, %v6790_v8  ;;  %v886_v53 = vrot.slane %v6404_v24, 6 }
 0x132   : > { %4996 = vmatprep.mubr.msk.f32.mxu0 %vm1062_vm0, %v6783_v7  ;;  %4778 = vmatprep.mubr.msk.f32.mxu1 %vm1062_vm0, %v6796_v22  ;;  %v888_v7 = vrot.slane %v6423_v39, 6 }
 0x133   : > { %v6831_v49 = vsel %vm857_vm2, %v885_v0, %v886_v53  ;;  %v892_v0 = vrot.slane %v6480_v34, 6 }
 0x134   : > { %v6847_v53 = vsel %vm857_vm2, %v888_v7, %v889_v48  ;;  %v895_v48 = vrot.slane %v6505_v37, 6 }
 0x135   : > { %4997 = vmatmul.mubr.msk.f32.gmra.mrb[28].mxu0 %vm1062_vm0, %v6802_v1  ;;  %4779 = vmatmul.mubr.msk.f32.gmra.mrb[16].mxu1 %vm1062_vm0, %v6812_v47  ;;  %v6837_v1 = vsel %vm857_vm2, 0.0, %v888_v7  ;;  %v6867_v7 = vsel %vm857_vm2, %v891_v43, %v892_v0  ;;  %v898_v0 = vrot.slane %v6544_v9, 6 }
 0x136   : > { %4999 = vmatprep.mubr.msk.f32.mxu0 %vm1062_vm0, %v6807_v31  ;;  %4781 = vmatprep.mubr.msk.f32.mxu1 %vm1062_vm0, %v6818_v13  ;;  %v6855_v31 = vsel %vm857_vm2, 0.0, %v891_v43 }
 0x139   : > { %5000 = vmatmul.mubr.msk.f32.gmra.mrb[30].mxu0 %vm1062_vm0, %v6824_v23  ;;  %4782 = vmatmul.mubr.msk.f32.gmra.mrb[18].mxu1 %vm1062_vm0, %v6831_v49  ;;  %v6850_v23 = vld [vmem:[#allocation8 + $0x40] sm:$0xff] }
 0x13a   : > { %5004 = vmatprep.mubr.msk.f32.mxu0 %vm1062_vm0, %v6688_v25  ;;  %4784 = vmatprep.mubr.msk.f32.mxu1 %vm1062_vm0, %v6837_v1  ;;  %v894_v25 = vrot.slane %v6485_v16, 6 }
 0x13c   : > { %v6883_v43 = vsel %vm857_vm2, %v894_v25, %v895_v48  ;;  %v901_v48 = vrot.slane %v6568_v5, 6 }
 0x13d   : > { %5005 = vmatmul.mubr.msk.f32.vlgmr.msra.gmra.mrb[0].mxu0 %vm1062_vm0, %v6706_v40  ;;  %4785 = vmatmul.mubr.msk.f32.gmra.mrb[20].mxu1 %vm1062_vm0, %v6847_v53  ;;  %v900_v40 = vrot.slane %v6553_v10, 6 }
 0x13e   : > { %5053 = vmatpush3.msra.mxu0 %v6457_v59  ;;  %5007 = vmatprep.mubr.msk.f32.mxu0 %vm1062_vm0, %v6712_v3  ;;  %v6873_v59 = vsel %vm857_vm2, 0.0, %v894_v25  ;;  %v897_v3 = vrot.slane %v6528_v54, 6 }
 0x13f   : > { %5102 = vmatprep.subr.mxu0 %v6850_v23  ;;  %4787 = vmatprep.mubr.msk.f32.mxu1 %vm1062_vm0, %v6855_v31 }
 0x140   : > { %v6899_v25 = vsel %vm857_vm2, %v897_v3, %v898_v0  ;;  %v904_v0 = vrot.slane %v6589_v33, 6 }
 0x141   : > { %5008 = vmatmul.mubr.msk.f32.gmra.mrb[2].mxu0 %vm1062_vm0, %v6736_v29  ;;  %4788 = vmatmul.mubr.msk.f32.gmra.mrb[22].mxu1 %vm1062_vm0, %v6867_v7  ;;  %v6889_v29 = vsel %vm857_vm2, 0.0, %v897_v3  ;;  %v6915_v3 = vsel %vm857_vm2, %v900_v40, %v901_v48  ;;  %v7734_v48 = vmov 0.0  }
 0x142   : > { %5010 = vmatprep.mubr.msk.f32.mxu0 %vm1062_vm0, %v6742_v46  ;;  %4790 = vmatprep.mubr.msk.f32.mxu1 %vm1062_vm0, %v6873_v59  ;;  %v903_v46 = vrot.slane %v6575_v30, 6 }
 0x145   : > { %5011 = vmatmul.mubr.msk.f32.gmra.mrb[4].mxu0 %vm1062_vm0, %v6766_v21  ;;  %4791 = vmatmul.mubr.msk.f32.gmra.mrb[24].mxu1 %vm1062_vm0, %v6883_v43  ;;  %v6905_v21 = vsel %vm857_vm2, 0.0, %v900_v40  ;;  %v6930_v40 = vsel %vm857_vm2, %v903_v46, %v904_v0 }
 0x146   : > { %5013 = vmatprep.mubr.msk.f32.mxu0 %vm1062_vm0, %v6772_v27  ;;  %4793 = vmatprep.mubr.msk.f32.mxu1 %vm1062_vm0, %v6889_v29 }
 0x149   : > { %5014 = vmatmul.mubr.msk.f32.gmra.mrb[6].mxu0 %vm1062_vm0, %v6790_v8  ;;  %4794 = vmatmul.mubr.msk.f32.gmra.mrb[26].mxu1 %vm1062_vm0, %v6899_v25  ;;  %v6921_v8 = vsel %vm857_vm2, 0.0, %v903_v46  ;;  %v910_v46 = vrot.slane %v6761_v60, 6 }
 0x14a   : > { %5016 = vmatprep.mubr.msk.f32.mxu0 %vm1062_vm0, %v6796_v22  ;;  %4796 = vmatprep.mubr.msk.f32.mxu1 %vm1062_vm0, %v6905_v21  ;;  %v6933_v22 = vrot.slane %v7734_v48, 2 }
 0x14c   : > { %7735 = vst [vmem:[#allocation64_spill] sm:$0xff] %v6933_v22 }
 0x14d   : > { %5017 = vmatmul.mubr.msk.f32.gmra.mrb[8].mxu0 %vm1062_vm0, %v6812_v47  ;;  %4797 = vmatmul.mubr.msk.f32.gmra.mrb[28].mxu1 %vm1062_vm0, %v6915_v3 }
 0x14e   : > { %5019 = vmatprep.mubr.msk.f32.mxu0 %vm1062_vm0, %v6818_v13  ;;  %4799 = vmatprep.mubr.msk.f32.mxu1 %vm1062_vm0, %v6921_v8  ;;  %v6945_v13 = vsel %vm958_vm1, %v6933_v22, 0.0 }
 0x14f   : > { %7736 = vst [vmem:[#allocation65_spill] sm:$0xff] %v6945_v13 }
 0x151   : > { %5020 = vmatmul.mubr.msk.f32.gmra.mrb[10].mxu0 %vm1062_vm0, %v6831_v49  ;;  %4800 = vmatmul.mubr.msk.f32.gmra.mrb[30].mxu1 %vm1062_vm0, %v6930_v40 }
 0x152   : > { %5022 = vmatprep.mubr.msk.f32.mxu0 %vm1062_vm0, %v6837_v1  ;;  %4804 = vmatprep.mubr.msk.f32.mxu1 %vm1062_vm0, %v6933_v22 }
 0x155   : > { %5023 = vmatmul.mubr.msk.f32.gmra.mrb[12].mxu0 %vm1062_vm0, %v6847_v53  ;;  %4805 = vmatmul.mubr.msk.f32.vlgmr.msra.gmra.mrb[0].mxu1 %vm1062_vm0, %v6945_v13 }
 0x156   : > { %5025 = vmatprep.mubr.msk.f32.mxu0 %vm1062_vm0, %v6855_v31  ;;  %4807 = vmatprep.mubr.msk.f32.mxu1 %vm1062_vm0, %v6933_v22  ;;  %v7749_v22 = vld [vmem:[#allocation49_spill] sm:$0xff] }
 0x157   : > { %4853 = vmatpush3.msra.mxu1 %v6626_v18 }
 0x158   : > { %5152 = vmatprep.subr.mxu1 %v6244_v2 }
 0x159   : > { %5026 = vmatmul.mubr.msk.f32.gmra.mrb[14].mxu0 %vm1062_vm0, %v6867_v7  ;;  %4808 = vmatmul.mubr.msk.f32.gmra.mrb[2].mxu1 %vm1062_vm0, %v6945_v13  ;;  %v7746_v13 = vld [vmem:[#allocation46_spill] sm:$0xff] }
 0x15a   : > { %5028 = vmatprep.mubr.msk.f32.mxu0 %vm1062_vm0, %v6873_v59  ;;  %4810 = vmatprep.mubr.msk.f32.mxu1 %vm1062_vm0, %v6415_v32  ;;  %v906_v32 = vrot.slane %v6728_v28, 6 }
 0x15d   : > { %5029 = vmatmul.mubr.msk.f32.gmra.mrb[16].mxu0 %vm1062_vm0, %v6883_v43  ;;  %4811 = vmatmul.mubr.msk.f32.gmra.mrb[4].mxu1 %vm1062_vm0, %v6437_v45  ;;  %v907_v45 = vrot.slane %v6731_v52, 6 }
 0x15e   : > { %5031 = vmatprep.mubr.msk.f32.mxu0 %vm1062_vm0, %v6889_v29  ;;  %4813 = vmatprep.mubr.msk.f32.mxu1 %vm1062_vm0, %v6447_v51  ;;  %v6990_v51 = vsel %vm857_vm2, 0.0, %v906_v32 }
 0x15f   : > { %v7000_v18 = vsel %vm857_vm2, %v906_v32, %v907_v45  ;;  %v7737_v45 = vld [vmem:[#allocation36_spill] sm:$0xff] }
 0x161   : > { %5032 = vmatmul.mubr.msk.f32.gmra.mrb[18].mxu0 %vm1062_vm0, %v6899_v25  ;;  %4814 = vmatmul.mubr.msk.f32.gmra.mrb[6].mxu1 %vm1062_vm0, %v6462_v61  ;;  %v909_v61 = vrot.slane %v6758_v42, 6 }
 0x162   : > { %5034 = vmatprep.mubr.msk.f32.mxu0 %vm1062_vm0, %v6905_v21  ;;  %4816 = vmatprep.mubr.msk.f32.mxu1 %vm1062_vm0, %v6471_v4 }
 0x163   : > { %v7006_v0 = vsel %vm857_vm2, 0.0, %v909_v61  ;;  %v7015_v32 = vsel %vm857_vm2, %v909_v61, %v910_v46  ;;  %v7741_v61 = vld [vmem:[#allocation31_spill] sm:$0xff]  ;;  %v7742_v46 = vld [vmem:[#allocation42_spill] sm:$0xff] }
 0x165   : > { %5035 = vmatmul.mubr.msk.f32.gmra.mrb[20].mxu0 %vm1062_vm0, %v6915_v3  ;;  %4817 = vmatmul.mubr.msk.f32.gmra.mrb[8].mxu1 %vm1062_vm0, %v6483_v14 }
 0x166   : > { %5037 = vmatprep.mubr.msk.f32.mxu0 %vm1062_vm0, %v6921_v8  ;;  %4819 = vmatprep.mubr.msk.f32.mxu1 %vm1062_vm0, %v6508_v38 }
 0x169   : > { %5038 = vmatmul.mubr.msk.f32.gmra.mrb[22].mxu0 %vm1062_vm0, %v6930_v40  ;;  %4820 = vmatmul.mubr.msk.f32.gmra.mrb[10].mxu1 %vm1062_vm0, %v6538_v63 }
 0x16a   : > { %5040 = vmatprep.mubr.msk.f32.mxu0 %vm1062_vm0, %v6990_v51  ;;  %4822 = vmatprep.mubr.msk.f32.mxu1 %vm1062_vm0, %v6547_v11 }
 0x16d   : > { %5041 = vmatmul.mubr.msk.f32.gmra.mrb[24].mxu0 %vm1062_vm0, %v7000_v18  ;;  %4823 = vmatmul.mubr.msk.f32.gmra.mrb[12].mxu1 %vm1062_vm0, %v6561_v19 }
 0x16e   : > { %5043 = vmatprep.mubr.msk.f32.mxu0 %vm1062_vm0, %v7006_v0  ;;  %4825 = vmatprep.mubr.msk.f32.mxu1 %vm1062_vm0, %v6564_v20 }
 0x171   : > { %5044 = vmatmul.mubr.msk.f32.gmra.mrb[26].mxu0 %vm1062_vm0, %v7015_v32  ;;  %4826 = vmatmul.mubr.msk.f32.gmra.mrb[14].mxu1 %vm1062_vm0, %v6585_v6 }
 0x172   : > { %5046 = vmatprep.mubr.msk.f32.mxu0 %vm1062_vm0, %v6602_v56  ;;  %4828 = vmatprep.mubr.msk.f32.mxu1 %vm1062_vm0, %v6592_v36 }
 0x175   : > { %5047 = vmatmul.mubr.msk.f32.gmra.mrb[28].mxu0 %vm1062_vm0, %v6580_v26  ;;  %4829 = vmatmul.mubr.msk.f32.gmra.mrb[16].mxu1 %vm1062_vm0, %v6607_v58 }
 0x176   : > { %5049 = vmatprep.mubr.msk.f32.mxu0 %vm1062_vm0, %v6602_v56  ;;  %4831 = vmatprep.mubr.msk.f32.mxu1 %vm1062_vm0, %v6612_v62  ;;  %v7738_v56 = vld [vmem:[#allocation38_spill] sm:$0xff] }
 0x179   : > { %5050 = vmatmul.mubr.msk.f32.gmra.mrb[30].mxu0 %vm1062_vm0, %v6580_v26  ;;  %4832 = vmatmul.mubr.msk.f32.gmra.mrb[18].mxu1 %vm1062_vm0, %v6624_v17  ;;  %v7739_v26 = vld [vmem:[#allocation39_spill] sm:$0xff] }
 0x17a   : > { %5054 = vmatprep.mubr.msk.f32.mxu0 %vm1062_vm0, %v6296_v35  ;;  %4834 = vmatprep.mubr.msk.f32.mxu1 %vm1062_vm0, %v7737_v45  ;;  %v7740_v35 = vld [vmem:[#allocation30_spill] sm:$0xff] }
 0x17d   : > { %5055 = vmatmul.mubr.msk.f32.vlgmr.msra.gmra.mrb[0].mxu0 %vm1062_vm0, %v6311_v41  ;;  %4835 = vmatmul.mubr.msk.f32.gmra.mrb[20].mxu1 %vm1062_vm0, %v7738_v56  ;;  %v7743_v41 = vld [vmem:[#allocation43_spill] sm:$0xff] }
 0x17e   : > { %5103 = vmatpush3.msra.mxu0 %v6850_v23  ;;  %5057 = vmatprep.mubr.msk.f32.mxu0 %vm1062_vm0, %v6318_v44  ;;  %v7744_v44 = vld [vmem:[#allocation32_spill] sm:$0xff]  ;;  %v7745_v23 = vld [vmem:[#allocation45_spill] sm:$0xff] }
 0x17f   : > { %4837 = vmatprep.mubr.msk.f32.mxu1 %vm1062_vm0, %v7739_v26 }
 0x181   : > { %5058 = vmatmul.mubr.msk.f32.gmra.mrb[2].mxu0 %vm1062_vm0, %v7740_v35  ;;  %4838 = vmatmul.mubr.msk.f32.gmra.mrb[22].mxu1 %vm1062_vm0, %v7742_v46  ;;  %v7747_v35 = vld [vmem:[#allocation33_spill] sm:$0xff] }
 0x182   : > { %5060 = vmatprep.mubr.msk.f32.mxu0 %vm1062_vm0, %v7741_v61  ;;  %4840 = vmatprep.mubr.msk.f32.mxu1 %vm1062_vm0, %v7743_v41  ;;  %v7748_v61 = vld [vmem:[#allocation34_spill] sm:$0xff] }
 0x183   : > { %v7750_v41 = vld [vmem:[#allocation50_spill] sm:$0xff] }
 0x185   : > { %5061 = vmatmul.mubr.msk.f32.gmra.mrb[4].mxu0 %vm1062_vm0, %v6348_v57  ;;  %4841 = vmatmul.mubr.msk.f32.gmra.mrb[24].mxu1 %vm1062_vm0, %v7745_v23  ;;  %v7751_v57 = vld [vmem:[#allocation53_spill] sm:$0xff] }
 0x186   : > { %5063 = vmatprep.mubr.msk.f32.mxu0 %vm1062_vm0, %v7744_v44  ;;  %4843 = vmatprep.mubr.msk.f32.mxu1 %vm1062_vm0, %v7746_v13  ;;  %v7752_v44 = vld [vmem:[#allocation54_spill] sm:$0xff] }
 0x189   : > { %5064 = vmatmul.mubr.msk.f32.gmra.mrb[6].mxu0 %vm1062_vm0, %v7747_v35  ;;  %4844 = vmatmul.mubr.msk.f32.gmra.mrb[26].mxu1 %vm1062_vm0, %v7749_v22  ;;  %v7753_v35 = vld [vmem:[#allocation56_spill] sm:$0xff] }
 0x18a   : > { %5066 = vmatprep.mubr.msk.f32.mxu0 %vm1062_vm0, %v7748_v61  ;;  %4846 = vmatprep.mubr.msk.f32.mxu1 %vm1062_vm0, %v7750_v41  ;;  %v7754_v61 = vld [vmem:[#allocation37_spill] sm:$0xff] }
 0x18d   : > { %5067 = vmatmul.mubr.msk.f32.gmra.mrb[8].mxu0 %vm1062_vm0, %v6383_v12  ;;  %4847 = vmatmul.mubr.msk.f32.gmra.mrb[28].mxu1 %vm1062_vm0, %v7751_v57  ;;  %v7755_v12 = vld [vmem:[#allocation40_spill] sm:$0xff] }
 0x18e   : > { %5069 = vmatprep.mubr.msk.f32.mxu0 %vm1062_vm0, %v6389_v15  ;;  %4849 = vmatprep.mubr.msk.f32.mxu1 %vm1062_vm0, %v7752_v44  ;;  %v7756_v15 = vld [vmem:[#allocation41_spill] sm:$0xff] }
 0x191   : > { %5070 = vmatmul.mubr.msk.f32.gmra.mrb[10].mxu0 %vm1062_vm0, %v6404_v24  ;;  %4850 = vmatmul.mubr.msk.f32.gmra.mrb[30].mxu1 %vm1062_vm0, %v7753_v35  ;;  %v7757_v24 = vld [vmem:[#allocation35_spill] sm:$0xff] }
 0x192   : > { %5072 = vmatprep.mubr.msk.f32.mxu0 %vm1062_vm0, %v6423_v39  ;;  %4854 = vmatprep.mubr.msk.f32.mxu1 %vm1062_vm0, %v7754_v61  ;;  %v7758_v61 = vld [vmem:[#allocation44_spill] sm:$0xff] }
 0x195   : > { %5073 = vmatmul.mubr.msk.f32.gmra.mrb[12].mxu0 %vm1062_vm0, %v6444_v50  ;;  %4855 = vmatmul.mubr.msk.f32.vlgmr.msra.gmra.mrb[0].mxu1 %vm1062_vm0, %v7755_v12  ;;  %v7759_v12 = vld [vmem:[#allocation47_spill] sm:$0xff] }
 0x196   : > { %5075 = vmatprep.mubr.msk.f32.mxu0 %vm1062_vm0, %v6453_v55  ;;  %4857 = vmatprep.mubr.msk.f32.mxu1 %vm1062_vm0, %v7756_v15  ;;  %v7761_v15 = vld [vmem:[#allocation51_spill] sm:$0xff] }
 0x197   : > { %5153 = vmatpush3.msra.mxu1 %v6244_v2  ;;  %v7760_v2 = vld [vmem:[#allocation48_spill] sm:$0xff] }
 0x199   : > { %5076 = vmatmul.mubr.msk.f32.gmra.mrb[14].mxu0 %vm1062_vm0, %v6480_v34  ;;  %4858 = vmatmul.mubr.msk.f32.gmra.mrb[2].mxu1 %vm1062_vm0, %v7757_v24  ;;  %v7762_v24 = vld [vmem:[#allocation52_spill] sm:$0xff] }
 0x19a   : > { %5078 = vmatprep.mubr.msk.f32.mxu0 %vm1062_vm0, %v6485_v16  ;;  %4860 = vmatprep.mubr.msk.f32.mxu1 %vm1062_vm0, %v7758_v61  ;;  %v7763_v61 = vld [vmem:[#allocation55_spill] sm:$0xff] }
 0x19d   : > { %5079 = vmatmul.mubr.msk.f32.gmra.mrb[16].mxu0 %vm1062_vm0, %v6505_v37  ;;  %4861 = vmatmul.mubr.msk.f32.gmra.mrb[4].mxu1 %vm1062_vm0, %v7759_v12  ;;  %v7764_v12 = vld [vmem:[#allocation58_spill] sm:$0xff] }
 0x19e   : > { %5081 = vmatprep.mubr.msk.f32.mxu0 %vm1062_vm0, %v6528_v54  ;;  %4863 = vmatprep.mubr.msk.f32.mxu1 %vm1062_vm0, %v7760_v2  ;;  %v7765_v2 = vld [vmem:[#allocation59_spill] sm:$0xff] }
 0x1a1   : > { %5082 = vmatmul.mubr.msk.f32.gmra.mrb[18].mxu0 %vm1062_vm0, %v6544_v9  ;;  %4864 = vmatmul.mubr.msk.f32.gmra.mrb[6].mxu1 %vm1062_vm0, %v7761_v15 }
 0x1a2   : > { %5084 = vmatprep.mubr.msk.f32.mxu0 %vm1062_vm0, %v6553_v10  ;;  %4866 = vmatprep.mubr.msk.f32.mxu1 %vm1062_vm0, %v7762_v24 }
 0x1a5   : > { %5085 = vmatmul.mubr.msk.f32.gmra.mrb[20].mxu0 %vm1062_vm0, %v6568_v5  ;;  %4867 = vmatmul.mubr.msk.f32.gmra.mrb[8].mxu1 %vm1062_vm0, %v7763_v61 }
 0x1a6   : > { %5087 = vmatprep.mubr.msk.f32.mxu0 %vm1062_vm0, %v6575_v30  ;;  %4869 = vmatprep.mubr.msk.f32.mxu1 %vm1062_vm0, %v6772_v27  ;;  %v7766_v27 = vld [vmem:[#allocation62_spill] sm:$0xff] }
 0x1a9   : > { %5088 = vmatmul.mubr.msk.f32.gmra.mrb[22].mxu0 %vm1062_vm0, %v6589_v33  ;;  %4870 = vmatmul.mubr.msk.f32.gmra.mrb[10].mxu1 %vm1062_vm0, %v7764_v12 }
 0x1aa   : > { %5090 = vmatprep.mubr.msk.f32.mxu0 %vm1062_vm0, %v6728_v28  ;;  %4872 = vmatprep.mubr.msk.f32.mxu1 %vm1062_vm0, %v7765_v2 }
 0x1ad   : > { %5091 = vmatmul.mubr.msk.f32.gmra.mrb[24].mxu0 %vm1062_vm0, %v6731_v52  ;;  %4873 = vmatmul.mubr.msk.f32.gmra.mrb[12].mxu1 %vm1062_vm0, %v6812_v47 }
 0x1ae   : > { %5093 = vmatprep.mubr.msk.f32.mxu0 %vm1062_vm0, %v6758_v42  ;;  %4875 = vmatprep.mubr.msk.f32.mxu1 %vm1062_vm0, %v7766_v27 }
 0x1b1   : > { %5094 = vmatmul.mubr.msk.f32.gmra.mrb[26].mxu0 %vm1062_vm0, %v6761_v60  ;;  %4876 = vmatmul.mubr.msk.f32.gmra.mrb[14].mxu1 %vm1062_vm0, %v6831_v49 }
 0x1b2   : > { %5096 = vmatprep.mubr.f32.mxu0 %v7734_v48  ;;  %4878 = vmatprep.mubr.msk.f32.mxu1 %vm1062_vm0, %v6837_v1  ;;  %v7767_v1 = vld [vmem:[#allocation43_spill] sm:$0xff] }
 0x1b5   : > { %5097 = vmatmul.mubr.f32.gmra.mrb[28].mxu0 %v7734_v48  ;;  %4879 = vmatmul.mubr.msk.f32.gmra.mrb[16].mxu1 %vm1062_vm0, %v6847_v53 }
 0x1b6   : > { %5099 = vmatprep.mubr.f32.mxu0 %v7734_v48  ;;  %4881 = vmatprep.mubr.msk.f32.mxu1 %vm1062_vm0, %v6855_v31 }
 0x1b9   : > { %5100 = vmatmul.mubr.f32.gmra.mrb[30].mxu0 %v7734_v48  ;;  %4882 = vmatmul.mubr.msk.f32.gmra.mrb[18].mxu1 %vm1062_vm0, %v6867_v7 }
 0x1ba   : > { %5104 = vmatprep.mubr.msk.f32.mxu0 %vm1062_vm0, %v6471_v4  ;;  %4884 = vmatprep.mubr.msk.f32.mxu1 %vm1062_vm0, %v6873_v59  ;;  %v7772_v4 = vld [vmem:[#allocation64_spill] sm:$0xff] }
 0x1bd   : > { %5105 = vmatmul.mubr.msk.f32.vlgmr.msra.gmra.mrb[0].mxu0 %vm1062_vm0, %v6483_v14  ;;  %4885 = vmatmul.mubr.msk.f32.gmra.mrb[20].mxu1 %vm1062_vm0, %v6883_v43 }
 0x1be   : > { %5107 = vmatprep.mubr.msk.f32.mxu0 %vm1062_vm0, %v6508_v38  ;;  %4887 = vmatprep.mubr.msk.f32.mxu1 %vm1062_vm0, %v6889_v29 }
 0x1c1   : > { %5108 = vmatmul.mubr.msk.f32.gmra.mrb[2].mxu0 %vm1062_vm0, %v6538_v63  ;;  %4888 = vmatmul.mubr.msk.f32.gmra.mrb[22].mxu1 %vm1062_vm0, %v6899_v25 }
 0x1c2   : > { %5110 = vmatprep.mubr.msk.f32.mxu0 %vm1062_vm0, %v6547_v11  ;;  %4890 = vmatprep.mubr.msk.f32.mxu1 %vm1062_vm0, %v6905_v21 }
 0x1c5   : > { %5111 = vmatmul.mubr.msk.f32.gmra.mrb[4].mxu0 %vm1062_vm0, %v6561_v19  ;;  %4891 = vmatmul.mubr.msk.f32.gmra.mrb[24].mxu1 %vm1062_vm0, %v6915_v3 }
 0x1c6   : > { %5113 = vmatprep.mubr.msk.f32.mxu0 %vm1062_vm0, %v6564_v20  ;;  %4893 = vmatprep.mubr.msk.f32.mxu1 %vm1062_vm0, %v6921_v8  ;;  %v7768_v8 = vld [vmem:[#allocation57_spill] sm:$0xff] }
 0x1c9   : > { %5114 = vmatmul.mubr.msk.f32.gmra.mrb[6].mxu0 %vm1062_vm0, %v6585_v6  ;;  %4894 = vmatmul.mubr.msk.f32.gmra.mrb[26].mxu1 %vm1062_vm0, %v6930_v40 }
 0x1ca   : > { %5116 = vmatprep.mubr.msk.f32.mxu0 %vm1062_vm0, %v6592_v36  ;;  %4896 = vmatprep.mubr.msk.f32.mxu1 %vm1062_vm0, %v6990_v51 }
 0x1cd   : > { %5117 = vmatmul.mubr.msk.f32.gmra.mrb[8].mxu0 %vm1062_vm0, %v6607_v58  ;;  %4897 = vmatmul.mubr.msk.f32.gmra.mrb[28].mxu1 %vm1062_vm0, %v7000_v18 }
 0x1ce   : > { %5119 = vmatprep.mubr.msk.f32.mxu0 %vm1062_vm0, %v6612_v62  ;;  %4899 = vmatprep.mubr.msk.f32.mxu1 %vm1062_vm0, %v7006_v0 }
 0x1d1   : > { %5120 = vmatmul.mubr.msk.f32.gmra.mrb[10].mxu0 %vm1062_vm0, %v6624_v17  ;;  %4900 = vmatmul.mubr.msk.f32.gmra.mrb[30].mxu1 %vm1062_vm0, %v7015_v32 }
 0x1d2   : > { %5122 = vmatprep.mubr.msk.f32.mxu0 %vm1062_vm0, %v7737_v45  ;;  %4928 = vmatprep.mubr.msk.f32.mxu1 %vm1062_vm0, %v6423_v39  ;;  %v7769_v39 = vld [vmem:[#allocation60_spill] sm:$0xff] }
 0x1d5   : > { %5123 = vmatmul.mubr.msk.f32.gmra.mrb[12].mxu0 %vm1062_vm0, %v7738_v56  ;;  %4929 = vmatmul.mubr.msk.f32.vlgmr.msra.gmra.mrb[16].mxu1 %vm1062_vm0, %v6444_v50  ;;  %v7770_v50 = vld [vmem:[#allocation61_spill] sm:$0xff] }
 0x1d6   : > { %5125 = vmatprep.mubr.msk.f32.mxu0 %vm1062_vm0, %v7739_v26  ;;  %4931 = vmatprep.mubr.msk.f32.mxu1 %vm1062_vm0, %v6453_v55  ;;  %v7771_v55 = vld [vmem:[#allocation63_spill] sm:$0xff] }
 0x1d9   : > { %5126 = vmatmul.mubr.msk.f32.gmra.mrb[14].mxu0 %vm1062_vm0, %v7742_v46  ;;  %4932 = vmatmul.mubr.msk.f32.gmra.mrb[18].mxu1 %vm1062_vm0, %v6480_v34  ;;  %v7773_v34 = vld [vmem:[#allocation65_spill] sm:$0xff] }
 0x1da   : > { %5128 = vmatprep.mubr.msk.f32.mxu0 %vm1062_vm0, %v7767_v1  ;;  %4934 = vmatprep.mubr.msk.f32.mxu1 %vm1062_vm0, %v6485_v16 }
 0x1dd   : > { %5129 = vmatmul.mubr.msk.f32.gmra.mrb[16].mxu0 %vm1062_vm0, %v7745_v23  ;;  %4935 = vmatmul.mubr.msk.f32.gmra.mrb[20].mxu1 %vm1062_vm0, %v6505_v37 }
 0x1de   : > { %5131 = vmatprep.mubr.msk.f32.mxu0 %vm1062_vm0, %v7746_v13  ;;  %4937 = vmatprep.mubr.msk.f32.mxu1 %vm1062_vm0, %v6528_v54 }
 0x1e1   : > { %5132 = vmatmul.mubr.msk.f32.gmra.mrb[18].mxu0 %vm1062_vm0, %v7749_v22  ;;  %4938 = vmatmul.mubr.msk.f32.gmra.mrb[22].mxu1 %vm1062_vm0, %v6544_v9 }
 0x1e2   : > { %5134 = vmatprep.mubr.msk.f32.mxu0 %vm1062_vm0, %v7750_v41  ;;  %4940 = vmatprep.mubr.msk.f32.mxu1 %vm1062_vm0, %v6553_v10 }
 0x1e5   : > { %5135 = vmatmul.mubr.msk.f32.gmra.mrb[20].mxu0 %vm1062_vm0, %v7751_v57  ;;  %4941 = vmatmul.mubr.msk.f32.gmra.mrb[24].mxu1 %vm1062_vm0, %v6568_v5 }
 0x1e6   : > { %5137 = vmatprep.mubr.msk.f32.mxu0 %vm1062_vm0, %v7752_v44  ;;  %4943 = vmatprep.mubr.msk.f32.mxu1 %vm1062_vm0, %v6575_v30 }
 0x1e9   : > { %5138 = vmatmul.mubr.msk.f32.gmra.mrb[22].mxu0 %vm1062_vm0, %v7753_v35  ;;  %4944 = vmatmul.mubr.msk.f32.gmra.mrb[26].mxu1 %vm1062_vm0, %v6589_v33 }
 0x1ea   : > { %5140 = vmatprep.mubr.msk.f32.mxu0 %vm1062_vm0, %v7768_v8  ;;  %4946 = vmatprep.mubr.msk.f32.mxu1 %vm1062_vm0, %v6728_v28 }
 0x1ed   : > { %5141 = vmatmul.mubr.msk.f32.gmra.mrb[24].mxu0 %vm1062_vm0, %v7769_v39  ;;  %4947 = vmatmul.mubr.msk.f32.gmra.mrb[28].mxu1 %vm1062_vm0, %v6731_v52 }
 0x1ee   : > { %5143 = vmatprep.mubr.msk.f32.mxu0 %vm1062_vm0, %v7770_v50  ;;  %4949 = vmatprep.mubr.msk.f32.mxu1 %vm1062_vm0, %v6758_v42 }
 0x1f1   : > { %5144 = vmatmul.mubr.msk.f32.gmra.mrb[26].mxu0 %vm1062_vm0, %v7771_v55  ;;  %4950 = vmatmul.mubr.msk.f32.gmra.mrb[30].mxu1 %vm1062_vm0, %v6761_v60 }
 0x1f2   : > { %5146 = vmatprep.mubr.msk.f32.mxu0 %vm1062_vm0, %v7772_v4 }
 0x1f5   : > { %5147 = vmatmul.mubr.msk.f32.gmra.mrb[28].mxu0 %vm1062_vm0, %v7773_v34 }
 0x1f6   : > { %5149 = vmatprep.mubr.msk.f32.mxu0 %vm1062_vm0, %v7772_v4 }
 0x1f9   : > { %5150 = vmatmul.mubr.msk.f32.gmra.mrb[30].mxu0 %vm1062_vm0, %v7773_v34 }
 0x268   : > { %v4856_v52 = vpop.f32.mrb[0].mxu1 }
 0x269   : > { %v2074_v42 = vpop.f32.mrb[1].mxu1 }
 0x26c   : > { %v4859_v14 = vpop.f32.mrb[2].mxu1 }
 0x26d   : > { %v2084_v16 = vpop.f32.mrb[3].mxu1 }
 0x270   : > { %v4862_v37 = vpop.f32.mrb[4].mxu1 }
 0x271   : > { %v2094_v38 = vpop.f32.mrb[5].mxu1 }
 0x274   : > { %v4865_v54 = vpop.f32.mrb[6].mxu1 }
 0x275   : > { %v2104_v63 = vpop.f32.mrb[7].mxu1 }
 0x278   : > { %v7287_v9 = vpop.f32.mrb[8].mxu1 }
 0x279   : > { %v7289_v60 = vpop.f32.mrb[9].mxu1 }
 0x27c   : > { %v7291_v11 = vpop.f32.mrb[10].mxu1 }
 0x27d   : > { %v7293_v10 = vpop.f32.mrb[11].mxu1 }
 0x280   : > { %v7295_v19 = vpop.f32.mrb[12].mxu1 }
 0x281   : > { %v7297_v20 = vpop.f32.mrb[13].mxu1 }
 0x284   : > { %v7299_v5 = vpop.f32.mrb[14].mxu1 }
 0x285   : > { %v7301_v30 = vpop.f32.mrb[15].mxu1 }
 0x290   : > { %v5106_v6 = vpop.f32.mrb[0].mxu0 }
 0x291   : > { %v5154_v33 = vadd.f32 %v5106_v6, %v4856_v52  ;;  %v3415_v36 = vpop.f32.mrb[1].mxu0 }
 0x292   : > { %v5155_v58 = vadd.f32 %v3415_v36, %v2074_v42 }
 0x293   : > { %3607 = vst.msk [vmem:[%s7305_s14 + $0x8] sm:$0xff] %vm1062_vm0, %v5154_v33  ;;  %v3639_v62 = vsel %vm1062_vm0, %v5154_v33, 0.0  ;;  %v3710_v17 = vmul.f32 %v5154_v33, %v5154_v33 }
 0x294   : > { %3606 = vst.msk [vmem:[%s7305_s14] sm:$0xff] %vm1062_vm0, %v5155_v58  ;;  %v3638_v28 = vsel %vm1062_vm0, %v5155_v58, 0.0  ;;  %v3709_v29 = vmul.f32 %v5155_v58, %v5155_v58  ;;  %v5109_v21 = vpop.f32.mrb[2].mxu0 }
 0x295   : > { %v3742_v22 = vsel %vm1062_vm0, %v3710_v17, 0.0  ;;  %v3640_v31 = vadd.f32 %v3639_v62, %v3638_v28  ;;  %v5156_v47 = vadd.f32 %v5109_v21, %v4859_v14  ;;  %v3425_v13 = vpop.f32.mrb[3].mxu0 }
 0x296   : > { %v3741_v49 = vsel %vm1062_vm0, %v3709_v29, 0.0  ;;  %v5157_v53 = vadd.f32 %v3425_v13, %v2084_v16 }
 0x297   : > { %v3743_v7 = vadd.f32 %v3742_v22, %v3741_v49  ;;  %3609 = vst.msk [vmem:[%s7305_s14 + $0x18] sm:$0xff] %vm1062_vm0, %v5156_v47  ;;  %v3712_v59 = vmul.f32 %v5156_v47, %v5156_v47  ;;  %v3643_v18 = vsel %vm1062_vm0, %v5156_v47, 0.0 }
 0x298   : > { %3608 = vst.msk [vmem:[%s7305_s14 + $0x10] sm:$0xff] %vm1062_vm0, %v5157_v53  ;;  %v3641_v43 = vsel %vm1062_vm0, %v5157_v53, 0.0  ;;  %v3711_v25 = vmul.f32 %v5157_v53, %v5157_v53  ;;  %v5112_v3 = vpop.f32.mrb[4].mxu0 }
 0x299   : > { %v3642_v40 = vadd.f32 %v3641_v43, %v3640_v31  ;;  %v5158_v48 = vadd.f32 %v5112_v3, %v4862_v37  ;;  %v3435_v51 = vpop.f32.mrb[5].mxu0  ;;  %v3746_v26 = vsel %vm1062_vm0, %v3712_v59, 0.0 }
 0x29a   : > { %v3744_v0 = vsel %vm1062_vm0, %v3711_v25, 0.0  ;;  %v5159_v32 = vadd.f32 %v3435_v51, %v2094_v38 }
 0x29b   : > { %v3745_v45 = vadd.f32 %v3744_v0, %v3743_v7  ;;  %3611 = vst.msk [vmem:[%s7305_s14 + $0x28] sm:$0xff] %vm1062_vm0, %v5158_v48  ;;  %v3644_v56 = vadd.f32 %v3643_v18, %v3642_v40  ;;  %v3714_v46 = vmul.f32 %v5158_v48, %v5158_v48  ;;  %v3647_v61 = vsel %vm1062_vm0, %v5158_v48, 0.0 }
 0x29c   : > { %3610 = vst.msk [vmem:[%s7305_s14 + $0x20] sm:$0xff] %vm1062_vm0, %v5159_v32  ;;  %v3645_v41 = vsel %vm1062_vm0, %v5159_v32, 0.0  ;;  %v3713_v23 = vmul.f32 %v5159_v32, %v5159_v32  ;;  %v5115_v57 = vpop.f32.mrb[6].mxu0 }
 0x29d   : > { %v3646_v44 = vadd.f32 %v3645_v41, %v3644_v56  ;;  %v3747_v35 = vadd.f32 %v3746_v26, %v3745_v45  ;;  %v5160_v15 = vadd.f32 %v5115_v57, %v4865_v54  ;;  %v3445_v24 = vpop.f32.mrb[7].mxu0  ;;  %v3750_v8 = vsel %vm1062_vm0, %v3714_v46, 0.0 }
 0x29e   : > { %v3748_v12 = vsel %vm1062_vm0, %v3713_v23, 0.0  ;;  %v5161_v2 = vadd.f32 %v3445_v24, %v2104_v63 }
 0x29f   : > { %v3749_v27 = vadd.f32 %v3748_v12, %v3747_v35  ;;  %3613 = vst.msk [vmem:[%s7305_s14 + $0x38] sm:$0xff] %vm1062_vm0, %v5160_v15  ;;  %v3648_v1 = vadd.f32 %v3647_v61, %v3646_v44  ;;  %v3716_v39 = vmul.f32 %v5160_v15, %v5160_v15  ;;  %v3651_v16 = vsel %vm1062_vm0, %v5160_v15, 0.0 }
 0x2a0   : > { %3612 = vst.msk [vmem:[%s7305_s14 + $0x30] sm:$0xff] %vm1062_vm0, %v5161_v2  ;;  %v3649_v50 = vsel %vm1062_vm0, %v5161_v2, 0.0  ;;  %v3715_v55 = vmul.f32 %v5161_v2, %v5161_v2  ;;  %v5118_v4 = vpop.f32.mrb[8].mxu0 }
 0x2a1   : > { %v3650_v34 = vadd.f32 %v3649_v50, %v3648_v1  ;;  %v3751_v52 = vadd.f32 %v3750_v8, %v3749_v27  ;;  %v5162_v42 = vadd.f32 %v5118_v4, %v7287_v9  ;;  %v3455_v14 = vpop.f32.mrb[9].mxu0  ;;  %v3754_v6 = vsel %vm1062_vm0, %v3716_v39, 0.0 }
 0x2a2   : > { %v3752_v37 = vsel %vm1062_vm0, %v3715_v55, 0.0  ;;  %v5163_v38 = vadd.f32 %v3455_v14, %v7289_v60 }
 0x2a3   : > { %v3753_v54 = vadd.f32 %v3752_v37, %v3751_v52  ;;  %3615 = vst.msk [vmem:[%s7305_s14 + $0x48] sm:$0xff] %vm1062_vm0, %v5162_v42  ;;  %v3652_v63 = vadd.f32 %v3651_v16, %v3650_v34  ;;  %v3718_v33 = vmul.f32 %v5162_v42, %v5162_v42  ;;  %v3655_v29 = vsel %vm1062_vm0, %v5162_v42, 0.0 }
 0x2a4   : > { %3614 = vst.msk [vmem:[%s7305_s14 + $0x40] sm:$0xff] %vm1062_vm0, %v5163_v38  ;;  %v3653_v9 = vsel %vm1062_vm0, %v5163_v38, 0.0  ;;  %v3717_v36 = vmul.f32 %v5163_v38, %v5163_v38  ;;  %v5121_v58 = vpop.f32.mrb[10].mxu0 }
 0x2a5   : > { %v3654_v62 = vadd.f32 %v3653_v9, %v3652_v63  ;;  %v3755_v17 = vadd.f32 %v3754_v6, %v3753_v54  ;;  %v5164_v28 = vadd.f32 %v5121_v58, %v7291_v11  ;;  %v3465_v60 = vpop.f32.mrb[11].mxu0  ;;  %v3758_v13 = vsel %vm1062_vm0, %v3718_v33, 0.0 }
 0x2a6   : > { %v3756_v21 = vsel %vm1062_vm0, %v3717_v36, 0.0  ;;  %v5165_v22 = vadd.f32 %v3465_v60, %v7293_v10 }
 0x2a7   : > { %v3757_v31 = vadd.f32 %v3756_v21, %v3755_v17  ;;  %3617 = vst.msk [vmem:[%s7305_s14 + $0x58] sm:$0xff] %vm1062_vm0, %v5164_v28  ;;  %v3656_v47 = vadd.f32 %v3655_v29, %v3654_v62  ;;  %v3720_v49 = vmul.f32 %v5164_v28, %v5164_v28  ;;  %v3659_v3 = vsel %vm1062_vm0, %v5164_v28, 0.0 }
 0x2a8   : > { %3616 = vst.msk [vmem:[%s7305_s14 + $0x50] sm:$0xff] %vm1062_vm0, %v5165_v22  ;;  %v3657_v53 = vsel %vm1062_vm0, %v5165_v22, 0.0  ;;  %v3719_v11 = vmul.f32 %v5165_v22, %v5165_v22  ;;  %v5124_v7 = vpop.f32.mrb[12].mxu0  ;;  %v4930_v51 = vpop.f32.mrb[16].mxu1 }
 0x2a9   : > { %v3658_v59 = vadd.f32 %v3657_v53, %v3656_v47  ;;  %v3759_v43 = vadd.f32 %v3758_v13, %v3757_v31  ;;  %v5166_v25 = vadd.f32 %v5124_v7, %v7295_v19  ;;  %v3475_v10 = vpop.f32.mrb[13].mxu0  ;;  %v2421_v32 = vpop.f32.mrb[17].mxu1  ;;  %v3762_v45 = vsel %vm1062_vm0, %v3720_v49, 0.0 }
 0x2aa   : > { %v3760_v40 = vsel %vm1062_vm0, %v3719_v11, 0.0  ;;  %v5167_v48 = vadd.f32 %v3475_v10, %v7297_v20 }
 0x2ab   : > { %v3761_v18 = vadd.f32 %v3760_v40, %v3759_v43  ;;  %3619 = vst.msk [vmem:[%s7305_s14 + $0x68] sm:$0xff] %vm1062_vm0, %v5166_v25  ;;  %v3660_v0 = vadd.f32 %v3659_v3, %v3658_v59  ;;  %v3722_v56 = vmul.f32 %v5166_v25, %v5166_v25  ;;  %v3663_v44 = vsel %vm1062_vm0, %v5166_v25, 0.0 }
 0x2ac   : > { %3618 = vst.msk [vmem:[%s7305_s14 + $0x60] sm:$0xff] %vm1062_vm0, %v5167_v48  ;;  %v3661_v19 = vsel %vm1062_vm0, %v5167_v48, 0.0  ;;  %v3721_v26 = vmul.f32 %v5167_v48, %v5167_v48  ;;  %v5127_v46 = vpop.f32.mrb[14].mxu0  ;;  %v4933_v24 = vpop.f32.mrb[18].mxu1 }
 0x2ad   : > { %v3662_v41 = vadd.f32 %v3661_v19, %v3660_v0  ;;  %v3763_v23 = vadd.f32 %v3762_v45, %v3761_v18  ;;  %v5168_v20 = vadd.f32 %v5127_v46, %v7299_v5  ;;  %v3485_v57 = vpop.f32.mrb[15].mxu0  ;;  %v2431_v2 = vpop.f32.mrb[19].mxu1  ;;  %v3766_v27 = vsel %vm1062_vm0, %v3722_v56, 0.0 }
 0x2ae   : > { %v3764_v35 = vsel %vm1062_vm0, %v3721_v26, 0.0  ;;  %v5169_v15 = vadd.f32 %v3485_v57, %v7301_v30 }
 0x2af   : > { %v3765_v61 = vadd.f32 %v3764_v35, %v3763_v23  ;;  %3621 = vst.msk [vmem:[%s7305_s14 + $0x78] sm:$0xff] %vm1062_vm0, %v5168_v20  ;;  %v3664_v12 = vadd.f32 %v3663_v44, %v3662_v41  ;;  %v3724_v1 = vmul.f32 %v5168_v20, %v5168_v20  ;;  %v3667_v34 = vsel %vm1062_vm0, %v5168_v20, 0.0 }
 0x2b0   : > { %3620 = vst.msk [vmem:[%s7305_s14 + $0x70] sm:$0xff] %vm1062_vm0, %v5169_v15  ;;  %v3665_v5 = vsel %vm1062_vm0, %v5169_v15, 0.0  ;;  %v3723_v8 = vmul.f32 %v5169_v15, %v5169_v15  ;;  %v5130_v39 = vpop.f32.mrb[16].mxu0  ;;  %v4936_v14 = vpop.f32.mrb[20].mxu1 }
 0x2b1   : > { %v3666_v50 = vadd.f32 %v3665_v5, %v3664_v12  ;;  %v3767_v55 = vadd.f32 %v3766_v27, %v3765_v61  ;;  %v5170_v30 = vadd.f32 %v5130_v39, %v4930_v51  ;;  %v3495_v4 = vpop.f32.mrb[17].mxu0  ;;  %v2441_v38 = vpop.f32.mrb[21].mxu1  ;;  %v3770_v54 = vsel %vm1062_vm0, %v3724_v1, 0.0 }
 0x2b2   : > { %v3768_v52 = vsel %vm1062_vm0, %v3723_v8, 0.0  ;;  %v5171_v42 = vadd.f32 %v3495_v4, %v2421_v32 }
 0x2b3   : > { %v3769_v16 = vadd.f32 %v3768_v52, %v3767_v55  ;;  %3623 = vst.msk [vmem:[%s7305_s14 + $0x88] sm:$0xff] %vm1062_vm0, %v5170_v30  ;;  %v3668_v37 = vadd.f32 %v3667_v34, %v3666_v50  ;;  %v3726_v63 = vmul.f32 %v5170_v30, %v5170_v30  ;;  %v3671_v28 = vsel %vm1062_vm0, %v5170_v30, 0.0 }
 0x2b4   : > { %3622 = vst.msk [vmem:[%s7305_s14 + $0x80] sm:$0xff] %vm1062_vm0, %v5171_v42  ;;  %v3669_v6 = vsel %vm1062_vm0, %v5171_v42, 0.0  ;;  %v3725_v33 = vmul.f32 %v5171_v42, %v5171_v42  ;;  %v5133_v9 = vpop.f32.mrb[18].mxu0  ;;  %v4939_v21 = vpop.f32.mrb[22].mxu1 }
 0x2b5   : > { %v3670_v36 = vadd.f32 %v3669_v6, %v3668_v37  ;;  %v3771_v58 = vadd.f32 %v3770_v54, %v3769_v16  ;;  %v5172_v62 = vadd.f32 %v5133_v9, %v4933_v24  ;;  %v3505_v17 = vpop.f32.mrb[19].mxu0  ;;  %v2451_v47 = vpop.f32.mrb[23].mxu1  ;;  %v3774_v13 = vsel %vm1062_vm0, %v3726_v63, 0.0 }
 0x2b6   : > { %v3772_v60 = vsel %vm1062_vm0, %v3725_v33, 0.0  ;;  %v5173_v29 = vadd.f32 %v3505_v17, %v2431_v2 }
 0x2b7   : > { %v3773_v22 = vadd.f32 %v3772_v60, %v3771_v58  ;;  %3625 = vst.msk [vmem:[%s7305_s14 + $0x98] sm:$0xff] %vm1062_vm0, %v5172_v62  ;;  %v3672_v31 = vadd.f32 %v3671_v28, %v3670_v36  ;;  %v3728_v49 = vmul.f32 %v5172_v62, %v5172_v62  ;;  %v3675_v3 = vsel %vm1062_vm0, %v5172_v62, 0.0 }
 0x2b8   : > { %3624 = vst.msk [vmem:[%s7305_s14 + $0x90] sm:$0xff] %vm1062_vm0, %v5173_v29  ;;  %v3673_v53 = vsel %vm1062_vm0, %v5173_v29, 0.0  ;;  %v3727_v11 = vmul.f32 %v5173_v29, %v5173_v29  ;;  %v5136_v7 = vpop.f32.mrb[20].mxu0  ;;  %v4942_v51 = vpop.f32.mrb[24].mxu1 }
 0x2b9   : > { %v3674_v59 = vadd.f32 %v3673_v53, %v3672_v31  ;;  %v3775_v43 = vadd.f32 %v3774_v13, %v3773_v22  ;;  %v5174_v25 = vadd.f32 %v5136_v7, %v4936_v14  ;;  %v3515_v10 = vpop.f32.mrb[21].mxu0  ;;  %v2461_v32 = vpop.f32.mrb[25].mxu1  ;;  %v3778_v45 = vsel %vm1062_vm0, %v3728_v49, 0.0 }
 0x2ba   : > { %v3776_v40 = vsel %vm1062_vm0, %v3727_v11, 0.0  ;;  %v5175_v48 = vadd.f32 %v3515_v10, %v2441_v38 }
 0x2bb   : > { %v3777_v18 = vadd.f32 %v3776_v40, %v3775_v43  ;;  %3627 = vst.msk [vmem:[%s7305_s14 + $0xa8] sm:$0xff] %vm1062_vm0, %v5174_v25  ;;  %v3676_v0 = vadd.f32 %v3675_v3, %v3674_v59  ;;  %v3730_v56 = vmul.f32 %v5174_v25, %v5174_v25  ;;  %v3679_v44 = vsel %vm1062_vm0, %v5174_v25, 0.0 }
 0x2bc   : > { %3626 = vst.msk [vmem:[%s7305_s14 + $0xa0] sm:$0xff] %vm1062_vm0, %v5175_v48  ;;  %v3677_v19 = vsel %vm1062_vm0, %v5175_v48, 0.0  ;;  %v3729_v26 = vmul.f32 %v5175_v48, %v5175_v48  ;;  %v5139_v46 = vpop.f32.mrb[22].mxu0  ;;  %v4945_v24 = vpop.f32.mrb[26].mxu1 }
 0x2bd   : > { %v3678_v41 = vadd.f32 %v3677_v19, %v3676_v0  ;;  %v3779_v23 = vadd.f32 %v3778_v45, %v3777_v18  ;;  %v5176_v20 = vadd.f32 %v5139_v46, %v4939_v21  ;;  %v3525_v57 = vpop.f32.mrb[23].mxu0  ;;  %v2471_v2 = vpop.f32.mrb[27].mxu1  ;;  %v3782_v27 = vsel %vm1062_vm0, %v3730_v56, 0.0 }
 0x2be   : > { %v3780_v35 = vsel %vm1062_vm0, %v3729_v26, 0.0  ;;  %v5177_v15 = vadd.f32 %v3525_v57, %v2451_v47 }
 0x2bf   : > { %v3781_v61 = vadd.f32 %v3780_v35, %v3779_v23  ;;  %3629 = vst.msk [vmem:[%s7305_s14 + $0xb8] sm:$0xff] %vm1062_vm0, %v5176_v20  ;;  %v3680_v12 = vadd.f32 %v3679_v44, %v3678_v41  ;;  %v3732_v1 = vmul.f32 %v5176_v20, %v5176_v20  ;;  %v3683_v34 = vsel %vm1062_vm0, %v5176_v20, 0.0 }
 0x2c0   : > { %3628 = vst.msk [vmem:[%s7305_s14 + $0xb0] sm:$0xff] %vm1062_vm0, %v5177_v15  ;;  %v3681_v5 = vsel %vm1062_vm0, %v5177_v15, 0.0  ;;  %v3731_v8 = vmul.f32 %v5177_v15, %v5177_v15  ;;  %v5142_v39 = vpop.f32.mrb[24].mxu0  ;;  %v4948_v14 = vpop.f32.mrb[28].mxu1 }
 0x2c1   : > { %v3682_v50 = vadd.f32 %v3681_v5, %v3680_v12  ;;  %v3783_v55 = vadd.f32 %v3782_v27, %v3781_v61  ;;  %v5178_v30 = vadd.f32 %v5142_v39, %v4942_v51  ;;  %v3535_v4 = vpop.f32.mrb[25].mxu0  ;;  %v2481_v38 = vpop.f32.mrb[29].mxu1  ;;  %v3786_v54 = vsel %vm1062_vm0, %v3732_v1, 0.0 }
 0x2c2   : > { %v3784_v52 = vsel %vm1062_vm0, %v3731_v8, 0.0  ;;  %v5179_v42 = vadd.f32 %v3535_v4, %v2461_v32 }
 0x2c3   : > { %v3785_v16 = vadd.f32 %v3784_v52, %v3783_v55  ;;  %3631 = vst.msk [vmem:[%s7305_s14 + $0xc8] sm:$0xff] %vm1062_vm0, %v5178_v30  ;;  %v3684_v37 = vadd.f32 %v3683_v34, %v3682_v50  ;;  %v3734_v63 = vmul.f32 %v5178_v30, %v5178_v30  ;;  %v3687_v28 = vsel %vm1062_vm0, %v5178_v30, 0.0 }
 0x2c4   : > { %3630 = vst.msk [vmem:[%s7305_s14 + $0xc0] sm:$0xff] %vm1062_vm0, %v5179_v42  ;;  %v3685_v6 = vsel %vm1062_vm0, %v5179_v42, 0.0  ;;  %v3733_v33 = vmul.f32 %v5179_v42, %v5179_v42  ;;  %v5145_v9 = vpop.f32.mrb[26].mxu0  ;;  %v4951_v21 = vpop.f32.mrb[30].mxu1 }
 0x2c5   : > { %v3686_v36 = vadd.f32 %v3685_v6, %v3684_v37  ;;  %v3787_v58 = vadd.f32 %v3786_v54, %v3785_v16  ;;  %v5180_v62 = vadd.f32 %v5145_v9, %v4945_v24  ;;  %v3545_v17 = vpop.f32.mrb[27].mxu0  ;;  %v2491_v47 = vpop.f32.mrb[31].mxu1  ;;  %v3790_v13 = vsel %vm1062_vm0, %v3734_v63, 0.0 }
 0x2c6   : > { %v3788_v60 = vsel %vm1062_vm0, %v3733_v33, 0.0  ;;  %v5181_v29 = vadd.f32 %v3545_v17, %v2471_v2 }
 0x2c7   : > { %v3789_v22 = vadd.f32 %v3788_v60, %v3787_v58  ;;  %3633 = vst.msk [vmem:[%s7305_s14 + $0xd8] sm:$0xff] %vm1062_vm0, %v5180_v62  ;;  %v3688_v31 = vadd.f32 %v3687_v28, %v3686_v36  ;;  %v3736_v49 = vmul.f32 %v5180_v62, %v5180_v62  ;;  %v3691_v3 = vsel %vm1062_vm0, %v5180_v62, 0.0 }
 0x2c8   : > { %3632 = vst.msk [vmem:[%s7305_s14 + $0xd0] sm:$0xff] %vm1062_vm0, %v5181_v29  ;;  %v3689_v53 = vsel %vm1062_vm0, %v5181_v29, 0.0  ;;  %v3735_v11 = vmul.f32 %v5181_v29, %v5181_v29  ;;  %v5148_v7 = vpop.f32.mrb[28].mxu0 }
 0x2c9   : > { %v3690_v59 = vadd.f32 %v3689_v53, %v3688_v31  ;;  %v3791_v43 = vadd.f32 %v3790_v13, %v3789_v22  ;;  %v5182_v25 = vadd.f32 %v5148_v7, %v4948_v14  ;;  %v3555_v10 = vpop.f32.mrb[29].mxu0  ;;  %v3794_v0 = vsel %vm1062_vm0, %v3736_v49, 0.0 }
 0x2ca   : > { %v3792_v40 = vsel %vm1062_vm0, %v3735_v11, 0.0  ;;  %v5183_v48 = vadd.f32 %v3555_v10, %v2481_v38 }
 0x2cb   : > { %v3793_v51 = vadd.f32 %v3792_v40, %v3791_v43  ;;  %3635 = vst.msk [vmem:[%s7305_s14 + $0xe8] sm:$0xff] %vm1062_vm0, %v5182_v25  ;;  %v3692_v18 = vadd.f32 %v3691_v3, %v3690_v59  ;;  %v3738_v32 = vmul.f32 %v5182_v25, %v5182_v25  ;;  %v3695_v20 = vsel %vm1062_vm0, %v5182_v25, 0.0 }
 0x2cc   : > { %3634 = vst.msk [vmem:[%s7305_s14 + $0xe0] sm:$0xff] %vm1062_vm0, %v5183_v48  ;;  %v3693_v45 = vsel %vm1062_vm0, %v5183_v48, 0.0  ;;  %v3737_v56 = vmul.f32 %v5183_v48, %v5183_v48  ;;  %v5151_v19 = vpop.f32.mrb[30].mxu0 }
 0x2cd   : > { %v3694_v26 = vadd.f32 %v3693_v45, %v3692_v18  ;;  %v3795_v46 = vadd.f32 %v3794_v0, %v3793_v51  ;;  %v5184_v41 = vadd.f32 %v5151_v19, %v4951_v21  ;;  %v3565_v23 = vpop.f32.mrb[31].mxu0  ;;  %v3798_v24 = vsel %vm1062_vm0, %v3738_v32, 0.0 }
 0x2ce   : > { %v3796_v57 = vsel %vm1062_vm0, %v3737_v56, 0.0  ;;  %v5185_v44 = vadd.f32 %v3565_v23, %v2491_v47 }
 0x2cf   : > { %v3797_v35 = vadd.f32 %v3796_v57, %v3795_v46  ;;  %3637 = vst.msk [vmem:[%s7305_s14 + $0xf8] sm:$0xff] %vm1062_vm0, %v5184_v41  ;;  %v3696_v15 = vadd.f32 %v3695_v20, %v3694_v26  ;;  %v3740_v61 = vmul.f32 %v5184_v41, %v5184_v41 }
 0x2d0   : > { %3636 = vst.msk [vmem:[%s7305_s14 + $0xf0] sm:$0xff] %vm1062_vm0, %v5185_v44  ;;  %v3697_v12 = vsel %vm1062_vm0, %v5185_v44, 0.0  ;;  %v3739_v2 = vmul.f32 %v5185_v44, %v5185_v44 }
 0x2d1   : > { %v3698_v27 = vadd.f32 %v3697_v12, %v3696_v15  ;;  %v3799_v1 = vadd.f32 %v3798_v24, %v3797_v35 }
 0x2d2   : > { %5715 = shalt.err (!%p5712_p6)
}
 0x2d3   : > { %s5716_s12 = scalar_lea.hbm %s7437_s3, 4096  ;;  %s5720_s16 = scalar_lea.hbm %s7774_s26, 8192 }
 0x2d4   : > { %p5717_p7 = scmp.ne.s32.totalorder %s7437_s3, %s5716_s12  ;;  %p5721_p4 = scmp.lt.u32.totalorder %s7437_s3, %s7774_s26 }
 0x2d5   : > { %p5722_p12 = scmp.lt.u32.totalorder %s5720_s16, %s5716_s12  ;;  %p5724_p11 = scmp.lt.u32.totalorder %s5716_s12, %s7437_s3 }
 0x2d6   : > { %p5718_p9 = pnand %p5717_p7, %p7776_p10 }
 0x2d7   : > { %p5723_p2 = por %p5722_p12, %p5721_p4 }
 0x2d8   : > { %p5719_p0 = pneg %p5718_p9 }
 0x2d9   : > { %p5725_p1 = por %p5724_p11, %p5723_p2 }
 0x2db   : > { %p5726_p8 = pnand %p5725_p1, %p5719_p0 }
 0x2dd   : > { %5729 = shalt.err (!%p5726_p8)
}
 0x2de   : > { %s5868_s17 = smov 128   ;;  %s5869_s9 = smov 8   ;;  %v3699_v5 = vsel %vm1062_vm0, %v5184_v41, 0.0  ;;  %v3800_v8 = vsel %vm1062_vm0, %v3739_v2, 0.0  ;;  %v3802_v55 = vsel %vm1062_vm0, %v3740_v61, 0.0  ;;  %vm3707_vm3 = vcmask 57344  }
 0x2df   : > { %5428 = dma.vmem_to_hbm [thread:$0]  (%p7776_p10), %s7439_s20, 4096, %s7437_s3, %s3812_s6, %s5868_s17, %s5868_s17, %s5869_s9   ;;  %v3700_v39 = vadd.f32 %v3699_v5, %v3698_v27  ;;  %v3801_v50 = vadd.f32 %v3800_v8, %v3799_v1 }
 0x2e0   : > { %s4397_s14 = sshll.u32 %s5848_s30, 4  ;;  %s501_s23 = scalar_lea.vmem [#allocation14], %s6216_s24 }
 0x2e1   : > { %v3701_v30 = vrot.slane %v3700_v39, 4  ;;  %v3803_v4 = vadd.f32 %v3802_v55, %v3801_v50  ;;  %s3853_s20 = sshll.u32 %s501_s23, 4  ;;  %s507_s15 = scalar_lea.vmem [#allocation16], %s6216_s24  ;;  %s7486_s20 = int_to_ptr.vmem [resolvable:$true] %s3853_s20 }
 0x2e2   : > { %s3867_s10 = sshll.u32 %s507_s15, 4  ;;  %s7777_s25 = sld [smem:[#allocation69_spill]]  ;;  %s7494_s10 = int_to_ptr.vmem [resolvable:$true] %s3867_s10 }
 0x2e3   : > { %v3702_v34 = vadd.f32 %v3701_v30, %v3700_v39  ;;  %v3804_v52 = vrot.slane %v3803_v4, 4  ;;  %s7778_s8 = sld [smem:[#allocation70_spill]]  ;;  %s7498_s27 = scalar_lea.sflag [#allocation15], %s432_s7 }
 0x2e4   : > { %s5730_s1 = scalar_lea.vmem %s7486_s20, 16  ;;  %s5870_s16 = smov [#allocation14]  }
 0x2e5   : > { %v3703_v42 = vrot.slane %v3702_v34, 2  ;;  %v3805_v14 = vadd.f32 %v3804_v52, %v3803_v4  ;;  %p5731_p13 = scmp.ne.s32.totalorder %s7486_s20, %s5730_s1  ;;  %s5734_s13 = sshll.u32 %s5870_s16, 4  ;;  %s5735_s13 = int_to_ptr.vmem [resolvable:$false] %s5734_s13 }
 0x2e6   : > { %s5736_s21 = scalar_lea.vmem %s5735_s13, 32  ;;  %p5737_p6 = scmp.lt.s32.totalorder %s7486_s20, %s5735_s13 }
 0x2e7   : > { %v3704_v16 = vadd.f32 %v3703_v42, %v3702_v34  ;;  %v3806_v37 = vrot.slane %v3805_v14, 2  ;;  %p5732_p5 = pnand %p5731_p13, %p7776_p10  ;;  %p5738_p7 = scmp.lt.s32.totalorder %s5736_s21, %s5730_s1 }
 0x2e8   : > { %s7484_s19 = scalar_lea.hbm %s7777_s25, %s4397_s14 }
 0x2e9   : > { %v3705_v38 = vrot.slane %v3704_v16, 1  ;;  %v3807_v54 = vadd.f32 %v3806_v37, %v3805_v14  ;;  %s7492_s12 = scalar_lea.hbm %s7778_s8, %s4397_s14  ;;  %p5733_p3 = pneg %p5732_p5 }
 0x2ea   : > { %p5739_p9 = por %p5738_p7, %p5737_p6 }
 0x2eb   : > { %v3808_v63 = vrot.slane %v3807_v54, 1  ;;  %v3706_v6 = vadd.f32 %v3705_v38, %v3704_v16 }
 0x2ec   : > { %p5740_p0 = pnand %p5739_p9, %p5733_p3 }
 0x2ed   : > { %v3809_v33 = vadd.f32 %v3808_v63, %v3807_v54  ;;  %3708 = vst.msk [vmem:[%s501_s23] sm:$0x1] %vm3707_vm3, %v3706_v6 }
 0x2ee   : > { %5743 = shalt.err (!%p5740_p0)
}
 0x2ef   : > { %s5744_s11 = scalar_lea.hbm %s7484_s19, 16  ;;  %s5748_s9 = scalar_lea.hbm %s7777_s25, 32 }
 0x2f0   : > { %p5745_p4 = scmp.ne.s32.totalorder %s7484_s19, %s5744_s11  ;;  %p5749_p11 = scmp.lt.u32.totalorder %s7484_s19, %s7777_s25 }
 0x2f1   : > { %p5750_p1 = scmp.lt.u32.totalorder %s5748_s9, %s5744_s11  ;;  %p5752_p13 = scmp.lt.u32.totalorder %s5744_s11, %s7484_s19 }
 0x2f2   : > { %p5746_p12 = pnand %p5745_p4, %p7776_p10 }
 0x2f3   : > { %p5751_p8 = por %p5750_p1, %p5749_p11 }
 0x2f4   : > { %p5747_p2 = pneg %p5746_p12 }
 0x2f5   : > { %p5753_p5 = por %p5752_p13, %p5751_p8 }
 0x2f7   : > { %p5754_p3 = pnand %p5753_p5, %p5747_p2 }
 0x2f9   : > { %5757 = shalt.err (!%p5754_p3)
}
 0x2fa   : > { %5429 = dma.vmem_to_hbm [thread:$0]  (%p7776_p10), %s7486_s20, 16, %s7484_s19, %s7498_s27   ;;  %3810 = vst.msk [vmem:[%s507_s15] sm:$0x1] %vm3707_vm3, %v3809_v33 }
 0x2fb   : > { %s5758_s3 = scalar_lea.vmem %s7494_s10, 16  ;;  %s5871_s6 = smov [#allocation16]  }
 0x2fc   : > { %p5759_p6 = scmp.ne.s32.totalorder %s7494_s10, %s5758_s3  ;;  %s5762_s30 = sshll.u32 %s5871_s6, 4  ;;  %s5763_s30 = int_to_ptr.vmem [resolvable:$false] %s5762_s30 }
 0x2fd   : > { %s5764_s22 = scalar_lea.vmem %s5763_s30, 32  ;;  %p5765_p0 = scmp.lt.s32.totalorder %s7494_s10, %s5763_s30 }
 0x2fe   : > { %p5760_p7 = pnand %p5759_p6, %p7776_p10  ;;  %p5766_p4 = scmp.lt.s32.totalorder %s5764_s22, %s5758_s3 }
 0x300   : > { %p5761_p9 = pneg %p5760_p7  ;;  %p5767_p12 = por %p5766_p4, %p5765_p0 }
 0x302   : > { %p5768_p2 = pnand %p5767_p12, %p5761_p9 }
 0x304   : > { %5771 = shalt.err (!%p5768_p2)
}
 0x305   : > { %s5772_s24 = scalar_lea.hbm %s7492_s12, 16  ;;  %s5776_s19 = scalar_lea.hbm %s7778_s8, 32 }
 0x306   : > { %p5773_p11 = scmp.ne.s32.totalorder %s7492_s12, %s5772_s24  ;;  %p5777_p13 = scmp.lt.u32.totalorder %s7492_s12, %s7778_s8 }
 0x307   : > { %p5778_p5 = scmp.lt.u32.totalorder %s5776_s19, %s5772_s24  ;;  %p5780_p6 = scmp.lt.u32.totalorder %s5772_s24, %s7492_s12 }
 0x308   : > { %p5774_p1 = pnand %p5773_p11, %p7776_p10 }
 0x309   : > { %p5779_p3 = por %p5778_p5, %p5777_p13 }
 0x30a   : > { %p5775_p8 = pneg %p5774_p1 }
 0x30b   : > { %p5781_p7 = por %p5780_p6, %p5779_p3 }
 0x30d   : > { %p5782_p9 = pnand %p5781_p7, %p5775_p8 }
 0x30f   : > { %5785 = shalt.err (!%p5782_p9)
}
 0x310   : > { %5430 = dma.vmem_to_hbm [thread:$0]  (%p7776_p10), %s7494_s10, 16, %s7492_s12, %s7498_s27  }
 0x311 PF: > { %s7779_s13 = sld [smem:[#allocation23_spill]]  ;;  %s7780_s21 = sld [smem:[#allocation27_spill]] }
 0x312   : > { %s7781_s11 = sld [smem:[#allocation25_spill]] }
 0x317   : > { %s3879_s7 = sand.u32 1, %s7779_s13   ;;  %p7782_p0 = scmp.ne.s32.totalorder %s7780_s21, 0 }
 0x318   : > { %p7783_p4 = scmp.ge.s32.totalorder %s7781_s11, 2  ;;  %s3880_s17 = scalar_lea.sflag [#allocation4], %s3879_s7 }
 0x31a   : > { %p5455_p12 = pnand %p7783_p4, %p7782_p0 }
 0x31c   : > { %5827 = dma.done.wait (!%p5455_p12), %s3880_s17, 4096  }
 0x31d   : > { %5829 = vsyncadd (!%p5455_p12), %s3880_s17, 4294963200  ;;  %s7784_s9 = sadd.s32 4294967294, %s7781_s11  }
 0x31e   : > { %s3888_s14 = sand.u32 1, %s7784_s9  }
 0x31f   : > { %s3889_s23 = scalar_lea.sflag [#allocation15], %s3888_s14 }
 0x320   : > { %5831 = dma.done.wait (!%p5455_p12), %s3889_s23, 32  }
 0x321   : > { %5833 = vsyncadd (!%p5455_p12), %s3889_s23, 4294967264  ;;  %s33_s10 = sadd.s32 1, %s7781_s11   ;;  %s7785_s18 = sld [smem:[#allocation29_spill]] }
 0x322   : > { %p30_p10 = scmp.ge.s32.totalorder %s33_s10, 4   ;;  %s7786_s30 = sld [smem:[#allocation24_spill]] }
 0x323   : > { %s7787_s9 = sld [smem:[#allocation28_spill]]  ;;  %s7788_s27 = smov %s5840_s28 }
 0x324   : > { %s7789_s28 = smov %s5844_s29  ;;  %32 = sbr.rel (!%p30_p10) target bundleno = 18 (0x12), region = 166 }
 0x327   : > { %s7790_s29 = smov %s7785_s18 }
 0x32b   :  { %3901 = vsyncpa [#allocation3], 1 }
 0x32c   :  { %3903 = vsyncpa [#allocation3 + $0x1], 1 }
 0x32d   :  { %3904 = vsyncpa [#allocation6], 1 }
 0x32e   :  { %3906 = vsyncpa [#allocation6 + $0x1], 1 }
 0x32f   :  { %3907 = vsyncpa [#allocation9], 1 }
 0x330   :  { %3908 = vsyncpa [#allocation12], 1 }
 0x331   :  { %3909 = vsyncpa [#allocation4], 1 }
 0x332   :  { %3911 = vsyncpa [#allocation4 + $0x1], 1 }
 0x333   :  { %3912 = vsyncpa [#allocation15], 1 }
 0x334   :  { %3914 = vsyncpa [#allocation15 + $0x1], 1 }

</bundles_post_ra>
